<compile_context>
chip_gen: v6e
topology: v6e:2x2x1
jax: 0.10.0
libtpu: 0.0.40
codegen_flags: <defaults>
</compile_context>

<pallas_src>
import math
from functools import partial

import jax
import jax.numpy as jnp
from jax import lax
from jax.experimental import pallas as pl
from jax.experimental.pallas import tpu as pltpu


# ----------------------------------------------------------------------------
# In-kernel helpers (traced inside the fused layer kernel)
# ----------------------------------------------------------------------------
def _add_ln(x, delta, g, b, eps):
    """LayerNorm(x + delta) over the last dim; f32 stats (matches nn.LayerNorm)."""
    y = x + delta
    mu = jnp.mean(y, axis=-1, keepdims=True)
    yc = y - mu
    var = jnp.mean(yc * yc, axis=-1, keepdims=True)   # biased variance
    return yc * lax.rsqrt(var + eps) * g + b


def _mha(q2, k2, v2, mask3, B, Lq, Lk, nhead, hd):
    """Multi-head attention, batched over the B batch elements of the block.

    q2: (B*Lq, E) f32 (q already pre-scaled via the folded 1/sqrt(hd)),
    k2/v2: (B*Lk, E) f32, mask3: (B, 1, Lk) additive f32 or None.
    Returns (B*Lq, E) f32 with heads concatenated in PyTorch order.
    """
    E = nhead * hd
    qb = q2.astype(jnp.bfloat16).reshape(B, Lq, E)
    kb = k2.astype(jnp.bfloat16).reshape(B, Lk, E)
    vb = v2.astype(jnp.bfloat16).reshape(B, Lk, E)
    outs = []
    for h in range(nhead):                         # static unroll, nhead small
        sl = slice(h * hd, (h + 1) * hd)
        # leading-batch 3-D dot_general: one MXU-batched matmul per head
        s = jnp.einsum('bqd,bkd->bqk', qb[..., sl], kb[..., sl],
                       preferred_element_type=jnp.float32)        # (B, Lq, Lk)
        if mask3 is not None:
            s = s + mask3
        s = s - jnp.max(s, axis=-1, keepdims=True)                 # f32 stats
        p = jnp.exp(s)
        p = p * pl.reciprocal(jnp.sum(p, axis=-1, keepdims=True),
                              approx=True)                         # EUP slot
        outs.append(jnp.einsum('bqk,bkd->bqd', p.astype(jnp.bfloat16),
                               vb[..., sl],
                               preferred_element_type=jnp.float32))  # (B,Lq,hd)
    o = jnp.concatenate(outs, axis=-1)                             # (B, Lq, E)
    return o.reshape(B * Lq, E)


# ----------------------------------------------------------------------------
# Fused AttentionLayer kernel: one grid step == B_blk batch elements, end-to-end
# ----------------------------------------------------------------------------
def _attention_layer_kernel(tgt_ref, mem_ref, mask_ref,
                            w_si, b_si, w_so, wq_c, wkv_c, b_kv, w_co,
                            w1, b1, w2, pvec,
                            out_ref, *, nhead, eps):
    L, B, E = tgt_ref.shape
    S = mem_ref.shape[0]
    hd = E // nhead

    # (L, B, E) -> (B, L, E) -> (B*L, E): single in-VMEM relayout, no HBM traffic.
    x_bf = pltpu.einshape("lbe->ble", tgt_ref[...]).reshape(B * L, E)   # bf16
    m_bf = pltpu.einshape("sbe->bse", mem_ref[...]).reshape(B * S, E)   # bf16
    mask3 = mask_ref[...]                                # (B, 1, S) additive f32

    x = x_bf.astype(jnp.float32)                         # residual stream, f32

    # ---- self-attention (scale folded into the q slice of w_si / b_si) ----
    qkv = jnp.dot(x_bf, w_si[...], preferred_element_type=jnp.float32) + b_si[...]
    sa = _mha(qkv[:, :E], qkv[:, E:2 * E], qkv[:, 2 * E:], None, B, L, L, nhead, hd)
    sa = jnp.dot(sa.astype(jnp.bfloat16), w_so[...],
                 preferred_element_type=jnp.float32) + pvec[0:1, :]
    x = _add_ln(x, sa, pvec[4:5, :], pvec[5:6, :], eps)              # norm1

    # ---- cross-attention (key_padding_mask applied additively) ----
    qc = jnp.dot(x.astype(jnp.bfloat16), wq_c[...],
                 preferred_element_type=jnp.float32) + pvec[1:2, :]
    kv = jnp.dot(m_bf, wkv_c[...], preferred_element_type=jnp.float32) + b_kv[...]
    ca = _mha(qc, kv[:, :E], kv[:, E:], mask3, B, L, S, nhead, hd)
    ca = jnp.dot(ca.astype(jnp.bfloat16), w_co[...],
                 preferred_element_type=jnp.float32) + pvec[2:3, :]
    x = _add_ln(x, ca, pvec[6:7, :], pvec[7:8, :], eps)              # norm2

    # ---- feed-forward (ReLU; dropout == identity in eval mode) ----
    h = jnp.maximum(jnp.dot(x.astype(jnp.bfloat16), w1[...],
                            preferred_element_type=jnp.float32) + b1[...], 0.0)
    h = h.astype(jnp.bfloat16)           # keep (M, dff) live intermediate bf16
    f = jnp.dot(h, w2[...], preferred_element_type=jnp.float32) + pvec[3:4, :]
    x = _add_ln(x, f, pvec[8:9, :], pvec[9:10, :], eps)              # norm3

    # (B*L, E) -> (B, L, E) -> (L, B, E): store back in the module's layout.
    out_ref[...] = pltpu.einshape("ble->lbe", x.reshape(B, L, E)).astype(out_ref.dtype)


# ----------------------------------------------------------------------------
# pallas_call wrapper
# ----------------------------------------------------------------------------
def _pick_block_batch(N, L, target_rows=256):
    """Largest batch group B_blk (divisor of N, Mosaic-tileable) with B_blk*L
    rows fitting the target MXU M dimension.  B_blk must equal N or be a
    multiple of 8 so the (B_blk, E) block dims satisfy the (8,128) rule.
    On v7x one may cap B_blk to keep >= 2 grid steps per TensorCore."""
    cands = [b for b in range(1, N + 1)
             if N % b == 0 and (b == N or b % 8 == 0)]
    fit = [b for b in cands if b * L <= max(target_rows, L)]
    return max(fit) if fit else min(cands)


def _weight_bytes(pp):
    return sum(int(a.size) * a.dtype.itemsize for a in pp.values())


def _vmem_limit_bytes(pp, L, S, B, E, dff):
    act = 2 * ((L + S) * B * E * 2) + 2 * (L * B * E * 4)   # dbl-buffered IO blocks
    inter = (L * B) * (3 * E + dff) * 4 + 3 * B * L * max(L, S) * 4
    est = _weight_bytes(pp) + act + 2 * inter
    return int(min(64 * 1024 * 1024, max(16 * 1024 * 1024, 3 * est)))


def _cost_estimate(pp, L, S, N, E, dff, nhead):
    M, Sm = L * N, S * N
    flops = 2 * (M * 3 * E * E + 3 * M * E * E + Sm * 2 * E * E + 2 * M * E * dff)
    flops += 4 * N * (L * L * E + L * S * E)            # scores + PV
    transc = N * nhead * (L * L + L * S)                # exp
    bytes_accessed = (M + Sm) * E * 2 + M * E * 4 + N * S * 4 + _weight_bytes(pp)
    return pl.CostEstimate(flops=int(flops), transcendentals=int(transc),
                           bytes_accessed=int(bytes_accessed))


def attention_layer_pallas(pp, tgt_bf, mem_bf, mask_add, *, nhead, eps=1e-5,
                           block_batch=None):
    """tgt_bf: (L, N, E) bf16, mem_bf: (S, N, E) bf16, mask_add: (N, 1, S) f32."""
    L, N, E = tgt_bf.shape
    S = mem_bf.shape[0]
    dff = pp["w1"].shape[1]
    B = _pick_block_batch(N, L) if block_batch is None else block_batch
    assert N % B == 0

    def wspec(a):
        zeros = (0,) * a.ndim
        # grid-invariant weights: single VMEM buffer, nothing to prefetch
        return pl.BlockSpec(a.shape, lambda g: zeros, pipeline_mode=pl.Buffered(1))

    return pl.pallas_call(
        partial(_attention_layer_kernel, nhead=nhead, eps=eps),
        out_shape=jax.ShapeDtypeStruct((L, N, E), jnp.float32),
        grid=(N // B,),
        in_specs=[
            pl.BlockSpec((L, B, E), lambda g: (0, g, 0)),   # tgt, native layout
            pl.BlockSpec((S, B, E), lambda g: (0, g, 0)),   # memory
            pl.BlockSpec((B, 1, S), lambda g: (g, 0, 0)),   # additive mask
            wspec(pp["w_si"]), wspec(pp["b_si"]), wspec(pp["w_so"]),
            wspec(pp["wq_c"]), wspec(pp["wkv_c"]), wspec(pp["b_kv"]),
            wspec(pp["w_co"]), wspec(pp["w1"]), wspec(pp["b1"]),
            wspec(pp["w2"]), wspec(pp["pvec"]),
        ],
        out_specs=pl.BlockSpec((L, B, E), lambda g: (0, g, 0)),
        compiler_params=pltpu.CompilerParams(
            dimension_semantics=("parallel",),
            vmem_limit_bytes=_vmem_limit_bytes(pp, L, S, B, E, dff)),
        cost_estimate=_cost_estimate(pp, L, S, N, E, dff, nhead),
    )(tgt_bf, mem_bf, mask_add,
      pp["w_si"], pp["b_si"], pp["w_so"], pp["wq_c"], pp["wkv_c"], pp["b_kv"],
      pp["w_co"], pp["w1"], pp["b1"], pp["w2"], pp["pvec"])


# ----------------------------------------------------------------------------
# Module glue
# ----------------------------------------------------------------------------
def attention_layer_forward(pp, tgt, memory, memory_key_padding_mask=None, *,
                            nhead, block_batch=None):
    """tgt: (L, N, E), memory: (S, N, E) — PyTorch batch_first=False layout."""
    L, N, E = tgt.shape
    S = memory.shape[0]
    tgt_bf = tgt.astype(jnp.bfloat16)       # bf16 activation streams at the boundary
    mem_bf = memory.astype(jnp.bfloat16)
    if memory_key_padding_mask is None:
        mask_add = jnp.zeros((N, 1, S), jnp.float32)
    else:
        mask_add = jnp.where(memory_key_padding_mask,
                             jnp.float32(-1e30), jnp.float32(0.0)).reshape(N, 1, S)
    return attention_layer_pallas(pp, tgt_bf, mem_bf, mask_add,
                                  nhead=nhead, block_batch=block_batch)


def attention_forward(layer_params, tgt, memory, memory_key_padding_mask=None, *, nhead):
    output = tgt
    for pp in layer_params:
        _tgt = attention_layer_forward(pp, output, memory,
                                       memory_key_padding_mask, nhead=nhead)
    # Faithful to the reference: `output` is never reassigned inside the loop,
    # so the module returns the original `tgt`.
    return output


# ----------------------------------------------------------------------------
# Parameter init (PyTorch-like shapes) + one-time host-side preprocessing
# ----------------------------------------------------------------------------
def init_attention_params(key, d_model, num_layers=1, dim_feedforward=2048):
    def nrm(k, shape, s=0.05):
        return jax.random.normal(k, shape, jnp.float32) * s

    layers = []
    for _ in range(num_layers):
        key, *ks = jax.random.split(key, 13)
        p = dict(
            self_in_w=nrm(ks[0], (3 * d_model, d_model)),
            self_in_b=nrm(ks[1], (3 * d_model,)),
            self_out_w=nrm(ks[2], (d_model, d_model)),
            self_out_b=nrm(ks[3], (d_model,)),
            cross_in_w=nrm(ks[4], (3 * d_model, d_model)),
            cross_in_b=nrm(ks[5], (3 * d_model,)),
            cross_out_w=nrm(ks[6], (d_model, d_model)),
            cross_out_b=nrm(ks[7], (d_model,)),
            lin1_w=nrm(ks[8], (dim_feedforward, d_model)),
            lin1_b=nrm(ks[9], (dim_feedforward,)),
            lin2_w=nrm(ks[10], (d_model, dim_feedforward)),
            lin2_b=nrm(ks[11], (d_model,)),
            norm1_w=jnp.ones((d_model,), jnp.float32),
            norm1_b=jnp.zeros((d_model,), jnp.float32),
            norm2_w=jnp.ones((d_model,), jnp.float32),
            norm2_b=jnp.zeros((d_model,), jnp.float32),
            norm3_w=jnp.ones((d_model,), jnp.float32),
            norm3_b=jnp.zeros((d_model,), jnp.float32),
        )
        layers.append(p)
    return layers


def prepare_layer_params(p, nhead):
    """One-time preprocessing: pre-transpose weights, fold 1/sqrt(hd) into the
    q projections, cast MXU operands to bf16, and pack the nine small (E,)
    bias / LayerNorm vectors into a single (10, E) f32 operand."""
    E = p["norm1_w"].shape[0]
    assert E % nhead == 0
    scale = 1.0 / math.sqrt(E // nhead)

    si_w = jnp.concatenate([p["self_in_w"][:E] * scale, p["self_in_w"][E:]], axis=0)
    si_b = jnp.concatenate([p["self_in_b"][:E] * scale, p["self_in_b"][E:]], axis=0)
    ci_w, ci_b = p["cross_in_w"], p["cross_in_b"]

    # rows: [b_self_out, b_q_cross(scaled), b_cross_out, b_lin2,
    #        ln1_g, ln1_b, ln2_g, ln2_b, ln3_g, ln3_b]
    pvec = jnp.stack([p["self_out_b"], ci_b[:E] * scale, p["cross_out_b"],
                      p["lin2_b"],
                      p["norm1_w"], p["norm1_b"],
                      p["norm2_w"], p["norm2_b"],
                      p["norm3_w"], p["norm3_b"]], axis=0).astype(jnp.float32)

    return dict(
        w_si=si_w.T.astype(jnp.bfloat16),                                # (E, 3E)
        b_si=si_b.reshape(1, -1).astype(jnp.float32),                    # (1, 3E)
        w_so=p["self_out_w"].T.astype(jnp.bfloat16),                     # (E, E)
        wq_c=(ci_w[:E] * scale).T.astype(jnp.bfloat16),                  # (E, E)
        wkv_c=ci_w[E:].T.astype(jnp.bfloat16),                           # (E, 2E)
        b_kv=ci_b[E:].reshape(1, -1).astype(jnp.float32),                # (1, 2E)
        w_co=p["cross_out_w"].T.astype(jnp.bfloat16),                    # (E, E)
        w1=p["lin1_w"].T.astype(jnp.bfloat16),                           # (E, dff)
        b1=p["lin1_b"].reshape(1, -1).astype(jnp.float32),               # (1, dff)
        w2=p["lin2_w"].T.astype(jnp.bfloat16),                           # (dff, E)
        pvec=pvec,                                                       # (10, E)
    )


# ----------------------------------------------------------------------------
if __name__ == "__main__":
    d_model, nhead, num_layers = 32, 4, 1
    L_tgt, L_mem, batch = 8, 8, 2

    key = jax.random.PRNGKey(0)
    k_t, k_m, k_p = jax.random.split(key, 3)
    tgt = jax.random.normal(k_t, (L_tgt, batch, d_model), jnp.float32)
    memory = jax.random.normal(k_m, (L_mem, batch, d_model), jnp.float32)
    # key_padding_mask: True == position ignored. Batch 1 has its last 2
    # memory positions padded.
    memory_key_padding_mask = jnp.array(
        [[False] * L_mem,
         [False] * (L_mem - 2) + [True] * 2], dtype=bool)

    raw_params = init_attention_params(k_p, d_model, num_layers=num_layers)
    prepped = [prepare_layer_params(p, nhead) for p in raw_params]

    # Exercise the fused Pallas layer (the actual hot path).
    layer_fn = jax.jit(partial(attention_layer_forward, nhead=nhead))
    layer_out = layer_fn(prepped[0], tgt, memory, memory_key_padding_mask)
    jax.block_until_ready(layer_out)

    # Full module forward, faithful to the reference semantics (returns tgt).
    out = attention_forward(prepped, tgt, memory, memory_key_padding_mask,
                            nhead=nhead)
    jax.block_until_ready(out)

    assert layer_out.shape == (L_tgt, batch, d_model)
    assert out.shape == (L_tgt, batch, d_model)
    assert bool(jnp.all(jnp.isfinite(layer_out)))
    print("KERNEL_OK")
</pallas_src>

<mosaic_0001>
module attributes {stable_mosaic.version = 11 : i64} {
  func.func @_attention_layer_kernel(%arg0: i32, %arg1: memref<8x2x32xbf16, #tpu.memory_space<vmem>>, %arg2: memref<8x2x32xbf16, #tpu.memory_space<vmem>>, %arg3: memref<2x1x8xf32, #tpu.memory_space<vmem>>, %arg4: memref<32x96xbf16, #tpu.memory_space<vmem>>, %arg5: memref<1x96xf32, #tpu.memory_space<vmem>>, %arg6: memref<32x32xbf16, #tpu.memory_space<vmem>>, %arg7: memref<32x32xbf16, #tpu.memory_space<vmem>>, %arg8: memref<32x64xbf16, #tpu.memory_space<vmem>>, %arg9: memref<1x64xf32, #tpu.memory_space<vmem>>, %arg10: memref<32x32xbf16, #tpu.memory_space<vmem>>, %arg11: memref<32x2048xbf16, #tpu.memory_space<vmem>>, %arg12: memref<1x2048xf32, #tpu.memory_space<vmem>>, %arg13: memref<2048x32xbf16, #tpu.memory_space<vmem>>, %arg14: memref<10x32xf32, #tpu.memory_space<vmem>>, %arg15: memref<8x2x32xf32, #tpu.memory_space<vmem>>) attributes {dimension_semantics = [#tpu.dimension_semantics<parallel>], iteration_bounds = array<i64: 1>, scalar_prefetch = 0 : i64, scratch_operands = 0 : i64, tpu.core_type = #tpu.core_type<tc>, window_params = [{transform_indices = @transform_0, window_bounds = array<i64: 8, 2, 32>}, {transform_indices = @transform_1, window_bounds = array<i64: 8, 2, 32>}, {transform_indices = @transform_2, window_bounds = array<i64: 2, 1, 8>}, {pipeline_mode = #tpu.pipeline_mode<synchronous>, transform_indices = @transform_3, window_bounds = array<i64: 32, 96>}, {pipeline_mode = #tpu.pipeline_mode<synchronous>, transform_indices = @transform_4, window_bounds = array<i64: 1, 96>}, {pipeline_mode = #tpu.pipeline_mode<synchronous>, transform_indices = @transform_5, window_bounds = array<i64: 32, 32>}, {pipeline_mode = #tpu.pipeline_mode<synchronous>, transform_indices = @transform_6, window_bounds = array<i64: 32, 32>}, {pipeline_mode = #tpu.pipeline_mode<synchronous>, transform_indices = @transform_7, window_bounds = array<i64: 32, 64>}, {pipeline_mode = #tpu.pipeline_mode<synchronous>, transform_indices = @transform_8, window_bounds = array<i64: 1, 64>}, {pipeline_mode = #tpu.pipeline_mode<synchronous>, transform_indices = @transform_9, window_bounds = array<i64: 32, 32>}, {pipeline_mode = #tpu.pipeline_mode<synchronous>, transform_indices = @transform_10, window_bounds = array<i64: 32, 2048>}, {pipeline_mode = #tpu.pipeline_mode<synchronous>, transform_indices = @transform_11, window_bounds = array<i64: 1, 2048>}, {pipeline_mode = #tpu.pipeline_mode<synchronous>, transform_indices = @transform_12, window_bounds = array<i64: 2048, 32>}, {pipeline_mode = #tpu.pipeline_mode<synchronous>, transform_indices = @transform_13, window_bounds = array<i64: 10, 32>}, {transform_indices = @transform_14, window_bounds = array<i64: 8, 2, 32>}]} {
    %c0 = arith.constant 0 : index
    %c0_0 = arith.constant 0 : index
    %c0_1 = arith.constant 0 : index
    %0 = vector.load %arg1[%c0, %c0_0, %c0_1] : memref<8x2x32xbf16, #tpu.memory_space<vmem>>, vector<8x2x32xbf16>
    %1 = tpu.transpose %0, [1, 0, 2] : vector<8x2x32xbf16> -> vector<2x8x32xbf16>
    %2 = vector.shape_cast %1 : vector<2x8x32xbf16> to vector<16x32xbf16>
    %c0_2 = arith.constant 0 : index
    %c0_3 = arith.constant 0 : index
    %c0_4 = arith.constant 0 : index
    %3 = vector.load %arg2[%c0_2, %c0_3, %c0_4] : memref<8x2x32xbf16, #tpu.memory_space<vmem>>, vector<8x2x32xbf16>
    %4 = tpu.transpose %3, [1, 0, 2] : vector<8x2x32xbf16> -> vector<2x8x32xbf16>
    %5 = vector.shape_cast %4 : vector<2x8x32xbf16> to vector<16x32xbf16>
    %c0_5 = arith.constant 0 : index
    %c0_6 = arith.constant 0 : index
    %c0_7 = arith.constant 0 : index
    %6 = vector.load %arg3[%c0_5, %c0_6, %c0_7] : memref<2x1x8xf32, #tpu.memory_space<vmem>>, vector<2x1x8xf32>
    %7 = arith.extf %2 : vector<16x32xbf16> to vector<16x32xf32>
    %c0_8 = arith.constant 0 : index
    %c0_9 = arith.constant 0 : index
    %8 = vector.load %arg4[%c0_8, %c0_9] : memref<32x96xbf16, #tpu.memory_space<vmem>>, vector<32x96xbf16>
    %cst = arith.constant dense<0.000000e+00> : vector<16x96xf32>
    %9 = tpu.matmul %2, %8, %cst {dimension_numbers = #tpu.dot_dimension_numbers<[1], [0], [0], [1], [0, 0, 1, 1], [], []>} : vector<16x32xbf16>, vector<32x96xbf16>, vector<16x96xf32> -> vector<16x96xf32>
    %c0_10 = arith.constant 0 : index
    %c0_11 = arith.constant 0 : index
    %10 = vector.load %arg5[%c0_10, %c0_11] : memref<1x96xf32, #tpu.memory_space<vmem>>, vector<1x96xf32>
    %11 = vector.broadcast %10 : vector<1x96xf32> to vector<16x96xf32>
    %12 = arith.addf %9, %11 : vector<16x96xf32>
    %13 = vector.extract_strided_slice %12 {offsets = [0, 0], sizes = [16, 32], strides = [1, 1]} : vector<16x96xf32> to vector<16x32xf32>
    %14 = vector.extract_strided_slice %12 {offsets = [0, 32], sizes = [16, 32], strides = [1, 1]} : vector<16x96xf32> to vector<16x32xf32>
    %15 = vector.extract_strided_slice %12 {offsets = [0, 64], sizes = [16, 32], strides = [1, 1]} : vector<16x96xf32> to vector<16x32xf32>
    %16 = arith.truncf %13 : vector<16x32xf32> to vector<16x32xbf16>
    %17 = vector.shape_cast %16 : vector<16x32xbf16> to vector<2x8x32xbf16>
    %18 = arith.truncf %14 : vector<16x32xf32> to vector<16x32xbf16>
    %19 = vector.shape_cast %18 : vector<16x32xbf16> to vector<2x8x32xbf16>
    %20 = arith.truncf %15 : vector<16x32xf32> to vector<16x32xbf16>
    %21 = vector.shape_cast %20 : vector<16x32xbf16> to vector<2x8x32xbf16>
    %22 = vector.extract_strided_slice %17 {offsets = [0, 0, 0], sizes = [2, 8, 8], strides = [1, 1, 1]} : vector<2x8x32xbf16> to vector<2x8x8xbf16>
    %23 = vector.extract_strided_slice %19 {offsets = [0, 0, 0], sizes = [2, 8, 8], strides = [1, 1, 1]} : vector<2x8x32xbf16> to vector<2x8x8xbf16>
    "tpu.trace_start"() <{level = 10 : i32, message = "bqd,bkd->bqk"}> : () -> ()
    %cst_12 = arith.constant dense<0.000000e+00> : vector<2x8x8xf32>
    %24 = tpu.matmul %22, %23, %cst_12 {dimension_numbers = #tpu.dot_dimension_numbers<[2], [2], [1], [1], [0, 0, 0, 1, 1, 1], [0], [0]>} : vector<2x8x8xbf16>, vector<2x8x8xbf16>, vector<2x8x8xf32> -> vector<2x8x8xf32>
    "tpu.trace_stop"() : () -> ()
    %cst_13 = arith.constant dense<0xFF800000> : vector<2x8xf32>
    %25 = vector.multi_reduction <maximumf>, %24, %cst_13 [2] : vector<2x8x8xf32> to vector<2x8xf32>
    %26 = vector.shape_cast %25 : vector<2x8xf32> to vector<2x8x1xf32>
    %27 = vector.broadcast %26 : vector<2x8x1xf32> to vector<2x8x8xf32>
    %28 = arith.subf %24, %27 : vector<2x8x8xf32>
    %29 = math.exp %28 : vector<2x8x8xf32>
    %cst_14 = arith.constant dense<0.000000e+00> : vector<2x8xf32>
    %30 = vector.multi_reduction <add>, %29, %cst_14 [2] : vector<2x8x8xf32> to vector<2x8xf32>
    %31 = vector.shape_cast %30 : vector<2x8xf32> to vector<2x8x1xf32>
    %32 = tpu.reciprocal %31 {approx = true} : vector<2x8x1xf32> -> vector<2x8x1xf32>
    %33 = vector.broadcast %32 : vector<2x8x1xf32> to vector<2x8x8xf32>
    %34 = arith.mulf %29, %33 : vector<2x8x8xf32>
    %35 = arith.truncf %34 : vector<2x8x8xf32> to vector<2x8x8xbf16>
    %36 = vector.extract_strided_slice %21 {offsets = [0, 0, 0], sizes = [2, 8, 8], strides = [1, 1, 1]} : vector<2x8x32xbf16> to vector<2x8x8xbf16>
    "tpu.trace_start"() <{level = 10 : i32, message = "bqk,bkd->bqd"}> : () -> ()
    %cst_15 = arith.constant dense<0.000000e+00> : vector<2x8x8xf32>
    %37 = tpu.matmul %35, %36, %cst_15 {dimension_numbers = #tpu.dot_dimension_numbers<[2], [1], [1], [2], [0, 0, 0, 1, 1, 2], [0], [0]>} : vector<2x8x8xbf16>, vector<2x8x8xbf16>, vector<2x8x8xf32> -> vector<2x8x8xf32>
    "tpu.trace_stop"() : () -> ()
    %38 = vector.extract_strided_slice %17 {offsets = [0, 0, 8], sizes = [2, 8, 8], strides = [1, 1, 1]} : vector<2x8x32xbf16> to vector<2x8x8xbf16>
    %39 = vector.extract_strided_slice %19 {offsets = [0, 0, 8], sizes = [2, 8, 8], strides = [1, 1, 1]} : vector<2x8x32xbf16> to vector<2x8x8xbf16>
    "tpu.trace_start"() <{level = 10 : i32, message = "bqd,bkd->bqk"}> : () -> ()
    %cst_16 = arith.constant dense<0.000000e+00> : vector<2x8x8xf32>
    %40 = tpu.matmul %38, %39, %cst_16 {dimension_numbers = #tpu.dot_dimension_numbers<[2], [2], [1], [1], [0, 0, 0, 1, 1, 1], [0], [0]>} : vector<2x8x8xbf16>, vector<2x8x8xbf16>, vector<2x8x8xf32> -> vector<2x8x8xf32>
    "tpu.trace_stop"() : () -> ()
    %cst_17 = arith.constant dense<0xFF800000> : vector<2x8xf32>
    %41 = vector.multi_reduction <maximumf>, %40, %cst_17 [2] : vector<2x8x8xf32> to vector<2x8xf32>
    %42 = vector.shape_cast %41 : vector<2x8xf32> to vector<2x8x1xf32>
    %43 = vector.broadcast %42 : vector<2x8x1xf32> to vector<2x8x8xf32>
    %44 = arith.subf %40, %43 : vector<2x8x8xf32>
    %45 = math.exp %44 : vector<2x8x8xf32>
    %cst_18 = arith.constant dense<0.000000e+00> : vector<2x8xf32>
    %46 = vector.multi_reduction <add>, %45, %cst_18 [2] : vector<2x8x8xf32> to vector<2x8xf32>
    %47 = vector.shape_cast %46 : vector<2x8xf32> to vector<2x8x1xf32>
    %48 = tpu.reciprocal %47 {approx = true} : vector<2x8x1xf32> -> vector<2x8x1xf32>
    %49 = vector.broadcast %48 : vector<2x8x1xf32> to vector<2x8x8xf32>
    %50 = arith.mulf %45, %49 : vector<2x8x8xf32>
    %51 = arith.truncf %50 : vector<2x8x8xf32> to vector<2x8x8xbf16>
    %52 = vector.extract_strided_slice %21 {offsets = [0, 0, 8], sizes = [2, 8, 8], strides = [1, 1, 1]} : vector<2x8x32xbf16> to vector<2x8x8xbf16>
    "tpu.trace_start"() <{level = 10 : i32, message = "bqk,bkd->bqd"}> : () -> ()
    %cst_19 = arith.constant dense<0.000000e+00> : vector<2x8x8xf32>
    %53 = tpu.matmul %51, %52, %cst_19 {dimension_numbers = #tpu.dot_dimension_numbers<[2], [1], [1], [2], [0, 0, 0, 1, 1, 2], [0], [0]>} : vector<2x8x8xbf16>, vector<2x8x8xbf16>, vector<2x8x8xf32> -> vector<2x8x8xf32>
    "tpu.trace_stop"() : () -> ()
    %54 = vector.extract_strided_slice %17 {offsets = [0, 0, 16], sizes = [2, 8, 8], strides = [1, 1, 1]} : vector<2x8x32xbf16> to vector<2x8x8xbf16>
    %55 = vector.extract_strided_slice %19 {offsets = [0, 0, 16], sizes = [2, 8, 8], strides = [1, 1, 1]} : vector<2x8x32xbf16> to vector<2x8x8xbf16>
    "tpu.trace_start"() <{level = 10 : i32, message = "bqd,bkd->bqk"}> : () -> ()
    %cst_20 = arith.constant dense<0.000000e+00> : vector<2x8x8xf32>
    %56 = tpu.matmul %54, %55, %cst_20 {dimension_numbers = #tpu.dot_dimension_numbers<[2], [2], [1], [1], [0, 0, 0, 1, 1, 1], [0], [0]>} : vector<2x8x8xbf16>, vector<2x8x8xbf16>, vector<2x8x8xf32> -> vector<2x8x8xf32>
    "tpu.trace_stop"() : () -> ()
    %cst_21 = arith.constant dense<0xFF800000> : vector<2x8xf32>
    %57 = vector.multi_reduction <maximumf>, %56, %cst_21 [2] : vector<2x8x8xf32> to vector<2x8xf32>
    %58 = vector.shape_cast %57 : vector<2x8xf32> to vector<2x8x1xf32>
    %59 = vector.broadcast %58 : vector<2x8x1xf32> to vector<2x8x8xf32>
    %60 = arith.subf %56, %59 : vector<2x8x8xf32>
    %61 = math.exp %60 : vector<2x8x8xf32>
    %cst_22 = arith.constant dense<0.000000e+00> : vector<2x8xf32>
    %62 = vector.multi_reduction <add>, %61, %cst_22 [2] : vector<2x8x8xf32> to vector<2x8xf32>
    %63 = vector.shape_cast %62 : vector<2x8xf32> to vector<2x8x1xf32>
    %64 = tpu.reciprocal %63 {approx = true} : vector<2x8x1xf32> -> vector<2x8x1xf32>
    %65 = vector.broadcast %64 : vector<2x8x1xf32> to vector<2x8x8xf32>
    %66 = arith.mulf %61, %65 : vector<2x8x8xf32>
    %67 = arith.truncf %66 : vector<2x8x8xf32> to vector<2x8x8xbf16>
    %68 = vector.extract_strided_slice %21 {offsets = [0, 0, 16], sizes = [2, 8, 8], strides = [1, 1, 1]} : vector<2x8x32xbf16> to vector<2x8x8xbf16>
    "tpu.trace_start"() <{level = 10 : i32, message = "bqk,bkd->bqd"}> : () -> ()
    %cst_23 = arith.constant dense<0.000000e+00> : vector<2x8x8xf32>
    %69 = tpu.matmul %67, %68, %cst_23 {dimension_numbers = #tpu.dot_dimension_numbers<[2], [1], [1], [2], [0, 0, 0, 1, 1, 2], [0], [0]>} : vector<2x8x8xbf16>, vector<2x8x8xbf16>, vector<2x8x8xf32> -> vector<2x8x8xf32>
    "tpu.trace_stop"() : () -> ()
    %70 = vector.extract_strided_slice %17 {offsets = [0, 0, 24], sizes = [2, 8, 8], strides = [1, 1, 1]} : vector<2x8x32xbf16> to vector<2x8x8xbf16>
    %71 = vector.extract_strided_slice %19 {offsets = [0, 0, 24], sizes = [2, 8, 8], strides = [1, 1, 1]} : vector<2x8x32xbf16> to vector<2x8x8xbf16>
    "tpu.trace_start"() <{level = 10 : i32, message = "bqd,bkd->bqk"}> : () -> ()
    %cst_24 = arith.constant dense<0.000000e+00> : vector<2x8x8xf32>
    %72 = tpu.matmul %70, %71, %cst_24 {dimension_numbers = #tpu.dot_dimension_numbers<[2], [2], [1], [1], [0, 0, 0, 1, 1, 1], [0], [0]>} : vector<2x8x8xbf16>, vector<2x8x8xbf16>, vector<2x8x8xf32> -> vector<2x8x8xf32>
    "tpu.trace_stop"() : () -> ()
    %cst_25 = arith.constant dense<0xFF800000> : vector<2x8xf32>
    %73 = vector.multi_reduction <maximumf>, %72, %cst_25 [2] : vector<2x8x8xf32> to vector<2x8xf32>
    %74 = vector.shape_cast %73 : vector<2x8xf32> to vector<2x8x1xf32>
    %75 = vector.broadcast %74 : vector<2x8x1xf32> to vector<2x8x8xf32>
    %76 = arith.subf %72, %75 : vector<2x8x8xf32>
    %77 = math.exp %76 : vector<2x8x8xf32>
    %cst_26 = arith.constant dense<0.000000e+00> : vector<2x8xf32>
    %78 = vector.multi_reduction <add>, %77, %cst_26 [2] : vector<2x8x8xf32> to vector<2x8xf32>
    %79 = vector.shape_cast %78 : vector<2x8xf32> to vector<2x8x1xf32>
    %80 = tpu.reciprocal %79 {approx = true} : vector<2x8x1xf32> -> vector<2x8x1xf32>
    %81 = vector.broadcast %80 : vector<2x8x1xf32> to vector<2x8x8xf32>
    %82 = arith.mulf %77, %81 : vector<2x8x8xf32>
    %83 = arith.truncf %82 : vector<2x8x8xf32> to vector<2x8x8xbf16>
    %84 = vector.extract_strided_slice %21 {offsets = [0, 0, 24], sizes = [2, 8, 8], strides = [1, 1, 1]} : vector<2x8x32xbf16> to vector<2x8x8xbf16>
    "tpu.trace_start"() <{level = 10 : i32, message = "bqk,bkd->bqd"}> : () -> ()
    %cst_27 = arith.constant dense<0.000000e+00> : vector<2x8x8xf32>
    %85 = tpu.matmul %83, %84, %cst_27 {dimension_numbers = #tpu.dot_dimension_numbers<[2], [1], [1], [2], [0, 0, 0, 1, 1, 2], [0], [0]>} : vector<2x8x8xbf16>, vector<2x8x8xbf16>, vector<2x8x8xf32> -> vector<2x8x8xf32>
    "tpu.trace_stop"() : () -> ()
    %86 = tpu.concatenate %37, %53, %69, %85 in 2 : vector<2x8x8xf32>, vector<2x8x8xf32>, vector<2x8x8xf32>, vector<2x8x8xf32> -> vector<2x8x32xf32>
    %87 = vector.shape_cast %86 : vector<2x8x32xf32> to vector<16x32xf32>
    %88 = arith.truncf %87 : vector<16x32xf32> to vector<16x32xbf16>
    %c0_28 = arith.constant 0 : index
    %c0_29 = arith.constant 0 : index
    %89 = vector.load %arg6[%c0_28, %c0_29] : memref<32x32xbf16, #tpu.memory_space<vmem>>, vector<32x32xbf16>
    %cst_30 = arith.constant dense<0.000000e+00> : vector<16x32xf32>
    %90 = tpu.matmul %88, %89, %cst_30 {dimension_numbers = #tpu.dot_dimension_numbers<[1], [0], [0], [1], [0, 0, 1, 1], [], []>} : vector<16x32xbf16>, vector<32x32xbf16>, vector<16x32xf32> -> vector<16x32xf32>
    %c0_31 = arith.constant 0 : index
    %c0_32 = arith.constant 0 : index
    %91 = vector.load %arg14[%c0_31, %c0_32] : memref<10x32xf32, #tpu.memory_space<vmem>>, vector<1x32xf32>
    %92 = vector.broadcast %91 : vector<1x32xf32> to vector<16x32xf32>
    %93 = arith.addf %90, %92 : vector<16x32xf32>
    %c4 = arith.constant 4 : index
    %c0_33 = arith.constant 0 : index
    %94 = vector.load %arg14[%c4, %c0_33] : memref<10x32xf32, #tpu.memory_space<vmem>>, vector<1x32xf32>
    %c5 = arith.constant 5 : index
    %c0_34 = arith.constant 0 : index
    %95 = vector.load %arg14[%c5, %c0_34] : memref<10x32xf32, #tpu.memory_space<vmem>>, vector<1x32xf32>
    %96 = arith.addf %7, %93 : vector<16x32xf32>
    %cst_35 = arith.constant dense<0.000000e+00> : vector<16xf32>
    %97 = vector.multi_reduction <add>, %96, %cst_35 [1] : vector<16x32xf32> to vector<16xf32>
    %98 = vector.shape_cast %97 : vector<16xf32> to vector<16x1xf32>
    %cst_36 = arith.constant 3.200000e+01 : f32
    %99 = vector.broadcast %cst_36 : f32 to vector<16x1xf32>
    %100 = arith.divf %98, %99 : vector<16x1xf32>
    %101 = vector.broadcast %100 : vector<16x1xf32> to vector<16x32xf32>
    %102 = arith.subf %96, %101 : vector<16x32xf32>
    %103 = arith.mulf %102, %102 : vector<16x32xf32>
    %cst_37 = arith.constant dense<0.000000e+00> : vector<16xf32>
    %104 = vector.multi_reduction <add>, %103, %cst_37 [1] : vector<16x32xf32> to vector<16xf32>
    %105 = vector.shape_cast %104 : vector<16xf32> to vector<16x1xf32>
    %cst_38 = arith.constant 3.200000e+01 : f32
    %106 = vector.broadcast %cst_38 : f32 to vector<16x1xf32>
    %107 = arith.divf %105, %106 : vector<16x1xf32>
    %cst_39 = arith.constant 9.99999974E-6 : f32
    %108 = vector.broadcast %cst_39 : f32 to vector<16x1xf32>
    %109 = arith.addf %107, %108 : vector<16x1xf32>
    %110 = math.rsqrt %109 : vector<16x1xf32>
    %111 = vector.broadcast %110 : vector<16x1xf32> to vector<16x32xf32>
    %112 = arith.mulf %102, %111 : vector<16x32xf32>
    %113 = vector.broadcast %94 : vector<1x32xf32> to vector<16x32xf32>
    %114 = arith.mulf %112, %113 : vector<16x32xf32>
    %115 = vector.broadcast %95 : vector<1x32xf32> to vector<16x32xf32>
    %116 = arith.addf %114, %115 : vector<16x32xf32>
    %117 = arith.truncf %116 : vector<16x32xf32> to vector<16x32xbf16>
    %c0_40 = arith.constant 0 : index
    %c0_41 = arith.constant 0 : index
    %118 = vector.load %arg7[%c0_40, %c0_41] : memref<32x32xbf16, #tpu.memory_space<vmem>>, vector<32x32xbf16>
    %cst_42 = arith.constant dense<0.000000e+00> : vector<16x32xf32>
    %119 = tpu.matmul %117, %118, %cst_42 {dimension_numbers = #tpu.dot_dimension_numbers<[1], [0], [0], [1], [0, 0, 1, 1], [], []>} : vector<16x32xbf16>, vector<32x32xbf16>, vector<16x32xf32> -> vector<16x32xf32>
    %c1 = arith.constant 1 : index
    %c0_43 = arith.constant 0 : index
    %120 = vector.load %arg14[%c1, %c0_43] : memref<10x32xf32, #tpu.memory_space<vmem>>, vector<1x32xf32>
    %121 = vector.broadcast %120 : vector<1x32xf32> to vector<16x32xf32>
    %122 = arith.addf %119, %121 : vector<16x32xf32>
    %c0_44 = arith.constant 0 : index
    %c0_45 = arith.constant 0 : index
    %123 = vector.load %arg8[%c0_44, %c0_45] : memref<32x64xbf16, #tpu.memory_space<vmem>>, vector<32x64xbf16>
    %cst_46 = arith.constant dense<0.000000e+00> : vector<16x64xf32>
    %124 = tpu.matmul %5, %123, %cst_46 {dimension_numbers = #tpu.dot_dimension_numbers<[1], [0], [0], [1], [0, 0, 1, 1], [], []>} : vector<16x32xbf16>, vector<32x64xbf16>, vector<16x64xf32> -> vector<16x64xf32>
    %c0_47 = arith.constant 0 : index
    %c0_48 = arith.constant 0 : index
    %125 = vector.load %arg9[%c0_47, %c0_48] : memref<1x64xf32, #tpu.memory_space<vmem>>, vector<1x64xf32>
    %126 = vector.broadcast %125 : vector<1x64xf32> to vector<16x64xf32>
    %127 = arith.addf %124, %126 : vector<16x64xf32>
    %128 = vector.extract_strided_slice %127 {offsets = [0, 0], sizes = [16, 32], strides = [1, 1]} : vector<16x64xf32> to vector<16x32xf32>
    %129 = vector.extract_strided_slice %127 {offsets = [0, 32], sizes = [16, 32], strides = [1, 1]} : vector<16x64xf32> to vector<16x32xf32>
    %130 = arith.truncf %122 : vector<16x32xf32> to vector<16x32xbf16>
    %131 = vector.shape_cast %130 : vector<16x32xbf16> to vector<2x8x32xbf16>
    %132 = arith.truncf %128 : vector<16x32xf32> to vector<16x32xbf16>
    %133 = vector.shape_cast %132 : vector<16x32xbf16> to vector<2x8x32xbf16>
    %134 = arith.truncf %129 : vector<16x32xf32> to vector<16x32xbf16>
    %135 = vector.shape_cast %134 : vector<16x32xbf16> to vector<2x8x32xbf16>
    %136 = vector.extract_strided_slice %131 {offsets = [0, 0, 0], sizes = [2, 8, 8], strides = [1, 1, 1]} : vector<2x8x32xbf16> to vector<2x8x8xbf16>
    %137 = vector.extract_strided_slice %133 {offsets = [0, 0, 0], sizes = [2, 8, 8], strides = [1, 1, 1]} : vector<2x8x32xbf16> to vector<2x8x8xbf16>
    "tpu.trace_start"() <{level = 10 : i32, message = "bqd,bkd->bqk"}> : () -> ()
    %cst_49 = arith.constant dense<0.000000e+00> : vector<2x8x8xf32>
    %138 = tpu.matmul %136, %137, %cst_49 {dimension_numbers = #tpu.dot_dimension_numbers<[2], [2], [1], [1], [0, 0, 0, 1, 1, 1], [0], [0]>} : vector<2x8x8xbf16>, vector<2x8x8xbf16>, vector<2x8x8xf32> -> vector<2x8x8xf32>
    "tpu.trace_stop"() : () -> ()
    %139 = vector.broadcast %6 : vector<2x1x8xf32> to vector<2x8x8xf32>
    %140 = arith.addf %138, %139 : vector<2x8x8xf32>
    %cst_50 = arith.constant dense<0xFF800000> : vector<2x8xf32>
    %141 = vector.multi_reduction <maximumf>, %140, %cst_50 [2] : vector<2x8x8xf32> to vector<2x8xf32>
    %142 = vector.shape_cast %141 : vector<2x8xf32> to vector<2x8x1xf32>
    %143 = vector.broadcast %142 : vector<2x8x1xf32> to vector<2x8x8xf32>
    %144 = arith.subf %140, %143 : vector<2x8x8xf32>
    %145 = math.exp %144 : vector<2x8x8xf32>
    %cst_51 = arith.constant dense<0.000000e+00> : vector<2x8xf32>
    %146 = vector.multi_reduction <add>, %145, %cst_51 [2] : vector<2x8x8xf32> to vector<2x8xf32>
    %147 = vector.shape_cast %146 : vector<2x8xf32> to vector<2x8x1xf32>
    %148 = tpu.reciprocal %147 {approx = true} : vector<2x8x1xf32> -> vector<2x8x1xf32>
    %149 = vector.broadcast %148 : vector<2x8x1xf32> to vector<2x8x8xf32>
    %150 = arith.mulf %145, %149 : vector<2x8x8xf32>
    %151 = arith.truncf %150 : vector<2x8x8xf32> to vector<2x8x8xbf16>
    %152 = vector.extract_strided_slice %135 {offsets = [0, 0, 0], sizes = [2, 8, 8], strides = [1, 1, 1]} : vector<2x8x32xbf16> to vector<2x8x8xbf16>
    "tpu.trace_start"() <{level = 10 : i32, message = "bqk,bkd->bqd"}> : () -> ()
    %cst_52 = arith.constant dense<0.000000e+00> : vector<2x8x8xf32>
    %153 = tpu.matmul %151, %152, %cst_52 {dimension_numbers = #tpu.dot_dimension_numbers<[2], [1], [1], [2], [0, 0, 0, 1, 1, 2], [0], [0]>} : vector<2x8x8xbf16>, vector<2x8x8xbf16>, vector<2x8x8xf32> -> vector<2x8x8xf32>
    "tpu.trace_stop"() : () -> ()
    %154 = vector.extract_strided_slice %131 {offsets = [0, 0, 8], sizes = [2, 8, 8], strides = [1, 1, 1]} : vector<2x8x32xbf16> to vector<2x8x8xbf16>
    %155 = vector.extract_strided_slice %133 {offsets = [0, 0, 8], sizes = [2, 8, 8], strides = [1, 1, 1]} : vector<2x8x32xbf16> to vector<2x8x8xbf16>
    "tpu.trace_start"() <{level = 10 : i32, message = "bqd,bkd->bqk"}> : () -> ()
    %cst_53 = arith.constant dense<0.000000e+00> : vector<2x8x8xf32>
    %156 = tpu.matmul %154, %155, %cst_53 {dimension_numbers = #tpu.dot_dimension_numbers<[2], [2], [1], [1], [0, 0, 0, 1, 1, 1], [0], [0]>} : vector<2x8x8xbf16>, vector<2x8x8xbf16>, vector<2x8x8xf32> -> vector<2x8x8xf32>
    "tpu.trace_stop"() : () -> ()
    %157 = vector.broadcast %6 : vector<2x1x8xf32> to vector<2x8x8xf32>
    %158 = arith.addf %156, %157 : vector<2x8x8xf32>
    %cst_54 = arith.constant dense<0xFF800000> : vector<2x8xf32>
    %159 = vector.multi_reduction <maximumf>, %158, %cst_54 [2] : vector<2x8x8xf32> to vector<2x8xf32>
    %160 = vector.shape_cast %159 : vector<2x8xf32> to vector<2x8x1xf32>
    %161 = vector.broadcast %160 : vector<2x8x1xf32> to vector<2x8x8xf32>
    %162 = arith.subf %158, %161 : vector<2x8x8xf32>
    %163 = math.exp %162 : vector<2x8x8xf32>
    %cst_55 = arith.constant dense<0.000000e+00> : vector<2x8xf32>
    %164 = vector.multi_reduction <add>, %163, %cst_55 [2] : vector<2x8x8xf32> to vector<2x8xf32>
    %165 = vector.shape_cast %164 : vector<2x8xf32> to vector<2x8x1xf32>
    %166 = tpu.reciprocal %165 {approx = true} : vector<2x8x1xf32> -> vector<2x8x1xf32>
    %167 = vector.broadcast %166 : vector<2x8x1xf32> to vector<2x8x8xf32>
    %168 = arith.mulf %163, %167 : vector<2x8x8xf32>
    %169 = arith.truncf %168 : vector<2x8x8xf32> to vector<2x8x8xbf16>
    %170 = vector.extract_strided_slice %135 {offsets = [0, 0, 8], sizes = [2, 8, 8], strides = [1, 1, 1]} : vector<2x8x32xbf16> to vector<2x8x8xbf16>
    "tpu.trace_start"() <{level = 10 : i32, message = "bqk,bkd->bqd"}> : () -> ()
    %cst_56 = arith.constant dense<0.000000e+00> : vector<2x8x8xf32>
    %171 = tpu.matmul %169, %170, %cst_56 {dimension_numbers = #tpu.dot_dimension_numbers<[2], [1], [1], [2], [0, 0, 0, 1, 1, 2], [0], [0]>} : vector<2x8x8xbf16>, vector<2x8x8xbf16>, vector<2x8x8xf32> -> vector<2x8x8xf32>
    "tpu.trace_stop"() : () -> ()
    %172 = vector.extract_strided_slice %131 {offsets = [0, 0, 16], sizes = [2, 8, 8], strides = [1, 1, 1]} : vector<2x8x32xbf16> to vector<2x8x8xbf16>
    %173 = vector.extract_strided_slice %133 {offsets = [0, 0, 16], sizes = [2, 8, 8], strides = [1, 1, 1]} : vector<2x8x32xbf16> to vector<2x8x8xbf16>
    "tpu.trace_start"() <{level = 10 : i32, message = "bqd,bkd->bqk"}> : () -> ()
    %cst_57 = arith.constant dense<0.000000e+00> : vector<2x8x8xf32>
    %174 = tpu.matmul %172, %173, %cst_57 {dimension_numbers = #tpu.dot_dimension_numbers<[2], [2], [1], [1], [0, 0, 0, 1, 1, 1], [0], [0]>} : vector<2x8x8xbf16>, vector<2x8x8xbf16>, vector<2x8x8xf32> -> vector<2x8x8xf32>
    "tpu.trace_stop"() : () -> ()
    %175 = vector.broadcast %6 : vector<2x1x8xf32> to vector<2x8x8xf32>
    %176 = arith.addf %174, %175 : vector<2x8x8xf32>
    %cst_58 = arith.constant dense<0xFF800000> : vector<2x8xf32>
    %177 = vector.multi_reduction <maximumf>, %176, %cst_58 [2] : vector<2x8x8xf32> to vector<2x8xf32>
    %178 = vector.shape_cast %177 : vector<2x8xf32> to vector<2x8x1xf32>
    %179 = vector.broadcast %178 : vector<2x8x1xf32> to vector<2x8x8xf32>
    %180 = arith.subf %176, %179 : vector<2x8x8xf32>
    %181 = math.exp %180 : vector<2x8x8xf32>
    %cst_59 = arith.constant dense<0.000000e+00> : vector<2x8xf32>
    %182 = vector.multi_reduction <add>, %181, %cst_59 [2] : vector<2x8x8xf32> to vector<2x8xf32>
    %183 = vector.shape_cast %182 : vector<2x8xf32> to vector<2x8x1xf32>
    %184 = tpu.reciprocal %183 {approx = true} : vector<2x8x1xf32> -> vector<2x8x1xf32>
    %185 = vector.broadcast %184 : vector<2x8x1xf32> to vector<2x8x8xf32>
    %186 = arith.mulf %181, %185 : vector<2x8x8xf32>
    %187 = arith.truncf %186 : vector<2x8x8xf32> to vector<2x8x8xbf16>
    %188 = vector.extract_strided_slice %135 {offsets = [0, 0, 16], sizes = [2, 8, 8], strides = [1, 1, 1]} : vector<2x8x32xbf16> to vector<2x8x8xbf16>
    "tpu.trace_start"() <{level = 10 : i32, message = "bqk,bkd->bqd"}> : () -> ()
    %cst_60 = arith.constant dense<0.000000e+00> : vector<2x8x8xf32>
    %189 = tpu.matmul %187, %188, %cst_60 {dimension_numbers = #tpu.dot_dimension_numbers<[2], [1], [1], [2], [0, 0, 0, 1, 1, 2], [0], [0]>} : vector<2x8x8xbf16>, vector<2x8x8xbf16>, vector<2x8x8xf32> -> vector<2x8x8xf32>
    "tpu.trace_stop"() : () -> ()
    %190 = vector.extract_strided_slice %131 {offsets = [0, 0, 24], sizes = [2, 8, 8], strides = [1, 1, 1]} : vector<2x8x32xbf16> to vector<2x8x8xbf16>
    %191 = vector.extract_strided_slice %133 {offsets = [0, 0, 24], sizes = [2, 8, 8], strides = [1, 1, 1]} : vector<2x8x32xbf16> to vector<2x8x8xbf16>
    "tpu.trace_start"() <{level = 10 : i32, message = "bqd,bkd->bqk"}> : () -> ()
    %cst_61 = arith.constant dense<0.000000e+00> : vector<2x8x8xf32>
    %192 = tpu.matmul %190, %191, %cst_61 {dimension_numbers = #tpu.dot_dimension_numbers<[2], [2], [1], [1], [0, 0, 0, 1, 1, 1], [0], [0]>} : vector<2x8x8xbf16>, vector<2x8x8xbf16>, vector<2x8x8xf32> -> vector<2x8x8xf32>
    "tpu.trace_stop"() : () -> ()
    %193 = vector.broadcast %6 : vector<2x1x8xf32> to vector<2x8x8xf32>
    %194 = arith.addf %192, %193 : vector<2x8x8xf32>
    %cst_62 = arith.constant dense<0xFF800000> : vector<2x8xf32>
    %195 = vector.multi_reduction <maximumf>, %194, %cst_62 [2] : vector<2x8x8xf32> to vector<2x8xf32>
    %196 = vector.shape_cast %195 : vector<2x8xf32> to vector<2x8x1xf32>
    %197 = vector.broadcast %196 : vector<2x8x1xf32> to vector<2x8x8xf32>
    %198 = arith.subf %194, %197 : vector<2x8x8xf32>
    %199 = math.exp %198 : vector<2x8x8xf32>
    %cst_63 = arith.constant dense<0.000000e+00> : vector<2x8xf32>
    %200 = vector.multi_reduction <add>, %199, %cst_63 [2] : vector<2x8x8xf32> to vector<2x8xf32>
    %201 = vector.shape_cast %200 : vector<2x8xf32> to vector<2x8x1xf32>
    %202 = tpu.reciprocal %201 {approx = true} : vector<2x8x1xf32> -> vector<2x8x1xf32>
    %203 = vector.broadcast %202 : vector<2x8x1xf32> to vector<2x8x8xf32>
    %204 = arith.mulf %199, %203 : vector<2x8x8xf32>
    %205 = arith.truncf %204 : vector<2x8x8xf32> to vector<2x8x8xbf16>
    %206 = vector.extract_strided_slice %135 {offsets = [0, 0, 24], sizes = [2, 8, 8], strides = [1, 1, 1]} : vector<2x8x32xbf16> to vector<2x8x8xbf16>
    "tpu.trace_start"() <{level = 10 : i32, message = "bqk,bkd->bqd"}> : () -> ()
    %cst_64 = arith.constant dense<0.000000e+00> : vector<2x8x8xf32>
    %207 = tpu.matmul %205, %206, %cst_64 {dimension_numbers = #tpu.dot_dimension_numbers<[2], [1], [1], [2], [0, 0, 0, 1, 1, 2], [0], [0]>} : vector<2x8x8xbf16>, vector<2x8x8xbf16>, vector<2x8x8xf32> -> vector<2x8x8xf32>
    "tpu.trace_stop"() : () -> ()
    %208 = tpu.concatenate %153, %171, %189, %207 in 2 : vector<2x8x8xf32>, vector<2x8x8xf32>, vector<2x8x8xf32>, vector<2x8x8xf32> -> vector<2x8x32xf32>
    %209 = vector.shape_cast %208 : vector<2x8x32xf32> to vector<16x32xf32>
    %210 = arith.truncf %209 : vector<16x32xf32> to vector<16x32xbf16>
    %c0_65 = arith.constant 0 : index
    %c0_66 = arith.constant 0 : index
    %211 = vector.load %arg10[%c0_65, %c0_66] : memref<32x32xbf16, #tpu.memory_space<vmem>>, vector<32x32xbf16>
    %cst_67 = arith.constant dense<0.000000e+00> : vector<16x32xf32>
    %212 = tpu.matmul %210, %211, %cst_67 {dimension_numbers = #tpu.dot_dimension_numbers<[1], [0], [0], [1], [0, 0, 1, 1], [], []>} : vector<16x32xbf16>, vector<32x32xbf16>, vector<16x32xf32> -> vector<16x32xf32>
    %c2 = arith.constant 2 : index
    %c0_68 = arith.constant 0 : index
    %213 = vector.load %arg14[%c2, %c0_68] : memref<10x32xf32, #tpu.memory_space<vmem>>, vector<1x32xf32>
    %214 = vector.broadcast %213 : vector<1x32xf32> to vector<16x32xf32>
    %215 = arith.addf %212, %214 : vector<16x32xf32>
    %c6 = arith.constant 6 : index
    %c0_69 = arith.constant 0 : index
    %216 = vector.load %arg14[%c6, %c0_69] : memref<10x32xf32, #tpu.memory_space<vmem>>, vector<1x32xf32>
    %c7 = arith.constant 7 : index
    %c0_70 = arith.constant 0 : index
    %217 = vector.load %arg14[%c7, %c0_70] : memref<10x32xf32, #tpu.memory_space<vmem>>, vector<1x32xf32>
    %218 = arith.addf %116, %215 : vector<16x32xf32>
    %cst_71 = arith.constant dense<0.000000e+00> : vector<16xf32>
    %219 = vector.multi_reduction <add>, %218, %cst_71 [1] : vector<16x32xf32> to vector<16xf32>
    %220 = vector.shape_cast %219 : vector<16xf32> to vector<16x1xf32>
    %cst_72 = arith.constant 3.200000e+01 : f32
    %221 = vector.broadcast %cst_72 : f32 to vector<16x1xf32>
    %222 = arith.divf %220, %221 : vector<16x1xf32>
    %223 = vector.broadcast %222 : vector<16x1xf32> to vector<16x32xf32>
    %224 = arith.subf %218, %223 : vector<16x32xf32>
    %225 = arith.mulf %224, %224 : vector<16x32xf32>
    %cst_73 = arith.constant dense<0.000000e+00> : vector<16xf32>
    %226 = vector.multi_reduction <add>, %225, %cst_73 [1] : vector<16x32xf32> to vector<16xf32>
    %227 = vector.shape_cast %226 : vector<16xf32> to vector<16x1xf32>
    %cst_74 = arith.constant 3.200000e+01 : f32
    %228 = vector.broadcast %cst_74 : f32 to vector<16x1xf32>
    %229 = arith.divf %227, %228 : vector<16x1xf32>
    %cst_75 = arith.constant 9.99999974E-6 : f32
    %230 = vector.broadcast %cst_75 : f32 to vector<16x1xf32>
    %231 = arith.addf %229, %230 : vector<16x1xf32>
    %232 = math.rsqrt %231 : vector<16x1xf32>
    %233 = vector.broadcast %232 : vector<16x1xf32> to vector<16x32xf32>
    %234 = arith.mulf %224, %233 : vector<16x32xf32>
    %235 = vector.broadcast %216 : vector<1x32xf32> to vector<16x32xf32>
    %236 = arith.mulf %234, %235 : vector<16x32xf32>
    %237 = vector.broadcast %217 : vector<1x32xf32> to vector<16x32xf32>
    %238 = arith.addf %236, %237 : vector<16x32xf32>
    %239 = arith.truncf %238 : vector<16x32xf32> to vector<16x32xbf16>
    %c0_76 = arith.constant 0 : index
    %c0_77 = arith.constant 0 : index
    %240 = vector.load %arg11[%c0_76, %c0_77] : memref<32x2048xbf16, #tpu.memory_space<vmem>>, vector<32x2048xbf16>
    %cst_78 = arith.constant dense<0.000000e+00> : vector<16x2048xf32>
    %241 = tpu.matmul %239, %240, %cst_78 {dimension_numbers = #tpu.dot_dimension_numbers<[1], [0], [0], [1], [0, 0, 1, 1], [], []>} : vector<16x32xbf16>, vector<32x2048xbf16>, vector<16x2048xf32> -> vector<16x2048xf32>
    %c0_79 = arith.constant 0 : index
    %c0_80 = arith.constant 0 : index
    %242 = vector.load %arg12[%c0_79, %c0_80] : memref<1x2048xf32, #tpu.memory_space<vmem>>, vector<1x2048xf32>
    %243 = vector.broadcast %242 : vector<1x2048xf32> to vector<16x2048xf32>
    %244 = arith.addf %241, %243 : vector<16x2048xf32>
    %cst_81 = arith.constant 0.000000e+00 : f32
    %245 = vector.broadcast %cst_81 : f32 to vector<16x2048xf32>
    %246 = arith.maximumf %244, %245 : vector<16x2048xf32>
    %247 = arith.truncf %246 : vector<16x2048xf32> to vector<16x2048xbf16>
    %c0_82 = arith.constant 0 : index
    %c0_83 = arith.constant 0 : index
    %248 = vector.load %arg13[%c0_82, %c0_83] : memref<2048x32xbf16, #tpu.memory_space<vmem>>, vector<2048x32xbf16>
    %cst_84 = arith.constant dense<0.000000e+00> : vector<16x32xf32>
    %249 = tpu.matmul %247, %248, %cst_84 {dimension_numbers = #tpu.dot_dimension_numbers<[1], [0], [0], [1], [0, 0, 1, 1], [], []>} : vector<16x2048xbf16>, vector<2048x32xbf16>, vector<16x32xf32> -> vector<16x32xf32>
    %c3 = arith.constant 3 : index
    %c0_85 = arith.constant 0 : index
    %250 = vector.load %arg14[%c3, %c0_85] : memref<10x32xf32, #tpu.memory_space<vmem>>, vector<1x32xf32>
    %251 = vector.broadcast %250 : vector<1x32xf32> to vector<16x32xf32>
    %252 = arith.addf %249, %251 : vector<16x32xf32>
    %c8 = arith.constant 8 : index
    %c0_86 = arith.constant 0 : index
    %253 = vector.load %arg14[%c8, %c0_86] : memref<10x32xf32, #tpu.memory_space<vmem>>, vector<1x32xf32>
    %c9 = arith.constant 9 : index
    %c0_87 = arith.constant 0 : index
    %254 = vector.load %arg14[%c9, %c0_87] : memref<10x32xf32, #tpu.memory_space<vmem>>, vector<1x32xf32>
    %255 = arith.addf %238, %252 : vector<16x32xf32>
    %cst_88 = arith.constant dense<0.000000e+00> : vector<16xf32>
    %256 = vector.multi_reduction <add>, %255, %cst_88 [1] : vector<16x32xf32> to vector<16xf32>
    %257 = vector.shape_cast %256 : vector<16xf32> to vector<16x1xf32>
    %cst_89 = arith.constant 3.200000e+01 : f32
    %258 = vector.broadcast %cst_89 : f32 to vector<16x1xf32>
    %259 = arith.divf %257, %258 : vector<16x1xf32>
    %260 = vector.broadcast %259 : vector<16x1xf32> to vector<16x32xf32>
    %261 = arith.subf %255, %260 : vector<16x32xf32>
    %262 = arith.mulf %261, %261 : vector<16x32xf32>
    %cst_90 = arith.constant dense<0.000000e+00> : vector<16xf32>
    %263 = vector.multi_reduction <add>, %262, %cst_90 [1] : vector<16x32xf32> to vector<16xf32>
    %264 = vector.shape_cast %263 : vector<16xf32> to vector<16x1xf32>
    %cst_91 = arith.constant 3.200000e+01 : f32
    %265 = vector.broadcast %cst_91 : f32 to vector<16x1xf32>
    %266 = arith.divf %264, %265 : vector<16x1xf32>
    %cst_92 = arith.constant 9.99999974E-6 : f32
    %267 = vector.broadcast %cst_92 : f32 to vector<16x1xf32>
    %268 = arith.addf %266, %267 : vector<16x1xf32>
    %269 = math.rsqrt %268 : vector<16x1xf32>
    %270 = vector.broadcast %269 : vector<16x1xf32> to vector<16x32xf32>
    %271 = arith.mulf %261, %270 : vector<16x32xf32>
    %272 = vector.broadcast %253 : vector<1x32xf32> to vector<16x32xf32>
    %273 = arith.mulf %271, %272 : vector<16x32xf32>
    %274 = vector.broadcast %254 : vector<1x32xf32> to vector<16x32xf32>
    %275 = arith.addf %273, %274 : vector<16x32xf32>
    %276 = vector.shape_cast %275 : vector<16x32xf32> to vector<2x8x32xf32>
    %277 = tpu.transpose %276, [1, 0, 2] : vector<2x8x32xf32> -> vector<8x2x32xf32>
    %c0_93 = arith.constant 0 : index
    %c0_94 = arith.constant 0 : index
    %c0_95 = arith.constant 0 : index
    %278 = vector.load %arg15[%c0_93, %c0_94, %c0_95] : memref<8x2x32xf32, #tpu.memory_space<vmem>>, vector<8x2x32xf32>
    tpu.vector_store %arg15[%c0_93, %c0_94, %c0_95], %277 {strides = array<i32>} : memref<8x2x32xf32, #tpu.memory_space<vmem>>, vector<8x2x32xf32>,
    return
  }
  func.func @transform_0(%arg0: i32) -> (i32, i32, i32) {
    %c0_i32 = arith.constant 0 : i32
    %c0_i32_0 = arith.constant 0 : i32
    %c0_i32_1 = arith.constant 0 : i32
    return %c0_i32, %arg0, %c0_i32_0 : i32, i32, i32
  }
  func.func @transform_1(%arg0: i32) -> (i32, i32, i32) {
    %c0_i32 = arith.constant 0 : i32
    %c0_i32_0 = arith.constant 0 : i32
    %c0_i32_1 = arith.constant 0 : i32
    return %c0_i32, %arg0, %c0_i32_0 : i32, i32, i32
  }
  func.func @transform_2(%arg0: i32) -> (i32, i32, i32) {
    %c0_i32 = arith.constant 0 : i32
    %c0_i32_0 = arith.constant 0 : i32
    %c0_i32_1 = arith.constant 0 : i32
    return %arg0, %c0_i32, %c0_i32_0 : i32, i32, i32
  }
  func.func @transform_3(%arg0: i32) -> (i32, i32) {
    %c0_i32 = arith.constant 0 : i32
    %c0_i32_0 = arith.constant 0 : i32
    %c0_i32_1 = arith.constant 0 : i32
    return %c0_i32, %c0_i32_0 : i32, i32
  }
  func.func @transform_4(%arg0: i32) -> (i32, i32) {
    %c0_i32 = arith.constant 0 : i32
    %c0_i32_0 = arith.constant 0 : i32
    %c0_i32_1 = arith.constant 0 : i32
    return %c0_i32, %c0_i32_0 : i32, i32
  }
  func.func @transform_5(%arg0: i32) -> (i32, i32) {
    %c0_i32 = arith.constant 0 : i32
    %c0_i32_0 = arith.constant 0 : i32
    %c0_i32_1 = arith.constant 0 : i32
    return %c0_i32, %c0_i32_0 : i32, i32
  }
  func.func @transform_6(%arg0: i32) -> (i32, i32) {
    %c0_i32 = arith.constant 0 : i32
    %c0_i32_0 = arith.constant 0 : i32
    %c0_i32_1 = arith.constant 0 : i32
    return %c0_i32, %c0_i32_0 : i32, i32
  }
  func.func @transform_7(%arg0: i32) -> (i32, i32) {
    %c0_i32 = arith.constant 0 : i32
    %c0_i32_0 = arith.constant 0 : i32
    %c0_i32_1 = arith.constant 0 : i32
    return %c0_i32, %c0_i32_0 : i32, i32
  }
  func.func @transform_8(%arg0: i32) -> (i32, i32) {
    %c0_i32 = arith.constant 0 : i32
    %c0_i32_0 = arith.constant 0 : i32
    %c0_i32_1 = arith.constant 0 : i32
    return %c0_i32, %c0_i32_0 : i32, i32
  }
  func.func @transform_9(%arg0: i32) -> (i32, i32) {
    %c0_i32 = arith.constant 0 : i32
    %c0_i32_0 = arith.constant 0 : i32
    %c0_i32_1 = arith.constant 0 : i32
    return %c0_i32, %c0_i32_0 : i32, i32
  }
  func.func @transform_10(%arg0: i32) -> (i32, i32) {
    %c0_i32 = arith.constant 0 : i32
    %c0_i32_0 = arith.constant 0 : i32
    %c0_i32_1 = arith.constant 0 : i32
    return %c0_i32, %c0_i32_0 : i32, i32
  }
  func.func @transform_11(%arg0: i32) -> (i32, i32) {
    %c0_i32 = arith.constant 0 : i32
    %c0_i32_0 = arith.constant 0 : i32
    %c0_i32_1 = arith.constant 0 : i32
    return %c0_i32, %c0_i32_0 : i32, i32
  }
  func.func @transform_12(%arg0: i32) -> (i32, i32) {
    %c0_i32 = arith.constant 0 : i32
    %c0_i32_0 = arith.constant 0 : i32
    %c0_i32_1 = arith.constant 0 : i32
    return %c0_i32, %c0_i32_0 : i32, i32
  }
  func.func @transform_13(%arg0: i32) -> (i32, i32) {
    %c0_i32 = arith.constant 0 : i32
    %c0_i32_0 = arith.constant 0 : i32
    %c0_i32_1 = arith.constant 0 : i32
    return %c0_i32, %c0_i32_0 : i32, i32
  }
  func.func @transform_14(%arg0: i32) -> (i32, i32, i32) {
    %c0_i32 = arith.constant 0 : i32
    %c0_i32_0 = arith.constant 0 : i32
    %c0_i32_1 = arith.constant 0 : i32
    return %c0_i32, %arg0, %c0_i32_0 : i32, i32, i32
  }
}

</mosaic_0001>

<bundles_post_ra>
// kernel: attention_layer_forward.1
= control target key start
LH: loop header
LB: loop body
LE: loop exit
PB: predicated region body
PF: predicated region fallthrough
CT: control target
= control target key end

     0   :  { %v6762_v1 = vmov 0.0   ;;  %vm6763_vm0 = vmmov 0   ;;  %v149_v10 = vlaneseq  ;;  %v6764_v28 = vmov 1966171168   ;;  %s8365_s0 = inlined_call_operand.vmem [shape: bf16[8,2,32], index: 0, kind: input, shape index: {}]   ;;  %s8366_s1 = inlined_call_operand.vmem [shape: bf16[8,2,32], index: 1, kind: input, shape index: {}]   ;;  %s8367_s2 = inlined_call_operand.vmem [shape: f32[2,1,8], index: 2, kind: input, shape index: {}]   ;;  %s8368_s3 = inlined_call_operand.vmem [shape: bf16[32,96], index: 3, kind: input, shape index: {}]   ;;  %s8369_s4 = inlined_call_operand.vmem [shape: f32[1,96], index: 4, kind: input, shape index: {}]   ;;  %s8370_s5 = inlined_call_operand.vmem [shape: bf16[32,32], index: 5, kind: input, shape index: {}]   ;;  %s8371_s6 = inlined_call_operand.vmem [shape: bf16[32,32], index: 6, kind: input, shape index: {}]   ;;  %s8372_s7 = inlined_call_operand.vmem [shape: bf16[32,64], index: 7, kind: input, shape index: {}]   ;;  %s8373_s8 = inlined_call_operand.vmem [shape: f32[1,64], index: 8, kind: input, shape index: {}]   ;;  %s8374_s9 = inlined_call_operand.vmem [shape: bf16[32,32], index: 9, kind: input, shape index: {}]   ;;  %s8375_s10 = inlined_call_operand.vmem [shape: bf16[32,2048], index: 10, kind: input, shape index: {}]   ;;  %s8376_s11 = inlined_call_operand.vmem [shape: f32[1,2048], index: 11, kind: input, shape index: {}]   ;;  %s8377_s12 = inlined_call_operand.vmem [shape: bf16[2048,32], index: 12, kind: input, shape index: {}]   ;;  %s8378_s13 = inlined_call_operand.vmem [shape: f32[10,32], index: 13, kind: input, shape index: {}]   ;;  %s8379_s14 = inlined_call_operand.hbm [shape: f32[8,2,32], index: 14, kind: output, shape index: {}]  }
   0x1   :  { %v6526_v0 = vld [vmem:[%s8368_s3 + $0x8] sm:$0xff]   ;;  %6237 = vmatprep.subr.bf16.mxu0 %v6762_v1  ;;  %v6527_v2 = vld [vmem:[%s8368_s3] sm:$0xff]   ;;  %6245 = vmatprep.subr.bf16.mxu1 %v6762_v1  ;;  %v147_v29 = vunpack.c.l.s4 %v6764_v28  ;;  %vm203_vm1 = vcmask 261120  }
   0x2   :  { %6238 = vmatpush3.bf16.msra.mxu0 %v6526_v0  ;;  %6241 = vmatprep.mubr.msk.bf16.mxu0 %vm6763_vm0, %v6762_v1  ;;  %v49_v3 = vld [vmem:[%s8365_s0] sm:$0x1]  ;;  %v50_v4 = vld [vmem:[%s8365_s0 + $0x1] sm:$0x1]  ;;  %v51_v5 = vld [vmem:[%s8365_s0 + $0x2] sm:$0x1] }
   0x3   :  { %6239 = vmatprep.subr.bf16.mxu0 %v6762_v1  ;;  %v52_v6 = vld [vmem:[%s8365_s0 + $0x3] sm:$0x1]  ;;  %v53_v7 = vld [vmem:[%s8365_s0 + $0x4] sm:$0x1]  ;;  %v54_v8 = vld [vmem:[%s8365_s0 + $0x5] sm:$0x1]  ;;  %v6893_v9 = vpack.i.b16 %v50_v4, %v49_v3  ;;  %6247 = vmatprep.mubr.msk.bf16.mxu1 %vm6763_vm0, %v6762_v1  ;;  %v148_v35 = vunpack.c.0.s8 %v147_v29 }
   0x4   :  { %v55_v11 = vld [vmem:[%s8365_s0 + $0x6] sm:$0x1]  ;;  %v56_v12 = vld [vmem:[%s8365_s0 + $0x7] sm:$0x1]  ;;  %v61_v13 = vshrl.u32 %v49_v3, 16  ;;  %v62_v14 = vshrl.u32 %v50_v4, 16  ;;  %v6903_v15 = vpack.i.b16 %v52_v6, %v51_v5  ;;  %v6905_v16 = vpack.i.b16 %v54_v8, %v53_v7 }
   0x5   :  { %v69_v17 = vshrl.u32 %v51_v5, 16  ;;  %v70_v18 = vshrl.u32 %v52_v6, 16  ;;  %v77_v19 = vshrl.u32 %v53_v7, 16  ;;  %v78_v20 = vshrl.u32 %v54_v8, 16 }
   0x6   :  { %6240 = vmatpush3.bf16.msra.mxu0 %v6527_v2  ;;  %v6907_v21 = vpack.i.b16 %v62_v14, %v61_v13  ;;  %v6909_v22 = vpack.i.b16 %v56_v12, %v55_v11  ;;  %v85_v23 = vshrl.u32 %v55_v11, 16  ;;  %v86_v24 = vshrl.u32 %v56_v12, 16 }
   0x7   :  { %v6911_v25 = vpack.i.b16 %v70_v18, %v69_v17  ;;  %v6913_v26 = vpack.i.b16 %v78_v20, %v77_v19  ;;  %6251 = vmatprep.subr.bf16.mxu0 %v6762_v1  ;;  %v6918_v30 = vshrl.u32 %v149_v10, 7  ;;  %v142_v31 = vcombine.low %v6893_v9, %v6903_v15 }
   0x8   :  { %v6916_v27 = vpack.i.b16 %v86_v24, %v85_v23  ;;  %v143_v32 = vcombine.low %v6905_v16, %v6909_v22 }
   0x9   :  { %v144_v33 = vcombine.low %v6907_v21, %v6911_v25  ;;  %v6929_v36 = vsub.s32 %v148_v35, %v6918_v30 }
   0xa   :  { %v145_v34 = vcombine.low %v6913_v26, %v6916_v27 }
   0xb   :  { %v152_v37 = vrot.slane %v142_v31, %v6929_v36  ;;  %v159_v38 = vrot.slane %v143_v32, %v6929_v36  ;;  %v166_v39 = vrot.slane %v144_v33, %v6929_v36 }
   0xc   :  { %v173_v40 = vrot.slane %v145_v34, %v6929_v36 }
   0xd   :  { %v174_v41 = vcombine.low %v152_v37, %v159_v38 }
   0xe   :  { %v175_v42 = vcombine.low %v166_v39, %v173_v40 }
   0xf   :  { %v182_v43 = vrot.slane %v174_v41, %v6929_v36 }
  0x10   :  { %v189_v44 = vrot.slane %v175_v42, %v6929_v36 }
  0x12   :  { %v190_v45 = vcombine.low %v182_v43, %v189_v44 }
  0x14   :  { %6242 = vmatmul.mubr.msk.bf16.vlgmr.msra.gmra.mxu0 %vm203_vm1, %v190_v45 }
  0x15   :  { %6253 = vmatprep.mubr.msk.bf16.mxu0 %vm6763_vm0, %v6762_v1 }
  0x16   :  { %19 = vsyncpa [#allocation3], 0  ;;  %v5741_v46 = vld [vmem:[%s8369_s4] ss:$0 sm:$0xff]  ;;  %s6765_s17 = smov 96   ;;  %vm256_vm2 = vcmask 64512  }
  0x17   :  { %s6766_s4 = smov 64   ;;  %s6767_s18 = smov 88   ;;  %vm380_vm3 = vcmask 1043456   ;;  %vm1158_vm4 = vcmask 130048   ;;  %vm1161_vm5 = vcmask 195584   ;;  %vm5716_vm6 = vcmask 254976  }
  0x18   :  { %s6768_s19 = smov 120   ;;  %s6769_s20 = smov 56  }
  0x19   :  { %s6770_s21 = smov 80   ;;  %s6771_s22 = smov 112  }
  0x1a   :  { %s6772_s3 = smov 48   ;;  %s6773_s23 = smov 72  }
  0x1b   :  { %s6774_s24 = smov 104   ;;  %s6775_s25 = smov 40  }
  0x1c   :  { %s6776_s26 = smov 8   ;;  %s8381_s27 = smov 16  }
  0x1d   :  { %s8380_s0 = smov 24  }
  0xd4   :  { %v241_v47 = vpop.f32.mrf.mxu0 }
  0xd5   :  { %v242_v48 = vadd.f32 %v5741_v46, %v241_v47 }
  0xd6   :  { %v6243_v49 = vpop.f32.mrf.mxu0 }
  0xd7   :  { %v6943_v50 = vpack.c.bf16 %v242_v48, %v242_v48 }
  0xd8   :  { %v244_v51 = vpop.f32.mrf.mxu0 }
  0xd9   :  { %v245_v52 = vadd.f32 %v5741_v46, %v244_v51  ;;  %254 = vrot.lane.b32.xlu0 %v6943_v50, %s6765_s17 }
  0xda   :  { %v6244_v53 = vpop.f32.mrf.mxu0 }
  0xdb   :  { %v6947_v54 = vpack.c.bf16 %v245_v52, %v245_v52 }
  0xdd   :  { %303 = vrot.lane.b32.xlu0 %v6947_v54, %s6765_s17 }
 0x14b   :  { %v255_v55 = vpop.permute.xlu0 %254 }
 0x14c   :  { %v261_v56 = vsel %vm256_vm2, %v255_v55, 0 }
 0x14d   :  { %6246 = vmatpush3.bf16.xpose.msra.mxu1 %v261_v56 }
 0x14e   :  { %6257 = vmatprep.subr.bf16.mxu1 %v6762_v1 }
 0x14f   :  { %v304_v57 = vpop.permute.xlu0 %303 }
 0x150   :  { %v309_v58 = vsel %vm256_vm2, %v304_v57, 0 }
 0x151   :  { %6252 = vmatpush3.bf16.xpose.msra.mxu0 %v309_v58 }
 0x152   :  { %6263 = vmatprep.subr.bf16.mxu0 %v6762_v1 }
 0x154   :  { %6248 = vmatmul.mubr.msk.bf16.vlgmr.msra.gmra.mxu1 %vm256_vm2, %v6943_v50 }
 0x155   :  { %6259 = vmatprep.mubr.msk.bf16.mxu1 %vm6763_vm0, %v6762_v1 }
 0x158   :  { %6254 = vmatmul.mubr.msk.bf16.vlgmr.msra.gmra.mxu0 %vm256_vm2, %v6947_v54 }
 0x159   :  { %6265 = vmatprep.mubr.msk.bf16.mxu0 %vm6763_vm0, %v6762_v1 }
 0x214   :  { %v297_v59 = vpop.f32.mrf.mxu1 }
 0x215   :  { %v351_v60 = vsel %vm256_vm2, %v297_v59, -inf }
 0x216   :  { %352 = vmax.xlane.f32.xlu1 %v351_v60  ;;  %v6249_v61 = vpop.f32.mrf.mxu1 }
 0x218   :  { %v300_v62 = vpop.f32.mrf.mxu1  ;;  %v345_v63 = vpop.f32.mrf.mxu0 }
 0x219   :  { %v354_v0 = vsel %vm256_vm2, %v345_v63, -inf }
 0x21a   :  { %v6250_v2 = vpop.f32.mrf.mxu1  ;;  %355 = vmax.xlane.f32.xlu1 %v354_v0  ;;  %v6255_v3 = vpop.f32.mrf.mxu0 }
 0x21c   :  { %v348_v4 = vpop.f32.mrf.mxu0 }
 0x21e   :  { %v6256_v5 = vpop.f32.mrf.mxu0 }
 0x22b   :  { %375 = vrot.lane.b32.xlu1 %v6943_v50, %s6766_s4 }
 0x22f   :  { %424 = vrot.lane.b32.xlu1 %v6947_v54, %s6766_s4 }
 0x233   :  { %474 = vrot.lane.b32.xlu1 %v6943_v50, %s6767_s18 }
 0x29f   :  { %v353_v6 = vpop.xlane.xlu1 %352 }
 0x2a0   :  { %v357_v7 = vsub.f32 %v297_v59, %v353_v6 }
 0x2a2   :  { %v359_v8 = vmul.f32 1.442695, %v357_v7 }
 0x2a3   :  { %v356_v10 = vpop.xlane.xlu1 %355 }
 0x2a4   :  { %6664 = vpow2.f32 %v359_v8  ;;  %v358_v11 = vsub.f32 %v345_v63, %v356_v10 }
 0x2a6   :  { %v361_v12 = vmul.f32 1.442695, %v358_v11 }
 0x2a7   :  { %v376_v13 = vpop.permute.xlu1 %375 }
 0x2a8   :  { %6666 = vpow2.f32 %v361_v12  ;;  %v382_v14 = vsel %vm380_vm3, %v376_v13, 0 }
 0x2a9   :  { %6258 = vmatpush3.bf16.msra.mxu1 %v382_v14 }
 0x2aa   :  { %6269 = vmatprep.subr.bf16.mxu1 %v6762_v1 }
 0x2ab   :  { %v425_v17 = vpop.permute.xlu1 %424 }
 0x2ac   :  { %v430_v18 = vsel %vm380_vm3, %v425_v17, 0 }
 0x2ad   :  { %6264 = vmatpush3.bf16.msra.mxu0 %v430_v18 }
 0x2ae   :  { %6275 = vmatprep.subr.bf16.mxu0 %v6762_v1 }
 0x2af   :  { %v475_v28 = vpop.permute.xlu1 %474 }
 0x2b0   :  { %v480_v37 = vsel %vm256_vm2, %v475_v28, 0 }
 0x2b1   :  { %v6665_v19 = vpop.eup %6664 }
 0x2b2   :  { %v363_v20 = vsel %vm256_vm2, %v6665_v19, 0.0 }
 0x2b3   :  { %364 = vadd.xlane.f32.xlu0 %v363_v20 }
 0x2b5   :  { %v6667_v23 = vpop.eup %6666 }
 0x2b6   :  { %v366_v24 = vsel %vm256_vm2, %v6667_v23, 0.0 }
 0x2b7   :  { %367 = vadd.xlane.f32.xlu1 %v366_v24 }
 0x2c8   :  { %524 = vrot.lane.b32.xlu1 %v6947_v54, %s6767_s18 }
 0x2c9   :  { %472 = vrot.lane.b32.xlu0 %v6943_v50, %s6768_s19 }
 0x2cc   :  { %522 = vrot.lane.b32.xlu1 %v6947_v54, %s6768_s19 }
 0x33c   :  { %v365_v29 = vpop.xlane.xlu0 %364 }
 0x33d   :  { %6668 = vrcp.f32 %v365_v29 }
 0x340   :  { %v368_v31 = vpop.xlane.xlu1 %367  ;;  %v473_v42 = vpop.permute.xlu0 %472 }
 0x341   :  { %6670 = vrcp.f32 %v368_v31 }
 0x344   :  { %v525_v39 = vpop.permute.xlu1 %524 }
 0x345   :  { %v530_v41 = vsel %vm256_vm2, %v525_v39, 0 }
 0x348   :  { %v523_v43 = vpop.permute.xlu1 %522 }
 0x34a   :  { %v6669_v32 = vpop.eup %6668 }
 0x34b   :  { %v371_v33 = vmul.f32 %v6669_v32, %v6665_v19 }
 0x34d   :  { %v373_v34 = vpack.c.bf16 %v371_v33, %v371_v33 }
 0x34e   :  { %v6671_v35 = vpop.eup %6670 }
 0x34f   :  { %6260 = vmatmul.mubr.msk.bf16.vlgmr.msra.gmra.mxu1 %vm256_vm2, %v373_v34  ;;  %v372_v38 = vmul.f32 %v6671_v35, %v6667_v23 }
 0x350   :  { %6270 = vmatpush3.bf16.xpose.msra.mxu1 %v480_v37  ;;  %6271 = vmatprep.mubr.msk.bf16.mxu1 %vm6763_vm0, %v6762_v1 }
 0x351   :  { %v374_v40 = vpack.c.bf16 %v372_v38, %v372_v38  ;;  %6281 = vmatprep.subr.bf16.mxu1 %v6762_v1 }
 0x353   :  { %6266 = vmatmul.mubr.msk.bf16.vlgmr.msra.gmra.mxu0 %vm256_vm2, %v374_v40 }
 0x354   :  { %6276 = vmatpush3.bf16.xpose.msra.mxu0 %v530_v41  ;;  %6277 = vmatprep.mubr.msk.bf16.mxu0 %vm6763_vm0, %v6762_v1 }
 0x355   :  { %6287 = vmatprep.subr.bf16.mxu0 %v6762_v1 }
 0x357   :  { %6272 = vmatmul.mubr.msk.bf16.vlgmr.msra.gmra.mxu1 %vm256_vm2, %v473_v42 }
 0x358   :  { %6283 = vmatprep.mubr.msk.bf16.mxu1 %vm6763_vm0, %v6762_v1 }
 0x35b   :  { %6278 = vmatmul.mubr.msk.bf16.vlgmr.msra.gmra.mxu0 %vm256_vm2, %v523_v43 }
 0x35c   :  { %6289 = vmatprep.mubr.msk.bf16.mxu0 %vm6763_vm0, %v6762_v1 }
 0x40f   :  { %v6997_v44 = vpop.f32.mrf.mxu1 }
 0x411   :  { %v6261_v45 = vpop.f32.mrf.mxu1 }
 0x413   :  { %v421_v46 = vpop.f32.mrf.mxu1  ;;  %v6999_v47 = vpop.f32.mrf.mxu0 }
 0x415   :  { %v6262_v48 = vpop.f32.mrf.mxu1  ;;  %v6267_v49 = vpop.f32.mrf.mxu0 }
 0x417   :  { %v469_v51 = vpop.f32.mrf.mxu0  ;;  %v516_v52 = vpop.f32.mrf.mxu1 }
 0x418   :  { %v572_v53 = vsel %vm256_vm2, %v516_v52, -inf }
 0x419   :  { %573 = vmax.xlane.f32.xlu1 %v572_v53  ;;  %v6268_v55 = vpop.f32.mrf.mxu0  ;;  %v6273_v56 = vpop.f32.mrf.mxu1 }
 0x41b   :  { %v519_v57 = vpop.f32.mrf.mxu1  ;;  %v566_v58 = vpop.f32.mrf.mxu0 }
 0x41c   :  { %v575_v59 = vsel %vm256_vm2, %v566_v58, -inf }
 0x41d   :  { %v6274_v60 = vpop.f32.mrf.mxu1  ;;  %576 = vmax.xlane.f32.xlu0 %v575_v59  ;;  %v6279_v61 = vpop.f32.mrf.mxu0 }
 0x41f   :  { %v569_v62 = vpop.f32.mrf.mxu0 }
 0x421   :  { %v6280_v63 = vpop.f32.mrf.mxu0 }
 0x42a   :  { %596 = vrot.lane.b32.xlu1 %v6943_v50, %s6769_s20 }
 0x42e   :  { %694 = vrot.lane.b32.xlu1 %v6943_v50, %s6770_s21 }
 0x433   :  { %644 = vrot.lane.b32.xlu0 %v6947_v54, %s6769_s20 }
 0x437   :  { %692 = vrot.lane.b32.xlu0 %v6943_v50, %s6771_s22 }
 0x4a2   :  { %v574_v0 = vpop.xlane.xlu1 %573 }
 0x4a3   :  { %v578_v2 = vsub.f32 %v516_v52, %v574_v0 }
 0x4a5   :  { %v580_v3 = vmul.f32 1.442695, %v578_v2 }
 0x4a6   :  { %v597_v4 = vpop.permute.xlu1 %596  ;;  %v577_v5 = vpop.xlane.xlu0 %576 }
 0x4a7   :  { %6672 = vpow2.f32 %v580_v3  ;;  %v602_v6 = vsel %vm380_vm3, %v597_v4, 0  ;;  %v579_v7 = vsub.f32 %v566_v58, %v577_v5 }
 0x4a8   :  { %6282 = vmatpush3.bf16.msra.mxu1 %v602_v6 }
 0x4a9   :  { %v582_v8 = vmul.f32 1.442695, %v579_v7  ;;  %6293 = vmatprep.subr.bf16.mxu1 %v6762_v1 }
 0x4aa   :  { %v645_v10 = vpop.permute.xlu0 %644  ;;  %v695_v18 = vpop.permute.xlu1 %694 }
 0x4ab   :  { %6674 = vpow2.f32 %v582_v8  ;;  %v650_v11 = vsel %vm380_vm3, %v645_v10, 0  ;;  %v700_v31 = vsel %vm256_vm2, %v695_v18, 0 }
 0x4ac   :  { %6288 = vmatpush3.bf16.msra.mxu0 %v650_v11 }
 0x4ad   :  { %6299 = vmatprep.subr.bf16.mxu0 %v6762_v1 }
 0x4ae   :  { %v693_v37 = vpop.permute.xlu0 %692 }
 0x4b4   :  { %v6673_v12 = vpop.eup %6672 }
 0x4b5   :  { %v584_v13 = vsel %vm256_vm2, %v6673_v12, 0.0 }
 0x4b6   :  { %585 = vadd.xlane.f32.xlu1 %v584_v13 }
 0x4b8   :  { %v6675_v14 = vpop.eup %6674 }
 0x4b9   :  { %v587_v17 = vsel %vm256_vm2, %v6675_v14, 0.0 }
 0x4ba   :  { %588 = vadd.xlane.f32.xlu1 %v587_v17 }
 0x4cb   :  { %744 = vrot.lane.b32.xlu1 %v6947_v54, %s6770_s21 }
 0x4cf   :  { %742 = vrot.lane.b32.xlu1 %v6947_v54, %s6771_s22 }
 0x53f   :  { %v586_v19 = vpop.xlane.xlu1 %585 }
 0x540   :  { %6676 = vrcp.f32 %v586_v19 }
 0x543   :  { %v589_v20 = vpop.xlane.xlu1 %588 }
 0x544   :  { %6678 = vrcp.f32 %v589_v20 }
 0x547   :  { %v745_v33 = vpop.permute.xlu1 %744 }
 0x548   :  { %v750_v35 = vsel %vm256_vm2, %v745_v33, 0 }
 0x54b   :  { %v743_v38 = vpop.permute.xlu1 %742 }
 0x54d   :  { %v6677_v23 = vpop.eup %6676 }
 0x54e   :  { %v592_v24 = vmul.f32 %v6677_v23, %v6673_v12 }
 0x550   :  { %v594_v28 = vpack.c.bf16 %v592_v24, %v592_v24 }
 0x551   :  { %v6679_v29 = vpop.eup %6678 }
 0x552   :  { %6284 = vmatmul.mubr.msk.bf16.vlgmr.msra.gmra.mxu1 %vm256_vm2, %v594_v28  ;;  %v593_v32 = vmul.f32 %v6679_v29, %v6675_v14 }
 0x553   :  { %6294 = vmatpush3.bf16.xpose.msra.mxu1 %v700_v31  ;;  %6295 = vmatprep.mubr.msk.bf16.mxu1 %vm6763_vm0, %v6762_v1 }
 0x554   :  { %v595_v34 = vpack.c.bf16 %v593_v32, %v593_v32  ;;  %6305 = vmatprep.subr.bf16.mxu1 %v6762_v1 }
 0x556   :  { %6290 = vmatmul.mubr.msk.bf16.vlgmr.msra.gmra.mxu0 %vm256_vm2, %v595_v34 }
 0x557   :  { %6300 = vmatpush3.bf16.xpose.msra.mxu0 %v750_v35  ;;  %6301 = vmatprep.mubr.msk.bf16.mxu0 %vm6763_vm0, %v6762_v1 }
 0x558   :  { %6311 = vmatprep.subr.bf16.mxu0 %v6762_v1 }
 0x55a   :  { %6296 = vmatmul.mubr.msk.bf16.vlgmr.msra.gmra.mxu1 %vm256_vm2, %v693_v37 }
 0x55b   :  { %6307 = vmatprep.mubr.msk.bf16.mxu1 %vm6763_vm0, %v6762_v1 }
 0x55e   :  { %6302 = vmatmul.mubr.msk.bf16.vlgmr.msra.gmra.mxu0 %vm256_vm2, %v743_v38 }
 0x55f   :  { %6313 = vmatprep.mubr.msk.bf16.mxu0 %vm6763_vm0, %v6762_v1 }
 0x612   :  { %v7035_v39 = vpop.f32.mrf.mxu1 }
 0x614   :  { %v6285_v40 = vpop.f32.mrf.mxu1 }
 0x616   :  { %v641_v41 = vpop.f32.mrf.mxu1  ;;  %v7037_v42 = vpop.f32.mrf.mxu0 }
 0x617   :  { %v6496_v43 = vpack.i.bf16 %v7037_v42, %v7035_v39 }
 0x618   :  { %v6286_v45 = vpop.f32.mrf.mxu1  ;;  %v6291_v46 = vpop.f32.mrf.mxu0 }
 0x61a   :  { %v689_v48 = vpop.f32.mrf.mxu0  ;;  %v736_v49 = vpop.f32.mrf.mxu1 }
 0x61b   :  { %v792_v51 = vsel %vm256_vm2, %v736_v49, -inf }
 0x61c   :  { %793 = vmax.xlane.f32.xlu0 %v792_v51  ;;  %v6292_v52 = vpop.f32.mrf.mxu0  ;;  %v6297_v53 = vpop.f32.mrf.mxu1 }
 0x61e   :  { %v739_v55 = vpop.f32.mrf.mxu1  ;;  %v786_v56 = vpop.f32.mrf.mxu0 }
 0x61f   :  { %v795_v57 = vsel %vm256_vm2, %v786_v56, -inf }
 0x620   :  { %v6298_v58 = vpop.f32.mrf.mxu1  ;;  %796 = vmax.xlane.f32.xlu1 %v795_v57  ;;  %v6303_v59 = vpop.f32.mrf.mxu0 }
 0x622   :  { %v789_v60 = vpop.f32.mrf.mxu0 }
 0x624   :  { %v6304_v61 = vpop.f32.mrf.mxu0 }
 0x631   :  { %816 = vrot.lane.b32.xlu1 %v6943_v50, %s6772_s3 }
 0x635   :  { %914 = vrot.lane.b32.xlu1 %v6943_v50, %s6773_s23 }
 0x639   :  { %964 = vrot.lane.b32.xlu1 %v6947_v54, %s6773_s23 }
 0x63d   :  { %962 = vrot.lane.b32.xlu1 %v6947_v54, %s6774_s24 }
 0x6a5   :  { %v794_v62 = vpop.xlane.xlu0 %793 }
 0x6a6   :  { %v798_v63 = vsub.f32 %v736_v49, %v794_v62 }
 0x6a8   :  { %v800_v0 = vmul.f32 1.442695, %v798_v63 }
 0x6a9   :  { %v797_v2 = vpop.xlane.xlu1 %796 }
 0x6aa   :  { %6680 = vpow2.f32 %v800_v0  ;;  %v799_v3 = vsub.f32 %v786_v56, %v797_v2 }
 0x6ac   :  { %v802_v4 = vmul.f32 1.442695, %v799_v3 }
 0x6ad   :  { %v817_v5 = vpop.permute.xlu1 %816 }
 0x6ae   :  { %6682 = vpow2.f32 %v802_v4  ;;  %v822_v6 = vsel %vm380_vm3, %v817_v5, 0 }
 0x6af   :  { %6306 = vmatpush3.bf16.msra.mxu1 %v822_v6 }
 0x6b0   :  { %6317 = vmatprep.subr.bf16.mxu1 %v6762_v1 }
 0x6b1   :  { %v915_v19 = vpop.permute.xlu1 %914 }
 0x6b2   :  { %v920_v28 = vsel %vm256_vm2, %v915_v19, 0 }
 0x6b5   :  { %v965_v31 = vpop.permute.xlu1 %964 }
 0x6b6   :  { %v970_v33 = vsel %vm256_vm2, %v965_v31, 0 }
 0x6b7   :  { %v6681_v7 = vpop.eup %6680 }
 0x6b8   :  { %v804_v8 = vsel %vm256_vm2, %v6681_v7, 0.0 }
 0x6b9   :  { %805 = vadd.xlane.f32.xlu0 %v804_v8  ;;  %v963_v35 = vpop.permute.xlu1 %962 }
 0x6bb   :  { %v6683_v10 = vpop.eup %6682 }
 0x6bc   :  { %v807_v11 = vsel %vm256_vm2, %v6683_v10, 0.0 }
 0x6bd   :  { %808 = vadd.xlane.f32.xlu0 %v807_v11 }
 0x6d3   :  { %864 = vrot.lane.b32.xlu0 %v6947_v54, %s6772_s3 }
 0x6d7   :  { %912 = vrot.lane.b32.xlu0 %v6943_v50, %s6774_s24 }
 0x742   :  { %v806_v12 = vpop.xlane.xlu0 %805 }
 0x743   :  { %6684 = vrcp.f32 %v806_v12 }
 0x746   :  { %v809_v13 = vpop.xlane.xlu0 %808 }
 0x747   :  { %6686 = vrcp.f32 %v809_v13 }
 0x74a   :  { %v865_v14 = vpop.permute.xlu0 %864 }
 0x74b   :  { %v870_v17 = vsel %vm380_vm3, %v865_v14, 0 }
 0x74c   :  { %6312 = vmatpush3.bf16.msra.mxu0 %v870_v17 }
 0x74d   :  { %6323 = vmatprep.subr.bf16.mxu0 %v6762_v1 }
 0x74e   :  { %v913_v34 = vpop.permute.xlu0 %912 }
 0x750   :  { %v6685_v18 = vpop.eup %6684 }
 0x751   :  { %v812_v20 = vmul.f32 %v6685_v18, %v6681_v7 }
 0x753   :  { %v814_v23 = vpack.c.bf16 %v812_v20, %v812_v20  ;;  %v6528_v20 = vld [vmem:[%s8370_s5 + $0x8] sm:$0xff]  }
 0x754   :  { %v6687_v24 = vpop.eup %6686 }
 0x755   :  { %6308 = vmatmul.mubr.msk.bf16.vlgmr.msra.gmra.mxu1 %vm256_vm2, %v814_v23  ;;  %v813_v29 = vmul.f32 %v6687_v24, %v6683_v10  ;;  %v6529_v23 = vld [vmem:[%s8370_s5] sm:$0xff]  }
 0x756   :  { %6318 = vmatpush3.bf16.xpose.msra.mxu1 %v920_v28  ;;  %6319 = vmatprep.mubr.msk.bf16.mxu1 %vm6763_vm0, %v6762_v1 }
 0x757   :  { %v815_v32 = vpack.c.bf16 %v813_v29, %v813_v29  ;;  %6329 = vmatprep.subr.bf16.mxu1 %v6762_v1 }
 0x759   :  { %6314 = vmatmul.mubr.msk.bf16.vlgmr.msra.gmra.mxu0 %vm256_vm2, %v815_v32 }
 0x75a   :  { %6324 = vmatpush3.bf16.xpose.msra.mxu0 %v970_v33  ;;  %6325 = vmatprep.mubr.msk.bf16.mxu0 %vm6763_vm0, %v6762_v1 }
 0x75b   :  { %6335 = vmatprep.subr.bf16.mxu0 %v6762_v1 }
 0x75d   :  { %6320 = vmatmul.mubr.msk.bf16.vlgmr.msra.gmra.mxu1 %vm256_vm2, %v913_v34 }
 0x75e   :  { %6331 = vmatprep.mubr.msk.bf16.mxu1 %vm6763_vm0, %v6762_v1 }
 0x761   :  { %6326 = vmatmul.mubr.msk.bf16.vlgmr.msra.gmra.mxu0 %vm256_vm2, %v963_v35 }
 0x762   :  { %6337 = vmatprep.mubr.msk.bf16.mxu0 %vm6763_vm0, %v6762_v1 }
 0x815   :  { %v858_v37 = vpop.f32.mrf.mxu1 }
 0x817   :  { %v6309_v38 = vpop.f32.mrf.mxu1 }
 0x819   :  { %v861_v40 = vpop.f32.mrf.mxu1  ;;  %v906_v41 = vpop.f32.mrf.mxu0 }
 0x81a   :  { %v6501_v62 = vpack.i.bf16 %v906_v41, %v858_v37 }
 0x81b   :  { %v6310_v45 = vpop.f32.mrf.mxu1  ;;  %v6315_v46 = vpop.f32.mrf.mxu0 }
 0x81d   :  { %v909_v48 = vpop.f32.mrf.mxu0  ;;  %v956_v49 = vpop.f32.mrf.mxu1 }
 0x81e   :  { %v1012_v51 = vsel %vm256_vm2, %v956_v49, -inf }
 0x81f   :  { %1013 = vmax.xlane.f32.xlu0 %v1012_v51  ;;  %v6316_v52 = vpop.f32.mrf.mxu0  ;;  %v6321_v53 = vpop.f32.mrf.mxu1 }
 0x821   :  { %v959_v55 = vpop.f32.mrf.mxu1  ;;  %v1006_v56 = vpop.f32.mrf.mxu0 }
 0x822   :  { %v1015_v57 = vsel %vm256_vm2, %v1006_v56, -inf }
 0x823   :  { %v6322_v58 = vpop.f32.mrf.mxu1  ;;  %1016 = vmax.xlane.f32.xlu1 %v1015_v57  ;;  %v6327_v59 = vpop.f32.mrf.mxu0 }
 0x825   :  { %v1009_v60 = vpop.f32.mrf.mxu0 }
 0x827   :  { %v6328_v61 = vpop.f32.mrf.mxu0 }
 0x834   :  { %1036 = vrot.lane.b32.xlu1 %v6943_v50, %s6775_s25 }
 0x838   :  { %6497 = vrot.lane.b32.xlu1 %v6496_v43, %s6776_s26 }
 0x83c   :  { %6502 = vrot.lane.b32.xlu1 %v6501_v62, %s8381_s27 }
 0x8a8   :  { %v1014_v63 = vpop.xlane.xlu0 %1013 }
 0x8a9   :  { %v1018_v0 = vsub.f32 %v956_v49, %v1014_v63 }
 0x8ab   :  { %v1020_v2 = vmul.f32 1.442695, %v1018_v0 }
 0x8ac   :  { %v1017_v3 = vpop.xlane.xlu1 %1016 }
 0x8ad   :  { %6688 = vpow2.f32 %v1020_v2  ;;  %v1019_v4 = vsub.f32 %v1006_v56, %v1017_v3 }
 0x8af   :  { %v1022_v5 = vmul.f32 1.442695, %v1019_v4  ;;  %v123_v4 = vunpack.c.l.bf16 %v6893_v9 }
 0x8b0   :  { %v1037_v6 = vpop.permute.xlu1 %1036 }
 0x8b1   :  { %6690 = vpow2.f32 %v1022_v5  ;;  %v1042_v50 = vsel %vm380_vm3, %v1037_v6, 0  ;;  %v124_v5 = vunpack.c.l.bf16 %v6903_v15  ;;  %v128_v15 = vunpack.c.l.bf16 %v6911_v25 }
 0x8b2   :  { %6330 = vmatpush3.bf16.msra.mxu1 %v1042_v50 }
 0x8b3   :  { %6341 = vmatprep.subr.bf16.mxu1 %v6762_v1 }
 0x8b4   :  { %v6498_v38 = vpop.permute.xlu1 %6497 }
 0x8b5   :  { %v6500_v41 = vunpack.i.h.bf16 %v6498_v38  ;;  %v6499_v45 = vunpack.i.l.bf16 %v6498_v38 }
 0x8b7   :  { %v1157_v51 = vsel %vm256_vm2, %v6999_v47, %v6500_v41  ;;  %v1156_v52 = vsel %vm256_vm2, %v6997_v44, %v6499_v45  ;;  %v6779_v47 = vmov 1983009808   ;;  %v5763_v44 = vld [vmem:[%s8378_s13] ss:$0 sm:$0xff] }
 0x8b8   :  { %v6503_v40 = vpop.permute.xlu1 %6502  ;;  %v1236_v61 = vunpack.c.l.s4 %v6779_v47 }
 0x8b9   :  { %v6505_v46 = vunpack.i.h.bf16 %v6503_v40  ;;  %v6504_v48 = vunpack.i.l.bf16 %v6503_v40 }
 0x8ba   :  { %v6689_v39 = vpop.eup %6688  ;;  %v1237_v62 = vunpack.c.0.s8 %v1236_v61 }
 0x8bb   :  { %v1024_v42 = vsel %vm256_vm2, %v6689_v39, 0.0  ;;  %v1159_v56 = vsel %vm1158_vm4, %v1156_v52, %v6504_v48  ;;  %v1160_v57 = vsel %vm1158_vm4, %v1157_v51, %v6505_v46  ;;  %v6780_v46 = vmov 269488144  }
 0x8bc   :  { %1025 = vadd.xlane.f32.xlu0 %v1024_v42  ;;  %v7120_v63 = vsub.s32 %v1237_v62, %v6918_v30  ;;  %v1340_v48 = vunpack.c.l.s4 %v6780_v46  ;;  %v6782_v52 = vmov 1414812756   ;;  %v91_v46 = vld [vmem:[%s8366_s1 + $0x2] sm:$0x1] }
 0x8be   :  { %v6691_v43 = vpop.eup %6690 }
 0x8bf   :  { %v1027_v7 = vsel %vm256_vm2, %v6691_v43, 0.0 }
 0x8c0   :  { %1028 = vadd.xlane.f32.xlu0 %v1027_v7 }
 0x8d6   :  { %1084 = vrot.lane.b32.xlu0 %v6947_v54, %s6775_s25 }
 0x945   :  { %v1026_v8 = vpop.xlane.xlu0 %1025 }
 0x946   :  { %6692 = vrcp.f32 %v1026_v8 }
 0x949   :  { %v1029_v10 = vpop.xlane.xlu0 %1028 }
 0x94a   :  { %6694 = vrcp.f32 %v1029_v10  ;;  %v126_v10 = vunpack.c.l.bf16 %v6909_v22 }
 0x94d   :  { %v1085_v11 = vpop.permute.xlu0 %1084 }
 0x94e   :  { %v1090_v12 = vsel %vm380_vm3, %v1085_v11, 0  ;;  %v127_v11 = vunpack.c.l.bf16 %v6907_v21 }
 0x94f   :  { %6336 = vmatpush3.bf16.msra.mxu0 %v1090_v12 }
 0x950   :  { %6349 = vmatprep.subr.bf16.mxu0 %v6762_v1 }
 0x953   :  { %v6693_v13 = vpop.eup %6692 }
 0x954   :  { %v1032_v14 = vmul.f32 %v6693_v13, %v6689_v39  ;;  %v125_v39 = vunpack.c.l.bf16 %v6905_v16 }
 0x956   :  { %v1034_v17 = vpack.c.bf16 %v1032_v14, %v1032_v14 }
 0x957   :  { %v6695_v18 = vpop.eup %6694 }
 0x958   :  { %6332 = vmatmul.mubr.msk.bf16.vlgmr.msra.gmra.mxu1 %vm256_vm2, %v1034_v17  ;;  %v1033_v19 = vmul.f32 %v6695_v18, %v6691_v43  ;;  %v129_v18 = vunpack.c.l.bf16 %v6913_v26 }
 0x959   :  { %6345 = vmatprep.mubr.msk.bf16.mxu1 %vm6763_vm0, %v6762_v1  ;;  %6342 = vmatpush3.bf16.msra.mxu1 %v6528_v20 }
 0x95a   :  { %v1035_v54 = vpack.c.bf16 %v1033_v19, %v1033_v19  ;;  %6343 = vmatprep.subr.bf16.mxu1 %v6762_v1  ;;  %v130_v19 = vunpack.c.l.bf16 %v6916_v27 }
 0x95c   :  { %6338 = vmatmul.mubr.msk.bf16.vlgmr.msra.gmra.mxu0 %vm256_vm2, %v1035_v54 }
 0x95d   :  { %6353 = vmatprep.mubr.msk.bf16.mxu0 %vm6763_vm0, %v6762_v1  ;;  %6344 = vmatpush3.bf16.msra.mxu1 %v6529_v23 }
 0x95e   :  { %6357 = vmatprep.subr.bf16.mxu1 %v6762_v1 }
 0xa18   :  { %v1078_v24 = vpop.f32.mrf.mxu1 }
 0xa1a   :  { %v6333_v28 = vpop.f32.mrf.mxu1 }
 0xa1c   :  { %v1081_v29 = vpop.f32.mrf.mxu1  ;;  %v1126_v31 = vpop.f32.mrf.mxu0 }
 0xa1d   :  { %v6506_v32 = vpack.i.bf16 %v1126_v31, %v1078_v24 }
 0xa1e   :  { %v6334_v33 = vpop.f32.mrf.mxu1  ;;  %v6339_v34 = vpop.f32.mrf.mxu0 }
 0xa1f   :  { %6507 = vrot.lane.b32.xlu0 %v6506_v32, %s8380_s0 }
 0xa20   :  { %v1129_v35 = vpop.f32.mrf.mxu0 }
 0xa22   :  { %v6340_v37 = vpop.f32.mrf.mxu0 }
 0xa91   :  { %v6508_v49 = vpop.permute.xlu0 %6507 }
 0xa92   :  { %v6510_v53 = vunpack.i.h.bf16 %v6508_v49  ;;  %v6509_v55 = vunpack.i.l.bf16 %v6508_v49  ;;  %v6781_v49 = vmov 842150450  }
 0xa93   :  { %v1347_v51 = vunpack.c.l.s4 %v6781_v49  ;;  %v93_v49 = vld [vmem:[%s8366_s1 + $0x4] sm:$0x1] }
 0xa94   :  { %v1163_v58 = vsel %vm1161_vm5, %v1160_v57, %v6510_v53  ;;  %v1162_v59 = vsel %vm1161_vm5, %v1159_v56, %v6509_v55  ;;  %v1354_v53 = vunpack.c.l.s4 %v6782_v52  ;;  %v6783_v55 = vmov 1987475062   ;;  %v95_v52 = vld [vmem:[%s8366_s1 + $0x6] sm:$0x1] }
 0xa95   :  { %v1164_v60 = vpack.c.bf16 %v1163_v58, %v1162_v59  ;;  %v1361_v56 = vunpack.c.l.s4 %v6783_v55  ;;  %v1341_v57 = vunpack.c.0.s8 %v1340_v48  ;;  %v1348_v58 = vunpack.c.0.s8 %v1347_v51  ;;  %v92_v48 = vld [vmem:[%s8366_s1 + $0x3] sm:$0x1]  ;;  %v94_v51 = vld [vmem:[%s8366_s1 + $0x5] sm:$0x1] }
 0xa96   :  { %v1355_v59 = vunpack.c.0.s8 %v1354_v53  ;;  %v105_v55 = vpack.i.b16 %v92_v48, %v91_v46 }
 0xa97   :  { %6346 = vmatmul.mubr.msk.bf16.vlgmr.msra.gmra.mxu1 %vm203_vm1, %v1164_v60  ;;  %v1362_v60 = vunpack.c.0.s8 %v1361_v56  ;;  %v7141_v47 = vsub.s32 %v1341_v57, %v6918_v30  ;;  %v7144_v61 = vsub.s32 %v1348_v58, %v6918_v30  ;;  %v96_v56 = vld [vmem:[%s8366_s1 + $0x7] sm:$0x1] }
 0xa98   :  { %6361 = vmatprep.mubr.msk.bf16.mxu1 %vm6763_vm0, %v6762_v1  ;;  %v7147_v62 = vsub.s32 %v1355_v59, %v6918_v30  ;;  %v106_v59 = vshrl.u32 %v91_v46, 16 }
 0xb57   :  { %v1223_v0 = vpop.f32.mrf.mxu1 }
 0xb58   :  { %v1224_v2 = vadd.f32 %v5763_v44, %v1223_v0 }
 0xb59   :  { %v6347_v3 = vpop.f32.mrf.mxu1 }
 0xb5a   :  { %v1234_v6 = vcombine.high %v1224_v2, %v1224_v2  ;;  %v1241_v50 = vrot.slane %v1224_v2, %v7120_v63 }
 0xb5b   :  { %v1226_v42 = vpop.f32.mrf.mxu1 }
 0xb5c   :  { %v1248_v43 = vrot.slane %v1234_v6, %v7120_v63  ;;  %v1249_v7 = vcombine.high %v1241_v50, %v1241_v50  ;;  %v1227_v8 = vadd.f32 %v5763_v44, %v1226_v42  ;;  %v1276_v14 = vadd.f32 %v1241_v50, %v123_v4 }
 0xb5d   :  { %v6348_v12 = vpop.f32.mrf.mxu1  ;;  %v7150_v44 = vsub.s32 %v1362_v60, %v6918_v30  ;;  %v107_v60 = vshrl.u32 %v92_v48, 16 }
 0xb5e   :  { %v1250_v13 = vcombine.high %v1248_v43, %v1248_v43  ;;  %v1277_v9 = vadd.f32 %v1249_v7, %v124_v5  ;;  %v1251_v17 = vcombine.high %v1227_v8, %v1227_v8  ;;  %v1258_v16 = vrot.slane %v1227_v8, %v7120_v63 }
 0xb5f   :  { %v1278_v54 = vadd.f32 %v1248_v43, %v125_v39 }
 0xb60   :  { %v1265_v20 = vrot.slane %v1251_v17, %v7120_v63  ;;  %v1279_v23 = vadd.f32 %v1250_v13, %v126_v10  ;;  %v1292_v22 = vcombine.low %v1276_v14, %v1277_v9  ;;  %v1266_v24 = vcombine.high %v1258_v16, %v1258_v16 }
 0xb61   :  { %v1280_v29 = vadd.f32 %v1258_v16, %v127_v11 }
 0xb62   :  { %v1267_v21 = vcombine.high %v1265_v20, %v1265_v20  ;;  %v1293_v28 = vcombine.low %v1278_v54, %v1279_v23  ;;  %v1281_v31 = vadd.f32 %v1266_v24, %v128_v15  ;;  %v1282_v32 = vadd.f32 %v1265_v20, %v129_v18 }
 0xb63   :  { %v1300_v33 = vrot.slane %v1292_v22, %v7120_v63 }
 0xb64   :  { %v1307_v25 = vrot.slane %v1293_v28, %v7120_v63  ;;  %v1283_v26 = vadd.f32 %v1267_v21, %v130_v19  ;;  %v1309_v34 = vcombine.low %v1280_v29, %v1281_v31 }
 0xb66   :  { %v1308_v35 = vcombine.low %v1300_v33, %v1307_v25  ;;  %v1310_v37 = vcombine.low %v1282_v32, %v1283_v26  ;;  %v1317_v38 = vrot.slane %v1309_v34, %v7120_v63 }
 0xb68   :  { %v1328_v27 = vsel %vm203_vm1, %v1308_v35, 0.0  ;;  %v1324_v40 = vrot.slane %v1310_v37, %v7120_v63 }
 0xb69   :  { %1329 = vadd.xlane.f32.xlu1 %v1328_v27 }
 0xb6a   :  { %v1325_v41 = vcombine.low %v1317_v38, %v1324_v40  ;;  %v6530_v38 = vld [vmem:[%s8372_s7 + $0x8] sm:$0xff]   ;;  %v6531_v40 = vld [vmem:[%s8372_s7] sm:$0xff]  }
 0xb6b   :  { %6358 = vmatpush3.bf16.msra.mxu1 %v6530_v38 }
 0xb6c   :  { %v1331_v45 = vsel %vm203_vm1, %v1325_v41, 0.0  ;;  %v89_v41 = vld [vmem:[%s8366_s1] sm:$0x1]  ;;  %6359 = vmatprep.subr.bf16.mxu1 %v6762_v1 }
 0xb6d   :  { %1332 = vadd.xlane.f32.xlu0 %v1331_v45  ;;  %v90_v45 = vld [vmem:[%s8366_s1 + $0x1] sm:$0x1]  ;;  %v100_v57 = vshrl.u32 %v89_v41, 16 }
 0xb6e   :  { %v99_v53 = vpack.i.b16 %v90_v45, %v89_v41  ;;  %v101_v58 = vshrl.u32 %v90_v45, 16 }
 0xb6f   :  { %6360 = vmatpush3.bf16.msra.mxu1 %v6531_v40 }
 0xb70   :  { %6371 = vmatprep.subr.bf16.mxu1 %v6762_v1 }
 0xbf2   :  { %v1330_v0 = vpop.xlane.xlu1 %1329 }
 0xbf3   :  { %v1335_v2 = vmul.f32 0.03125, %v1330_v0  ;;  %v111_v0 = vpack.i.b16 %v94_v51, %v93_v49 }
 0xbf5   :  { %v1345_v3 = vrot.slane %v1335_v2, %v7141_v47  ;;  %v1352_v4 = vrot.slane %v1335_v2, %v7144_v61  ;;  %v1359_v5 = vrot.slane %v1335_v2, %v7147_v62  ;;  %v1366_v6 = vrot.slane %v1335_v2, %v7150_v44 }
 0xbf6   :  { %v1333_v50 = vpop.xlane.xlu0 %1332  ;;  %v112_v2 = vshrl.u32 %v93_v49, 16 }
 0xbf7   :  { %v1336_v39 = vmul.f32 0.03125, %v1333_v50  ;;  %v7156_v42 = vsub.f32 %v1276_v14, %v1345_v3  ;;  %v7158_v43 = vsub.f32 %v1277_v9, %v1352_v4  ;;  %v7160_v7 = vsub.f32 %v1278_v54, %v1359_v5  ;;  %v6532_v5 = vld [vmem:[%s8371_s6 + $0x8] sm:$0xff]  }
 0xbf8   :  { %v7162_v8 = vsub.f32 %v1279_v23, %v1366_v6  ;;  %v113_v3 = vshrl.u32 %v94_v51, 16  ;;  %v117_v4 = vpack.i.b16 %v96_v56, %v95_v52  ;;  %v102_v6 = vpack.i.b16 %v101_v58, %v100_v57  ;;  %6350 = vmatpush3.bf16.msra.mxu0 %v6532_v5 }
 0xbf9   :  { %v1373_v10 = vrot.slane %v1336_v39, %v7141_v47  ;;  %v1380_v11 = vrot.slane %v1336_v39, %v7144_v61  ;;  %v1387_v12 = vrot.slane %v1336_v39, %v7147_v62  ;;  %v1394_v13 = vrot.slane %v1336_v39, %v7150_v44  ;;  %6351 = vmatprep.subr.bf16.mxu0 %v6762_v1 }
 0xbfa   :  { %v1411_v17 = vmul.f32 %v7156_v42, %v7156_v42  ;;  %v1412_v14 = vmul.f32 %v7158_v43, %v7158_v43  ;;  %v1413_v9 = vmul.f32 %v7160_v7, %v7160_v7  ;;  %v1414_v15 = vmul.f32 %v7162_v8, %v7162_v8 }
 0xbfb   :  { %v7176_v18 = vsub.f32 %v1280_v29, %v1373_v10  ;;  %v7178_v16 = vsub.f32 %v1281_v31, %v1380_v11  ;;  %v7180_v19 = vsub.f32 %v1282_v32, %v1387_v12  ;;  %v7182_v54 = vsub.f32 %v1283_v26, %v1394_v13 }
 0xbfc   :  { %v1427_v20 = vcombine.low %v1411_v17, %v1412_v14  ;;  %v1428_v23 = vcombine.low %v1413_v9, %v1414_v15  ;;  %v108_v50 = vpack.i.b16 %v107_v60, %v106_v59  ;;  %v118_v39 = vshrl.u32 %v95_v52, 16  ;;  %v6533_v17 = vld [vmem:[%s8371_s6] sm:$0xff]  }
 0xbfd   :  { %v1415_v22 = vmul.f32 %v7176_v18, %v7176_v18  ;;  %v1416_v24 = vmul.f32 %v7178_v16, %v7178_v16  ;;  %v1417_v21 = vmul.f32 %v7180_v19, %v7180_v19  ;;  %v1418_v28 = vmul.f32 %v7182_v54, %v7182_v54  ;;  %6352 = vmatpush3.bf16.msra.mxu0 %v6533_v17 }
 0xbfe   :  { %v1435_v29 = vrot.slane %v1427_v20, %v7120_v63  ;;  %v1442_v31 = vrot.slane %v1428_v23, %v7120_v63  ;;  %v119_v10 = vshrl.u32 %v96_v56, 16  ;;  %v114_v11 = vpack.i.b16 %v113_v3, %v112_v2  ;;  %6365 = vmatprep.subr.bf16.mxu0 %v6762_v1 }
 0xbff   :  { %v1444_v32 = vcombine.low %v1415_v22, %v1416_v24  ;;  %v1445_v33 = vcombine.low %v1417_v21, %v1418_v28  ;;  %v1738_v12 = vcombine.low %v99_v53, %v105_v55  ;;  %v1739_v13 = vcombine.low %v111_v0, %v117_v4 }
 0xc00   :  { %v1443_v25 = vcombine.low %v1435_v29, %v1442_v31  ;;  %v120_v14 = vpack.i.b16 %v119_v10, %v118_v39  ;;  %v1740_v9 = vcombine.low %v102_v6, %v108_v50 }
 0xc01   :  { %v1452_v26 = vrot.slane %v1444_v32, %v7120_v63  ;;  %v1459_v34 = vrot.slane %v1445_v33, %v7120_v63  ;;  %v1748_v15 = vrot.slane %v1738_v12, %v6929_v36  ;;  %v1755_v20 = vrot.slane %v1739_v13, %v6929_v36 }
 0xc02   :  { %v1463_v35 = vsel %vm203_vm1, %v1443_v25, 0.0  ;;  %v1741_v23 = vcombine.low %v114_v11, %v120_v14  ;;  %v1762_v22 = vrot.slane %v1740_v9, %v6929_v36 }
 0xc03   :  { %1464 = vadd.xlane.f32.xlu0 %v1463_v35  ;;  %v1460_v37 = vcombine.low %v1452_v26, %v1459_v34  ;;  %v1770_v24 = vcombine.low %v1748_v15, %v1755_v20 }
 0xc04   :  { %v1769_v21 = vrot.slane %v1741_v23, %v6929_v36 }
 0xc05   :  { %v1466_v27 = vsel %vm203_vm1, %v1460_v37, 0.0  ;;  %v1778_v29 = vrot.slane %v1770_v24, %v6929_v36 }
 0xc06   :  { %1467 = vadd.xlane.f32.xlu1 %v1466_v27  ;;  %v1771_v28 = vcombine.low %v1762_v22, %v1769_v21  ;;  %v5767_v27 = vld [vmem:[%s8378_s13 + $0x4] ss:$0 sm:$0xff] }
 0xc07   :  { %v1554_v38 = vcombine.high %v5767_v27, %v5767_v27  ;;  %v1561_v41 = vrot.slane %v5767_v27, %v7120_v63  ;;  %v5773_v27 = vld [vmem:[%s8373_s8] ss:$0 sm:$0xff] }
 0xc08   :  { %v1785_v31 = vrot.slane %v1771_v28, %v6929_v36  ;;  %v5768_v36 = vld [vmem:[%s8378_s13 + $0x5] ss:$0 sm:$0xff] }
 0xc09   :  { %v1588_v40 = vcombine.high %v5768_v36, %v5768_v36  ;;  %v1568_v45 = vrot.slane %v1554_v38, %v7120_v63  ;;  %v1595_v46 = vrot.slane %v5768_v36, %v7120_v63  ;;  %v1569_v51 = vcombine.high %v1561_v41, %v1561_v41 }
 0xc0a   :  { %v1786_v32 = vcombine.low %v1778_v29, %v1785_v31 }
 0xc0b   :  { %v1602_v48 = vrot.slane %v1588_v40, %v7120_v63  ;;  %v1570_v52 = vcombine.high %v1568_v45, %v1568_v45  ;;  %v1603_v58 = vcombine.high %v1595_v46, %v1595_v46 }
 0xc0c   :  { %6362 = vmatmul.mubr.msk.bf16.vlgmr.msra.gmra.mxu1 %vm203_vm1, %v1786_v32 }
 0xc0d   :  { %6373 = vmatprep.mubr.msk.bf16.mxu1 %vm6763_vm0, %v6762_v1  ;;  %v1604_v59 = vcombine.high %v1602_v48, %v1602_v48 }
 0xc8c   :  { %v1465_v33 = vpop.xlane.xlu0 %1464 }
 0xc8d   :  { %v1469_v25 = vmul.f32 0.03125, %v1465_v33 }
 0xc8f   :  { %v1471_v26 = vadd.f32 1e-05, %v1469_v25  ;;  %v1468_v34 = vpop.xlane.xlu1 %1467 }
 0xc90   :  { %v1470_v35 = vmul.f32 0.03125, %v1468_v34 }
 0xc91   :  { %6696 = vrsqrt.f32 %v1471_v26 }
 0xc92   :  { %v1472_v37 = vadd.f32 1e-05, %v1470_v35 }
 0xc94   :  { %6698 = vrsqrt.f32 %v1472_v37 }
 0xc9e   :  { %v6697_v49 = vpop.eup %6696 }
 0xc9f   :  { %v1483_v53 = vrot.slane %v6697_v49, %v7141_v47  ;;  %v1490_v55 = vrot.slane %v6697_v49, %v7144_v61  ;;  %v1497_v56 = vrot.slane %v6697_v49, %v7147_v62  ;;  %v1504_v57 = vrot.slane %v6697_v49, %v7150_v44 }
 0xca1   :  { %v6699_v60 = vpop.eup %6698  ;;  %v1541_v0 = vmul.f32 %v1483_v53, %v7156_v42  ;;  %v1542_v2 = vmul.f32 %v1490_v55, %v7158_v43  ;;  %v1543_v3 = vmul.f32 %v1497_v56, %v7160_v7  ;;  %v1544_v4 = vmul.f32 %v1504_v57, %v7162_v8  ;;  %v5769_v53 = vld [vmem:[%s8378_s13 + $0x1] ss:$0 sm:$0xff] }
 0xca2   :  { %v1511_v5 = vrot.slane %v6699_v60, %v7141_v47  ;;  %v1518_v6 = vrot.slane %v6699_v60, %v7144_v61  ;;  %v1525_v50 = vrot.slane %v6699_v60, %v7147_v62  ;;  %v1532_v39 = vrot.slane %v6699_v60, %v7150_v44 }
 0xca3   :  { %v1575_v10 = vmul.f32 %v1561_v41, %v1541_v0  ;;  %v1576_v11 = vmul.f32 %v1569_v51, %v1542_v2  ;;  %v1577_v12 = vmul.f32 %v1568_v45, %v1543_v3  ;;  %v1578_v13 = vmul.f32 %v1570_v52, %v1544_v4  ;;  %v7335_v3 = vld [vmem:[%s8367_s2] ss:$0 sm:$0xff] }
 0xca4   :  { %v1545_v42 = vmul.f32 %v1511_v5, %v7176_v18  ;;  %v1546_v43 = vmul.f32 %v1518_v6, %v7178_v16  ;;  %v1547_v7 = vmul.f32 %v1525_v50, %v7180_v19  ;;  %v1548_v8 = vmul.f32 %v1532_v39, %v7182_v54  ;;  %v7341_v50 = vld [vmem:[%s8367_s2 + $0x1] ss:$0 sm:$0xff]  ;;  %s8382_s2 = smov 16  }
 0xca5   :  { %v7273_v17 = vadd.f32 %v1595_v46, %v1575_v10  ;;  %v7275_v14 = vadd.f32 %v1603_v58, %v1576_v11  ;;  %v7277_v9 = vadd.f32 %v1602_v48, %v1577_v12  ;;  %v7279_v15 = vadd.f32 %v1604_v59, %v1578_v13 }
 0xca6   :  { %v1579_v20 = vmul.f32 %v1561_v41, %v1545_v42  ;;  %v1580_v23 = vmul.f32 %v1569_v51, %v1546_v43  ;;  %v1581_v22 = vmul.f32 %v1568_v45, %v1547_v7  ;;  %v1582_v24 = vmul.f32 %v1570_v52, %v1548_v8 }
 0xca7   :  { %v1625_v18 = vcombine.low %v7273_v17, %v7275_v14  ;;  %v1626_v16 = vcombine.low %v7277_v9, %v7279_v15 }
 0xca8   :  { %v7285_v19 = vadd.f32 %v1595_v46, %v1579_v20  ;;  %v7287_v54 = vadd.f32 %v1603_v58, %v1580_v23  ;;  %v7289_v21 = vadd.f32 %v1602_v48, %v1581_v22  ;;  %v7291_v28 = vadd.f32 %v1604_v59, %v1582_v24 }
 0xca9   :  { %v1633_v29 = vrot.slane %v1625_v18, %v7120_v63  ;;  %v1640_v31 = vrot.slane %v1626_v16, %v7120_v63 }
 0xcaa   :  { %v1642_v32 = vcombine.low %v7285_v19, %v7287_v54  ;;  %v1643_v33 = vcombine.low %v7289_v21, %v7291_v28 }
 0xcab   :  { %v1641_v34 = vcombine.low %v1633_v29, %v1640_v31 }
 0xcac   :  { %v1650_v25 = vrot.slane %v1642_v32, %v7120_v63  ;;  %v1657_v26 = vrot.slane %v1643_v33, %v7120_v63 }
 0xcae   :  { %v1658_v35 = vcombine.low %v1650_v25, %v1657_v26 }
 0xcb0   :  { %v1661_v37 = vpack.c.bf16 %v1658_v35, %v1641_v34 }
 0xcb2   :  { %6354 = vmatmul.mubr.msk.bf16.vlgmr.msra.gmra.mxu0 %vm203_vm1, %v1661_v37 }
 0xcb3   :  { %6367 = vmatprep.mubr.msk.bf16.mxu0 %vm6763_vm0, %v6762_v1 }
 0xccc   :  { %v1836_v36 = vpop.f32.mrf.mxu1 }
 0xccd   :  { %v1837_v38 = vadd.f32 %v5773_v27, %v1836_v36 }
 0xcce   :  { %v6363_v40 = vpop.f32.mrf.mxu1 }
 0xccf   :  { %v7307_v41 = vpack.c.bf16 %v1837_v38, %v1837_v38 }
 0xcd0   :  { %v1839_v45 = vpop.f32.mrf.mxu1 }
 0xcd1   :  { %v1840_v46 = vadd.f32 %v5773_v27, %v1839_v45  ;;  %v1871_v48 = vsel %vm256_vm2, %v7307_v41, 0 }
 0xcd2   :  { %v6364_v49 = vpop.f32.mrf.mxu1  ;;  %6366 = vmatpush3.bf16.xpose.msra.mxu0 %v1871_v48 }
 0xcd3   :  { %v7311_v51 = vpack.c.bf16 %v1840_v46, %v1840_v46  ;;  %6377 = vmatprep.subr.bf16.mxu0 %v6762_v1 }
 0xcd5   :  { %v1917_v52 = vsel %vm256_vm2, %v7311_v51, 0 }
 0xcd6   :  { %6372 = vmatpush3.bf16.xpose.msra.mxu1 %v1917_v52 }
 0xcd7   :  { %6383 = vmatprep.subr.bf16.mxu1 %v6762_v1 }
 0xd72   :  { %v1720_v55 = vpop.f32.mrf.mxu0 }
 0xd73   :  { %v1721_v56 = vadd.f32 %v5769_v53, %v1720_v55 }
 0xd74   :  { %v6355_v57 = vpop.f32.mrf.mxu0 }
 0xd75   :  { %v7320_v58 = vpack.c.bf16 %v1721_v56, %v1721_v56 }
 0xd76   :  { %v1723_v59 = vpop.f32.mrf.mxu0 }
 0xd77   :  { %v1724_v60 = vadd.f32 %v5769_v53, %v1723_v59  ;;  %6368 = vmatmul.mubr.msk.bf16.vlgmr.msra.gmra.mxu0 %vm256_vm2, %v7320_v58 }
 0xd78   :  { %v6356_v0 = vpop.f32.mrf.mxu0  ;;  %6379 = vmatprep.mubr.msk.bf16.mxu0 %vm6763_vm0, %v6762_v1 }
 0xd79   :  { %v7326_v2 = vpack.c.bf16 %v1724_v60, %v1724_v60 }
 0xd7b   :  { %6374 = vmatmul.mubr.msk.bf16.vlgmr.msra.gmra.mxu1 %vm256_vm2, %v7326_v2 }
 0xd7c   :  { %6385 = vmatprep.mubr.msk.bf16.mxu1 %vm6763_vm0, %v6762_v1 }
 0xe37   :  { %v1907_v4 = vpop.f32.mrf.mxu0 }
 0xe38   :  { %v1908_v5 = vadd.f32 %v7335_v3, %v1907_v4 }
 0xe39   :  { %v6369_v6 = vpop.f32.mrf.mxu0 }
 0xe3a   :  { %v1959_v39 = vsel %vm256_vm2, %v1908_v5, -inf }
 0xe3b   :  { %v1953_v10 = vpop.f32.mrf.mxu1  ;;  %1960 = vmax.xlane.f32.xlu0 %v1959_v39  ;;  %v1910_v11 = vpop.f32.mrf.mxu0 }
 0xe3c   :  { %v1954_v12 = vadd.f32 %v7341_v50, %v1953_v10 }
 0xe3d   :  { %v6370_v13 = vpop.f32.mrf.mxu0  ;;  %v6375_v42 = vpop.f32.mrf.mxu1 }
 0xe3e   :  { %v1962_v43 = vsel %vm256_vm2, %v1954_v12, -inf }
 0xe3f   :  { %1963 = vmax.xlane.f32.xlu1 %v1962_v43  ;;  %v1956_v7 = vpop.f32.mrf.mxu1 }
 0xe41   :  { %v6376_v8 = vpop.f32.mrf.mxu1 }
 0xe50   :  { %2031 = vrot.lane.b32.xlu1 %v7311_v51, %s6765_s17 }
 0xe51   :  { %1983 = vrot.lane.b32.xlu0 %v7307_v41, %s6765_s17 }
 0xec4   :  { %v1961_v20 = vpop.xlane.xlu0 %1960 }
 0xec5   :  { %v1965_v23 = vsub.f32 %v1908_v5, %v1961_v20 }
 0xec7   :  { %v1967_v22 = vmul.f32 1.442695, %v1965_v23 }
 0xec8   :  { %v1964_v24 = vpop.xlane.xlu1 %1963  ;;  %v1984_v18 = vpop.permute.xlu0 %1983 }
 0xec9   :  { %6700 = vpow2.f32 %v1967_v22  ;;  %v1966_v16 = vsub.f32 %v1954_v12, %v1964_v24  ;;  %v1989_v29 = vsel %vm380_vm3, %v1984_v18, 0 }
 0xeca   :  { %6378 = vmatpush3.bf16.msra.mxu0 %v1989_v29 }
 0xecb   :  { %v1969_v31 = vmul.f32 1.442695, %v1966_v16  ;;  %6389 = vmatprep.subr.bf16.mxu0 %v6762_v1 }
 0xecc   :  { %v2032_v32 = vpop.permute.xlu1 %2031 }
 0xecd   :  { %6702 = vpow2.f32 %v1969_v31  ;;  %v2037_v33 = vsel %vm380_vm3, %v2032_v32, 0 }
 0xece   :  { %6384 = vmatpush3.bf16.msra.mxu1 %v2037_v33 }
 0xecf   :  { %6395 = vmatprep.subr.bf16.mxu1 %v6762_v1 }
 0xed6   :  { %v6701_v25 = vpop.eup %6700 }
 0xed7   :  { %v1971_v26 = vsel %vm256_vm2, %v6701_v25, 0.0 }
 0xed8   :  { %1972 = vadd.xlane.f32.xlu0 %v1971_v26 }
 0xeda   :  { %v6703_v34 = vpop.eup %6702 }
 0xedb   :  { %v1974_v35 = vsel %vm256_vm2, %v6703_v34, 0.0 }
 0xedc   :  { %1975 = vadd.xlane.f32.xlu1 %v1974_v35 }
 0xeed   :  { %2081 = vrot.lane.b32.xlu1 %v7307_v41, %s6768_s19 }
 0xeee   :  { %2131 = vrot.lane.b32.xlu0 %v7311_v51, %s6768_s19 }
 0xef1   :  { %2079 = vrot.lane.b32.xlu1 %v7320_v58, %s6768_s19 }
 0xef2   :  { %2129 = vrot.lane.b32.xlu0 %v7326_v2, %s6768_s19 }
 0xf61   :  { %v1973_v37 = vpop.xlane.xlu0 %1972 }
 0xf62   :  { %6704 = vrcp.f32 %v1973_v37 }
 0xf65   :  { %v1976_v27 = vpop.xlane.xlu1 %1975  ;;  %v2132_v52 = vpop.permute.xlu0 %2131 }
 0xf66   :  { %6706 = vrcp.f32 %v1976_v27  ;;  %v2137_v55 = vsel %vm256_vm2, %v2132_v52, 0 }
 0xf69   :  { %v2082_v40 = vpop.permute.xlu1 %2081  ;;  %v2130_v57 = vpop.permute.xlu0 %2129 }
 0xf6a   :  { %v2087_v48 = vsel %vm256_vm2, %v2082_v40, 0 }
 0xf6d   :  { %v2080_v56 = vpop.permute.xlu1 %2079 }
 0xf6f   :  { %v6705_v36 = vpop.eup %6704 }
 0xf70   :  { %v1979_v38 = vmul.f32 %v6705_v36, %v6701_v25 }
 0xf72   :  { %v1981_v45 = vpack.c.bf16 %v1979_v38, %v1979_v38 }
 0xf73   :  { %v6707_v46 = vpop.eup %6706 }
 0xf74   :  { %6380 = vmatmul.mubr.msk.bf16.vlgmr.msra.gmra.mxu0 %vm256_vm2, %v1981_v45  ;;  %v1980_v49 = vmul.f32 %v6707_v46, %v6703_v34 }
 0xf75   :  { %6390 = vmatpush3.bf16.xpose.msra.mxu0 %v2087_v48  ;;  %6391 = vmatprep.mubr.msk.bf16.mxu0 %vm6763_vm0, %v6762_v1 }
 0xf76   :  { %v1982_v53 = vpack.c.bf16 %v1980_v49, %v1980_v49  ;;  %6401 = vmatprep.subr.bf16.mxu0 %v6762_v1 }
 0xf78   :  { %6386 = vmatmul.mubr.msk.bf16.vlgmr.msra.gmra.mxu1 %vm256_vm2, %v1982_v53 }
 0xf79   :  { %6396 = vmatpush3.bf16.xpose.msra.mxu1 %v2137_v55  ;;  %6397 = vmatprep.mubr.msk.bf16.mxu1 %vm6763_vm0, %v6762_v1 }
 0xf7a   :  { %6407 = vmatprep.subr.bf16.mxu1 %v6762_v1 }
 0xf7c   :  { %6392 = vmatmul.mubr.msk.bf16.vlgmr.msra.gmra.mxu0 %vm256_vm2, %v2080_v56 }
 0xf7d   :  { %6403 = vmatprep.mubr.msk.bf16.mxu0 %vm6763_vm0, %v6762_v1 }
 0xf80   :  { %6398 = vmatmul.mubr.msk.bf16.vlgmr.msra.gmra.mxu1 %vm256_vm2, %v2130_v57 }
 0xf81   :  { %6409 = vmatprep.mubr.msk.bf16.mxu1 %vm6763_vm0, %v6762_v1 }
0x1034   :  { %v7380_v59 = vpop.f32.mrf.mxu0 }
0x1036   :  { %v6381_v60 = vpop.f32.mrf.mxu0 }
0x1038   :  { %v2028_v0 = vpop.f32.mrf.mxu0  ;;  %v7382_v4 = vpop.f32.mrf.mxu1 }
0x103a   :  { %v6382_v5 = vpop.f32.mrf.mxu0  ;;  %v6387_v6 = vpop.f32.mrf.mxu1 }
0x103c   :  { %v2076_v39 = vpop.f32.mrf.mxu1  ;;  %v2123_v10 = vpop.f32.mrf.mxu0 }
0x103d   :  { %v2124_v11 = vadd.f32 %v7335_v3, %v2123_v10 }
0x103e   :  { %v6388_v12 = vpop.f32.mrf.mxu1  ;;  %v6393_v13 = vpop.f32.mrf.mxu0 }
0x103f   :  { %v2179_v42 = vsel %vm256_vm2, %v2124_v11, -inf }
0x1040   :  { %v2173_v43 = vpop.f32.mrf.mxu1  ;;  %2180 = vmax.xlane.f32.xlu1 %v2179_v42  ;;  %v2126_v7 = vpop.f32.mrf.mxu0 }
0x1041   :  { %v2174_v8 = vadd.f32 %v7341_v50, %v2173_v43 }
0x1042   :  { %v6394_v20 = vpop.f32.mrf.mxu0  ;;  %v6399_v23 = vpop.f32.mrf.mxu1 }
0x1043   :  { %v2182_v22 = vsel %vm256_vm2, %v2174_v8, -inf }
0x1044   :  { %2183 = vmax.xlane.f32.xlu0 %v2182_v22  ;;  %v2176_v24 = vpop.f32.mrf.mxu1 }
0x1046   :  { %v6400_v18 = vpop.f32.mrf.mxu1 }
0x1051   :  { %2251 = vrot.lane.b32.xlu1 %v7311_v51, %s6767_s18 }
0x105a   :  { %2203 = vrot.lane.b32.xlu0 %v7307_v41, %s6767_s18 }
0x10c9   :  { %v2181_v16 = vpop.xlane.xlu1 %2180 }
0x10ca   :  { %v2185_v29 = vsub.f32 %v2124_v11, %v2181_v16 }
0x10cc   :  { %v2187_v31 = vmul.f32 1.442695, %v2185_v29 }
0x10cd   :  { %v2184_v32 = vpop.xlane.xlu0 %2183  ;;  %v2252_v33 = vpop.permute.xlu1 %2251 }
0x10ce   :  { %6708 = vpow2.f32 %v2187_v31  ;;  %v2186_v25 = vsub.f32 %v2174_v8, %v2184_v32  ;;  %v2257_v26 = vsel %vm380_vm3, %v2252_v33, 0 }
0x10cf   :  { %6408 = vmatpush3.bf16.msra.mxu1 %v2257_v26 }
0x10d0   :  { %v2189_v34 = vmul.f32 1.442695, %v2186_v25  ;;  %6419 = vmatprep.subr.bf16.mxu1 %v6762_v1 }
0x10d1   :  { %v2204_v35 = vpop.permute.xlu0 %2203 }
0x10d2   :  { %6710 = vpow2.f32 %v2189_v34  ;;  %v2209_v37 = vsel %vm380_vm3, %v2204_v35, 0 }
0x10d3   :  { %6402 = vmatpush3.bf16.msra.mxu0 %v2209_v37 }
0x10d4   :  { %6413 = vmatprep.subr.bf16.mxu0 %v6762_v1 }
0x10db   :  { %v6709_v27 = vpop.eup %6708 }
0x10dc   :  { %v2191_v36 = vsel %vm256_vm2, %v6709_v27, 0.0 }
0x10dd   :  { %2192 = vadd.xlane.f32.xlu0 %v2191_v36 }
0x10df   :  { %v6711_v38 = vpop.eup %6710 }
0x10e0   :  { %v2194_v40 = vsel %vm256_vm2, %v6711_v38, 0.0 }
0x10e1   :  { %2195 = vadd.xlane.f32.xlu1 %v2194_v40 }
0x10f2   :  { %2301 = vrot.lane.b32.xlu1 %v7307_v41, %s6771_s22 }
0x10f3   :  { %2351 = vrot.lane.b32.xlu0 %v7311_v51, %s6771_s22 }
0x10f6   :  { %2299 = vrot.lane.b32.xlu1 %v7320_v58, %s6771_s22 }
0x10f7   :  { %2349 = vrot.lane.b32.xlu0 %v7326_v2, %s6771_s22  ;;  %s8383_s22 = smov 24  }
0x1166   :  { %v2193_v45 = vpop.xlane.xlu0 %2192 }
0x1167   :  { %6712 = vrcp.f32 %v2193_v45 }
0x116a   :  { %v2196_v46 = vpop.xlane.xlu1 %2195  ;;  %v2352_v60 = vpop.permute.xlu0 %2351 }
0x116b   :  { %6714 = vrcp.f32 %v2196_v46  ;;  %v2357_v5 = vsel %vm256_vm2, %v2352_v60, 0 }
0x116e   :  { %v2302_v52 = vpop.permute.xlu1 %2301  ;;  %v2350_v39 = vpop.permute.xlu0 %2349 }
0x116f   :  { %v2307_v56 = vsel %vm256_vm2, %v2302_v52, 0 }
0x1172   :  { %v2300_v6 = vpop.permute.xlu1 %2299 }
0x1174   :  { %v6713_v48 = vpop.eup %6712 }
0x1175   :  { %v2199_v49 = vmul.f32 %v6713_v48, %v6709_v27 }
0x1177   :  { %v2201_v53 = vpack.c.bf16 %v2199_v49, %v2199_v49 }
0x1178   :  { %v6715_v55 = vpop.eup %6714 }
0x1179   :  { %6404 = vmatmul.mubr.msk.bf16.vlgmr.msra.gmra.mxu0 %vm256_vm2, %v2201_v53  ;;  %v2200_v57 = vmul.f32 %v6715_v55, %v6711_v38 }
0x117a   :  { %6414 = vmatpush3.bf16.xpose.msra.mxu0 %v2307_v56  ;;  %6415 = vmatprep.mubr.msk.bf16.mxu0 %vm6763_vm0, %v6762_v1 }
0x117b   :  { %v2202_v0 = vpack.c.bf16 %v2200_v57, %v2200_v57  ;;  %6425 = vmatprep.subr.bf16.mxu0 %v6762_v1 }
0x117d   :  { %6410 = vmatmul.mubr.msk.bf16.vlgmr.msra.gmra.mxu1 %vm256_vm2, %v2202_v0 }
0x117e   :  { %6420 = vmatpush3.bf16.xpose.msra.mxu1 %v2357_v5  ;;  %6421 = vmatprep.mubr.msk.bf16.mxu1 %vm6763_vm0, %v6762_v1 }
0x117f   :  { %6431 = vmatprep.subr.bf16.mxu1 %v6762_v1 }
0x1181   :  { %6416 = vmatmul.mubr.msk.bf16.vlgmr.msra.gmra.mxu0 %vm256_vm2, %v2300_v6 }
0x1182   :  { %6427 = vmatprep.mubr.msk.bf16.mxu0 %vm6763_vm0, %v6762_v1 }
0x1185   :  { %6422 = vmatmul.mubr.msk.bf16.vlgmr.msra.gmra.mxu1 %vm256_vm2, %v2350_v39 }
0x1186   :  { %6433 = vmatprep.mubr.msk.bf16.mxu1 %vm6763_vm0, %v6762_v1 }
0x1239   :  { %v7422_v10 = vpop.f32.mrf.mxu0 }
0x123b   :  { %v6405_v11 = vpop.f32.mrf.mxu0 }
0x123d   :  { %v2248_v12 = vpop.f32.mrf.mxu0  ;;  %v7424_v13 = vpop.f32.mrf.mxu1 }
0x123e   :  { %v6511_v42 = vpack.i.bf16 %v7424_v13, %v7422_v10 }
0x123f   :  { %v6406_v43 = vpop.f32.mrf.mxu0  ;;  %v6411_v7 = vpop.f32.mrf.mxu1 }
0x1241   :  { %v2296_v8 = vpop.f32.mrf.mxu1  ;;  %v2343_v20 = vpop.f32.mrf.mxu0 }
0x1242   :  { %v2344_v23 = vadd.f32 %v7335_v3, %v2343_v20 }
0x1243   :  { %v6412_v22 = vpop.f32.mrf.mxu1  ;;  %v6417_v24 = vpop.f32.mrf.mxu0 }
0x1244   :  { %v2399_v18 = vsel %vm256_vm2, %v2344_v23, -inf }
0x1245   :  { %v2393_v16 = vpop.f32.mrf.mxu1  ;;  %2400 = vmax.xlane.f32.xlu1 %v2399_v18  ;;  %v2346_v29 = vpop.f32.mrf.mxu0 }
0x1246   :  { %v2394_v31 = vadd.f32 %v7341_v50, %v2393_v16 }
0x1247   :  { %v6418_v32 = vpop.f32.mrf.mxu0  ;;  %v6423_v33 = vpop.f32.mrf.mxu1 }
0x1248   :  { %v2402_v25 = vsel %vm256_vm2, %v2394_v31, -inf }
0x1249   :  { %2403 = vmax.xlane.f32.xlu0 %v2402_v25  ;;  %v2396_v26 = vpop.f32.mrf.mxu1 }
0x124b   :  { %v6424_v34 = vpop.f32.mrf.mxu1 }
0x1256   :  { %2471 = vrot.lane.b32.xlu1 %v7311_v51, %s6770_s21 }
0x125f   :  { %2423 = vrot.lane.b32.xlu0 %v7307_v41, %s6770_s21 }
0x12ce   :  { %v2401_v35 = vpop.xlane.xlu1 %2400 }
0x12cf   :  { %v2405_v37 = vsub.f32 %v2344_v23, %v2401_v35 }
0x12d1   :  { %v2407_v27 = vmul.f32 1.442695, %v2405_v37 }
0x12d2   :  { %v2404_v36 = vpop.xlane.xlu0 %2403  ;;  %v2472_v38 = vpop.permute.xlu1 %2471 }
0x12d3   :  { %6716 = vpow2.f32 %v2407_v27  ;;  %v2406_v40 = vsub.f32 %v2394_v31, %v2404_v36  ;;  %v2477_v45 = vsel %vm380_vm3, %v2472_v38, 0 }
0x12d4   :  { %6432 = vmatpush3.bf16.msra.mxu1 %v2477_v45 }
0x12d5   :  { %v2409_v46 = vmul.f32 1.442695, %v2406_v40  ;;  %6443 = vmatprep.subr.bf16.mxu1 %v6762_v1 }
0x12d6   :  { %v2424_v48 = vpop.permute.xlu0 %2423 }
0x12d7   :  { %6718 = vpow2.f32 %v2409_v46  ;;  %v2429_v49 = vsel %vm380_vm3, %v2424_v48, 0 }
0x12d8   :  { %6426 = vmatpush3.bf16.msra.mxu0 %v2429_v49 }
0x12d9   :  { %6437 = vmatprep.subr.bf16.mxu0 %v6762_v1 }
0x12e0   :  { %v6717_v52 = vpop.eup %6716 }
0x12e1   :  { %v2411_v53 = vsel %vm256_vm2, %v6717_v52, 0.0 }
0x12e2   :  { %2412 = vadd.xlane.f32.xlu0 %v2411_v53 }
0x12e4   :  { %v6719_v55 = vpop.eup %6718 }
0x12e5   :  { %v2414_v56 = vsel %vm256_vm2, %v6719_v55, 0.0 }
0x12e6   :  { %2415 = vadd.xlane.f32.xlu1 %v2414_v56 }
0x12f7   :  { %2521 = vrot.lane.b32.xlu1 %v7307_v41, %s6774_s24 }
0x12f8   :  { %2571 = vrot.lane.b32.xlu0 %v7311_v51, %s6774_s24 }
0x12fb   :  { %2519 = vrot.lane.b32.xlu1 %v7320_v58, %s6774_s24 }
0x12fc   :  { %2569 = vrot.lane.b32.xlu0 %v7326_v2, %s6774_s24 }
0x136b   :  { %v2413_v57 = vpop.xlane.xlu0 %2412 }
0x136c   :  { %6720 = vrcp.f32 %v2413_v57 }
0x136f   :  { %v2416_v60 = vpop.xlane.xlu1 %2415  ;;  %v2572_v7 = vpop.permute.xlu0 %2571 }
0x1370   :  { %6722 = vrcp.f32 %v2416_v60  ;;  %v2577_v2 = vsel %vm256_vm2, %v2572_v7, 0 }
0x1373   :  { %v2522_v6 = vpop.permute.xlu1 %2521  ;;  %v2570_v20 = vpop.permute.xlu0 %2569 }
0x1374   :  { %v2527_v12 = vsel %vm256_vm2, %v2522_v6, 0 }
0x1377   :  { %v2520_v8 = vpop.permute.xlu1 %2519 }
0x1379   :  { %v6721_v0 = vpop.eup %6720 }
0x137a   :  { %v2419_v5 = vmul.f32 %v6721_v0, %v6717_v52 }
0x137c   :  { %v2421_v39 = vpack.c.bf16 %v2419_v5, %v2419_v5 }
0x137d   :  { %v6723_v11 = vpop.eup %6722 }
0x137e   :  { %6428 = vmatmul.mubr.msk.bf16.vlgmr.msra.gmra.mxu0 %vm256_vm2, %v2421_v39  ;;  %v2420_v43 = vmul.f32 %v6723_v11, %v6719_v55 }
0x137f   :  { %6438 = vmatpush3.bf16.xpose.msra.mxu0 %v2527_v12  ;;  %6439 = vmatprep.mubr.msk.bf16.mxu0 %vm6763_vm0, %v6762_v1 }
0x1380   :  { %v2422_v58 = vpack.c.bf16 %v2420_v43, %v2420_v43  ;;  %6449 = vmatprep.subr.bf16.mxu0 %v6762_v1 }
0x1382   :  { %6434 = vmatmul.mubr.msk.bf16.vlgmr.msra.gmra.mxu1 %vm256_vm2, %v2422_v58  ;;  %v6534_v58 = vld [vmem:[%s8374_s9 + $0x8] sm:$0xff]  }
0x1383   :  { %6444 = vmatpush3.bf16.xpose.msra.mxu1 %v2577_v2  ;;  %6445 = vmatprep.mubr.msk.bf16.mxu1 %vm6763_vm0, %v6762_v1  ;;  %v6535_v2 = vld [vmem:[%s8374_s9] sm:$0xff]  }
0x1384   :  { %6455 = vmatprep.subr.bf16.mxu1 %v6762_v1 }
0x1386   :  { %6440 = vmatmul.mubr.msk.bf16.vlgmr.msra.gmra.mxu0 %vm256_vm2, %v2520_v8 }
0x1387   :  { %6451 = vmatprep.mubr.msk.bf16.mxu0 %vm6763_vm0, %v6762_v1 }
0x138a   :  { %6446 = vmatmul.mubr.msk.bf16.vlgmr.msra.gmra.mxu1 %vm256_vm2, %v2570_v20 }
0x138b   :  { %6457 = vmatprep.mubr.msk.bf16.mxu1 %vm6763_vm0, %v6762_v1 }
0x143e   :  { %v2465_v23 = vpop.f32.mrf.mxu0 }
0x1440   :  { %v6429_v22 = vpop.f32.mrf.mxu0 }
0x1442   :  { %v2468_v24 = vpop.f32.mrf.mxu0  ;;  %v2513_v18 = vpop.f32.mrf.mxu1 }
0x1443   :  { %v6516_v16 = vpack.i.bf16 %v2513_v18, %v2465_v23 }
0x1444   :  { %v6430_v29 = vpop.f32.mrf.mxu0  ;;  %v6435_v31 = vpop.f32.mrf.mxu1 }
0x1446   :  { %v2516_v32 = vpop.f32.mrf.mxu1  ;;  %v2563_v33 = vpop.f32.mrf.mxu0 }
0x1447   :  { %v2564_v25 = vadd.f32 %v7335_v3, %v2563_v33 }
0x1448   :  { %v6436_v26 = vpop.f32.mrf.mxu1  ;;  %v6441_v34 = vpop.f32.mrf.mxu0 }
0x1449   :  { %v2619_v35 = vsel %vm256_vm2, %v2564_v25, -inf }
0x144a   :  { %v2613_v37 = vpop.f32.mrf.mxu1  ;;  %2620 = vmax.xlane.f32.xlu1 %v2619_v35  ;;  %v2566_v27 = vpop.f32.mrf.mxu0 }
0x144b   :  { %v2614_v36 = vadd.f32 %v7341_v50, %v2613_v37 }
0x144c   :  { %v6442_v38 = vpop.f32.mrf.mxu0  ;;  %v6447_v40 = vpop.f32.mrf.mxu1 }
0x144d   :  { %v2622_v45 = vsel %vm256_vm2, %v2614_v36, -inf }
0x144e   :  { %2623 = vmax.xlane.f32.xlu0 %v2622_v45  ;;  %v2616_v46 = vpop.f32.mrf.mxu1 }
0x1450   :  { %v6448_v48 = vpop.f32.mrf.mxu1 }
0x14d3   :  { %v2621_v49 = vpop.xlane.xlu1 %2620 }
0x14d4   :  { %v2625_v52 = vsub.f32 %v2564_v25, %v2621_v49 }
0x14d6   :  { %v2627_v53 = vmul.f32 1.442695, %v2625_v52 }
0x14d7   :  { %v2624_v3 = vpop.xlane.xlu0 %2623 }
0x14d8   :  { %6724 = vpow2.f32 %v2627_v53  ;;  %v2626_v55 = vsub.f32 %v2614_v36, %v2624_v3 }
0x14da   :  { %v2629_v56 = vmul.f32 1.442695, %v2626_v55 }
0x14dc   :  { %6726 = vpow2.f32 %v2629_v56 }
0x14e5   :  { %v6725_v57 = vpop.eup %6724 }
0x14e6   :  { %v2631_v60 = vsel %vm256_vm2, %v6725_v57, 0.0 }
0x14e7   :  { %2632 = vadd.xlane.f32.xlu0 %v2631_v60 }
0x14e9   :  { %v6727_v50 = vpop.eup %6726 }
0x14ea   :  { %v2634_v0 = vsel %vm256_vm2, %v6727_v50, 0.0 }
0x14eb   :  { %2635 = vadd.xlane.f32.xlu1 %v2634_v0 }
0x14fc   :  { %2691 = vrot.lane.b32.xlu1 %v7311_v51, %s6773_s23 }
0x14fd   :  { %2643 = vrot.lane.b32.xlu0 %v7307_v41, %s6773_s23 }
0x1500   :  { %6512 = vrot.lane.b32.xlu1 %v6511_v42, %s6776_s26 }
0x1501   :  { %6517 = vrot.lane.b32.xlu0 %v6516_v16, %s8382_s2 }
0x1570   :  { %v2633_v5 = vpop.xlane.xlu0 %2632 }
0x1571   :  { %6728 = vrcp.f32 %v2633_v5 }
0x1574   :  { %v2644_v6 = vpop.permute.xlu0 %2643  ;;  %v2636_v39 = vpop.xlane.xlu1 %2635 }
0x1575   :  { %v2649_v11 = vsel %vm380_vm3, %v2644_v6, 0  ;;  %6730 = vrcp.f32 %v2636_v39 }
0x1576   :  { %6450 = vmatpush3.bf16.msra.mxu0 %v2649_v11 }
0x1577   :  { %6461 = vmatprep.subr.bf16.mxu0 %v6762_v1 }
0x1578   :  { %v2692_v51 = vpop.permute.xlu1 %2691  ;;  %v6518_v26 = vpop.permute.xlu0 %6517 }
0x1579   :  { %v2697_v41 = vsel %vm380_vm3, %v2692_v51, 0  ;;  %v6520_v37 = vunpack.i.h.bf16 %v6518_v26  ;;  %v6519_v27 = vunpack.i.l.bf16 %v6518_v26 }
0x157a   :  { %6456 = vmatpush3.bf16.msra.mxu1 %v2697_v41 }
0x157c   :  { %v6513_v32 = vpop.permute.xlu1 %6512 }
0x157d   :  { %v6515_v33 = vunpack.i.h.bf16 %v6513_v32  ;;  %v6514_v25 = vunpack.i.l.bf16 %v6513_v32 }
0x157e   :  { %v6729_v12 = vpop.eup %6728 }
0x157f   :  { %v2639_v43 = vmul.f32 %v6729_v12, %v6725_v57  ;;  %v2764_v34 = vsel %vm256_vm2, %v7382_v4, %v6515_v33  ;;  %v2763_v35 = vsel %vm256_vm2, %v7380_v59, %v6514_v25  ;;  %v5799_v59 = vld [vmem:[%s8378_s13 + $0x2] ss:$0 sm:$0xff] }
0x1580   :  { %v2765_v45 = vsel %vm1158_vm4, %v2763_v35, %v6519_v27  ;;  %v2766_v46 = vsel %vm1158_vm4, %v2764_v34, %v6520_v37 }
0x1581   :  { %v2641_v10 = vpack.c.bf16 %v2639_v43, %v2639_v43 }
0x1582   :  { %v6731_v13 = vpop.eup %6730 }
0x1583   :  { %6452 = vmatmul.mubr.msk.bf16.vlgmr.msra.gmra.mxu0 %vm256_vm2, %v2641_v10  ;;  %v2640_v42 = vmul.f32 %v6731_v13, %v6727_v50 }
0x1584   :  { %6465 = vmatprep.mubr.msk.bf16.mxu0 %vm6763_vm0, %v6762_v1  ;;  %6462 = vmatpush3.bf16.msra.mxu0 %v6534_v58 }
0x1585   :  { %v2642_v7 = vpack.c.bf16 %v2640_v42, %v2640_v42  ;;  %6463 = vmatprep.subr.bf16.mxu0 %v6762_v1 }
0x1587   :  { %6458 = vmatmul.mubr.msk.bf16.vlgmr.msra.gmra.mxu1 %vm256_vm2, %v2642_v7 }
0x1588   :  { %6464 = vmatpush3.bf16.msra.mxu0 %v6535_v2 }
0x1643   :  { %v2685_v8 = vpop.f32.mrf.mxu0 }
0x1645   :  { %v6453_v20 = vpop.f32.mrf.mxu0 }
0x1647   :  { %v2688_v23 = vpop.f32.mrf.mxu0  ;;  %v2733_v22 = vpop.f32.mrf.mxu1 }
0x1648   :  { %v6521_v24 = vpack.i.bf16 %v2733_v22, %v2685_v8 }
0x1649   :  { %v6454_v18 = vpop.f32.mrf.mxu0  ;;  %v6459_v16 = vpop.f32.mrf.mxu1 }
0x164a   :  { %6522 = vrot.lane.b32.xlu1 %v6521_v24, %s8383_s22 }
0x164b   :  { %v2736_v29 = vpop.f32.mrf.mxu1 }
0x164d   :  { %v6460_v31 = vpop.f32.mrf.mxu1 }
0x16bc   :  { %v6523_v36 = vpop.permute.xlu1 %6522 }
0x16bd   :  { %v6525_v38 = vunpack.i.h.bf16 %v6523_v36  ;;  %v6524_v40 = vunpack.i.l.bf16 %v6523_v36 }
0x16bf   :  { %v2768_v48 = vsel %vm1161_vm5, %v2766_v46, %v6525_v38  ;;  %v2767_v49 = vsel %vm1161_vm5, %v2765_v45, %v6524_v40 }
0x16c0   :  { %v2769_v52 = vpack.c.bf16 %v2768_v48, %v2767_v49 }
0x16c2   :  { %6466 = vmatmul.mubr.msk.bf16.vlgmr.msra.gmra.mxu0 %vm203_vm1, %v2769_v52 }
0x1782   :  { %v2828_v4 = vpop.f32.mrf.mxu0 }
0x1783   :  { %v2829_v53 = vadd.f32 %v5799_v59, %v2828_v4 }
0x1784   :  { %v6467_v3 = vpop.f32.mrf.mxu0 }
0x1785   :  { %v2839_v55 = vcombine.high %v2829_v53, %v2829_v53  ;;  %v2846_v56 = vrot.slane %v2829_v53, %v7120_v63 }
0x1786   :  { %v2831_v57 = vpop.f32.mrf.mxu0 }
0x1787   :  { %v2853_v60 = vrot.slane %v2839_v55, %v7120_v63  ;;  %v2854_v50 = vcombine.high %v2846_v56, %v2846_v56  ;;  %v2832_v0 = vadd.f32 %v5799_v59, %v2831_v57  ;;  %v2881_v39 = vadd.f32 %v2846_v56, %v7273_v17 }
0x1788   :  { %v6468_v5 = vpop.f32.mrf.mxu0 }
0x1789   :  { %v2855_v6 = vcombine.high %v2853_v60, %v2853_v60  ;;  %v2882_v11 = vadd.f32 %v2854_v50, %v7275_v14  ;;  %v2856_v51 = vcombine.high %v2832_v0, %v2832_v0  ;;  %v2863_v41 = vrot.slane %v2832_v0, %v7120_v63 }
0x178a   :  { %v2883_v12 = vadd.f32 %v2853_v60, %v7277_v9 }
0x178b   :  { %v2870_v43 = vrot.slane %v2856_v51, %v7120_v63  ;;  %v2884_v10 = vadd.f32 %v2855_v6, %v7279_v15  ;;  %v2897_v13 = vcombine.low %v2881_v39, %v2882_v11  ;;  %v2871_v42 = vcombine.high %v2863_v41, %v2863_v41 }
0x178c   :  { %v2885_v2 = vadd.f32 %v2863_v41, %v7285_v19 }
0x178d   :  { %v2872_v7 = vcombine.high %v2870_v43, %v2870_v43  ;;  %v2898_v58 = vcombine.low %v2883_v12, %v2884_v10  ;;  %v2886_v8 = vadd.f32 %v2871_v42, %v7287_v54  ;;  %v2887_v17 = vadd.f32 %v2870_v43, %v7289_v21  ;;  %v3282_v42 = vld [vmem:[%s8375_s10 + $0x80] sm:$0xff] }
0x178e   :  { %v2905_v14 = vrot.slane %v2897_v13, %v7120_v63 }
0x178f   :  { %v2912_v20 = vrot.slane %v2898_v58, %v7120_v63  ;;  %v2888_v9 = vadd.f32 %v2872_v7, %v7291_v28  ;;  %v2914_v23 = vcombine.low %v2885_v2, %v2886_v8  ;;  %v3290_v7 = vld [vmem:[%s8375_s10 + $0xc0] sm:$0xff]  ;;  %v3283_v58 = vld [vmem:[%s8375_s10 + $0x88] sm:$0xff] }
0x1791   :  { %v2913_v22 = vcombine.low %v2905_v14, %v2912_v20  ;;  %v2915_v24 = vcombine.low %v2887_v17, %v2888_v9  ;;  %v2922_v18 = vrot.slane %v2914_v23, %v7120_v63  ;;  %v3266_v14 = vld [vmem:[%s8375_s10] sm:$0xff] }
0x1792   :  { %v3274_v20 = vld [vmem:[%s8375_s10 + $0x40] sm:$0xff] }
0x1793   :  { %v2933_v15 = vsel %vm203_vm1, %v2913_v22, 0.0  ;;  %v2929_v16 = vrot.slane %v2915_v24, %v7120_v63  ;;  %v5806_v24 = vcombine.high %v3266_v14, %v3274_v20 }
0x1794   :  { %2934 = vadd.xlane.f32.xlu0 %v2933_v15  ;;  %v3267_v15 = vld [vmem:[%s8375_s10 + $0x8] sm:$0xff] }
0x1795   :  { %v2930_v19 = vcombine.low %v2922_v18, %v2929_v16  ;;  %v3275_v18 = vld [vmem:[%s8375_s10 + $0x48] sm:$0xff] }
0x1796   :  { %v5808_v16 = vcombine.high %v3267_v15, %v3275_v18 }
0x1797   :  { %v2936_v54 = vsel %vm203_vm1, %v2930_v19, 0.0  ;;  %v5805_v19 = vcombine.low %v3266_v14, %v3274_v20 }
0x1798   :  { %2937 = vadd.xlane.f32.xlu1 %v2936_v54  ;;  %v5807_v54 = vcombine.low %v3267_v15, %v3275_v18 }
0x181d   :  { %v2935_v21 = vpop.xlane.xlu0 %2934 }
0x181e   :  { %v2939_v29 = vmul.f32 0.03125, %v2935_v21  ;;  %v7601_v21 = vld [vmem:[%s8375_s10 + $0x90] sm:$0xff] }
0x1820   :  { %v2949_v31 = vrot.slane %v2939_v29, %v7141_v47  ;;  %v2956_v28 = vrot.slane %v2939_v29, %v7144_v61  ;;  %v2963_v32 = vrot.slane %v2939_v29, %v7147_v62  ;;  %v2970_v33 = vrot.slane %v2939_v29, %v7150_v44  ;;  %v7606_v29 = vld [vmem:[%s8375_s10 + $0xd0] sm:$0xff] }
0x1821   :  { %v2938_v25 = vpop.xlane.xlu1 %2937 }
0x1822   :  { %v2940_v26 = vmul.f32 0.03125, %v2938_v25  ;;  %v7530_v34 = vsub.f32 %v2881_v39, %v2949_v31  ;;  %v7532_v35 = vsub.f32 %v2882_v11, %v2956_v28  ;;  %v7534_v37 = vsub.f32 %v2883_v12, %v2963_v32  ;;  %v7611_v31 = vld [vmem:[%s8375_s10 + $0x98] sm:$0xff] }
0x1823   :  { %v7536_v27 = vsub.f32 %v2884_v10, %v2970_v33  ;;  %v5826_v28 = vcombine.high %v7601_v21, %v7606_v29  ;;  %v7618_v32 = vld [vmem:[%s8375_s10 + $0xd8] sm:$0xff]  ;;  %v5825_v33 = vcombine.low %v7601_v21, %v7606_v29  ;;  %v3278_v21 = vld [vmem:[%s8375_s10 + $0x60] sm:$0xff]  ;;  %v3271_v29 = vld [vmem:[%s8375_s10 + $0x28] sm:$0xff] }
0x1824   :  { %v2977_v36 = vrot.slane %v2940_v26, %v7141_v47  ;;  %v2984_v38 = vrot.slane %v2940_v26, %v7144_v61  ;;  %v2991_v40 = vrot.slane %v2940_v26, %v7147_v62  ;;  %v2998_v45 = vrot.slane %v2940_v26, %v7150_v44 }
0x1825   :  { %v3015_v46 = vmul.f32 %v7530_v34, %v7530_v34  ;;  %v3016_v48 = vmul.f32 %v7532_v35, %v7532_v35  ;;  %v3017_v49 = vmul.f32 %v7534_v37, %v7534_v37  ;;  %v3018_v52 = vmul.f32 %v7536_v27, %v7536_v27 }
0x1826   :  { %v7550_v59 = vsub.f32 %v2885_v2, %v2977_v36  ;;  %v7552_v4 = vsub.f32 %v2886_v8, %v2984_v38  ;;  %v7554_v53 = vsub.f32 %v2887_v17, %v2991_v40  ;;  %v7556_v3 = vsub.f32 %v2888_v9, %v2998_v45  ;;  %v3291_v17 = vld [vmem:[%s8375_s10 + $0xc8] sm:$0xff] }
0x1827   :  { %v3031_v55 = vcombine.low %v3015_v46, %v3016_v48  ;;  %v3032_v56 = vcombine.low %v3017_v49, %v3018_v52  ;;  %v5821_v2 = vcombine.low %v3282_v42, %v3290_v7  ;;  %v5822_v8 = vcombine.high %v3282_v42, %v3290_v7  ;;  %v5803_v49 = vld [vmem:[%s8378_s13 + $0x6] ss:$0 sm:$0xff]  ;;  %v5804_v52 = vld [vmem:[%s8378_s13 + $0x7] ss:$0 sm:$0xff] }
0x1828   :  { %v3019_v57 = vmul.f32 %v7550_v59, %v7550_v59  ;;  %v3020_v60 = vmul.f32 %v7552_v4, %v7552_v4  ;;  %v3021_v50 = vmul.f32 %v7554_v53, %v7554_v53  ;;  %v3022_v0 = vmul.f32 %v7556_v3, %v7556_v3 }
0x1829   :  { %v3039_v5 = vrot.slane %v3031_v55, %v7120_v63  ;;  %v3046_v6 = vrot.slane %v3032_v56, %v7120_v63  ;;  %v6784_v9 = vmov 0   ;;  %v5823_v23 = vcombine.low %v3283_v58, %v3291_v17  ;;  %3557 = vmatprep.subr.bf16.mxu1 %v5822_v8 }
0x182a   :  { %v3048_v39 = vcombine.low %v3019_v57, %v3020_v60  ;;  %v3049_v11 = vcombine.low %v3021_v50, %v3022_v0  ;;  %3577 = vmatprep.mubr.bf16.mxu1 %v6784_v9  ;;  %3620 = vmatprep.mubr.bf16.mxu0 %v6784_v9  ;;  %v5824_v22 = vcombine.high %v3283_v58, %v3291_v17 }
0x182b   :  { %v3047_v51 = vcombine.low %v3039_v5, %v3046_v6  ;;  %3558 = vmatpush1.bf16.msra.mxu1 %v5821_v2  ;;  %v5827_v25 = vcombine.low %v7611_v31, %v7618_v32  ;;  %v5828_v26 = vcombine.high %v7611_v31, %v7618_v32  ;;  %v3158_v55 = vcombine.high %v5803_v49, %v5803_v49  ;;  %v3279_v31 = vld [vmem:[%s8375_s10 + $0x68] sm:$0xff] }
0x182c   :  { %v3056_v41 = vrot.slane %v3048_v39, %v7120_v63  ;;  %v3063_v12 = vrot.slane %v3049_v11, %v7120_v63  ;;  %3600 = vmatprep.subr.bf16.mxu0 %v5824_v22  ;;  %3559 = vmatprep.subr.bf16.mxu1 %v5806_v24  ;;  %v3192_v56 = vcombine.high %v5804_v52, %v5804_v52 }
0x182d   :  { %v3067_v43 = vsel %vm203_vm1, %v3047_v51, 0.0  ;;  %3601 = vmatpush1.bf16.msra.mxu0 %v5823_v23  ;;  %v3165_v57 = vrot.slane %v5803_v49, %v7120_v63  ;;  %v3172_v60 = vrot.slane %v3158_v55, %v7120_v63  ;;  %v3199_v0 = vrot.slane %v5804_v52, %v7120_v63 }
0x182e   :  { %3068 = vadd.xlane.f32.xlu0 %v3067_v43  ;;  %v3064_v10 = vcombine.low %v3056_v41, %v3063_v12  ;;  %3602 = vmatprep.subr.bf16.mxu0 %v5808_v16  ;;  %v3206_v5 = vrot.slane %v3192_v56, %v7120_v63 }
0x182f   :  { %3560 = vmatpush1.bf16.msra.mxu1 %v5805_v19  ;;  %v3173_v41 = vcombine.high %v3165_v57, %v3165_v57  ;;  %v3174_v12 = vcombine.high %v3172_v60, %v3172_v60  ;;  %v3207_v58 = vcombine.high %v3199_v0, %v3199_v0 }
0x1830   :  { %v3070_v13 = vsel %vm203_vm1, %v3064_v10, 0.0  ;;  %3643 = vmatprep.subr.bf16.mxu1 %v5826_v28  ;;  %v3208_v2 = vcombine.high %v3206_v5, %v3206_v5 }
0x1831   :  { %3603 = vmatpush1.bf16.msra.mxu0 %v5807_v54 }
0x1832   :  { %3071 = vadd.xlane.f32.xlu0 %v3070_v13  ;;  %3686 = vmatprep.subr.bf16.mxu0 %v5828_v26 }
0x18b7   :  { %v3069_v36 = vpop.xlane.xlu0 %3068 }
0x18b8   :  { %v3073_v38 = vmul.f32 0.03125, %v3069_v36 }
0x18ba   :  { %v3075_v40 = vadd.f32 1e-05, %v3073_v38 }
0x18bb   :  { %v3072_v45 = vpop.xlane.xlu0 %3071 }
0x18bc   :  { %6732 = vrsqrt.f32 %v3075_v40  ;;  %v3074_v46 = vmul.f32 0.03125, %v3072_v45 }
0x18be   :  { %v3076_v48 = vadd.f32 1e-05, %v3074_v46 }
0x18c0   :  { %6734 = vrsqrt.f32 %v3076_v48 }
0x18c9   :  { %v6733_v50 = vpop.eup %6732 }
0x18ca   :  { %v3087_v6 = vrot.slane %v6733_v50, %v7141_v47  ;;  %v3094_v39 = vrot.slane %v6733_v50, %v7144_v61  ;;  %v3101_v11 = vrot.slane %v6733_v50, %v7147_v62  ;;  %v3108_v51 = vrot.slane %v6733_v50, %v7150_v44  ;;  %v3269_v50 = vld [vmem:[%s8375_s10 + $0x18] sm:$0xff] }
0x18cc   :  { %v3145_v43 = vmul.f32 %v3087_v6, %v7530_v34  ;;  %v3146_v10 = vmul.f32 %v3094_v39, %v7532_v35  ;;  %v3147_v13 = vmul.f32 %v3101_v11, %v7534_v37  ;;  %v3148_v42 = vmul.f32 %v3108_v51, %v7536_v27 }
0x18cd   :  { %v6735_v7 = vpop.eup %6734 }
0x18ce   :  { %v3115_v8 = vrot.slane %v6735_v7, %v7141_v47  ;;  %v3122_v17 = vrot.slane %v6735_v7, %v7144_v61  ;;  %v3129_v14 = vrot.slane %v6735_v7, %v7147_v62  ;;  %v3136_v20 = vrot.slane %v6735_v7, %v7150_v44 }
0x18cf   :  { %v3179_v23 = vmul.f32 %v3165_v57, %v3145_v43  ;;  %v3180_v22 = vmul.f32 %v3173_v41, %v3146_v10  ;;  %v3181_v34 = vmul.f32 %v3172_v60, %v3147_v13  ;;  %v3182_v24 = vmul.f32 %v3174_v12, %v3148_v42  ;;  %v3287_v43 = vld [vmem:[%s8375_s10 + $0xa8] sm:$0xff] }
0x18d0   :  { %v3149_v35 = vmul.f32 %v3115_v8, %v7550_v59  ;;  %v3150_v37 = vmul.f32 %v3122_v17, %v7552_v4  ;;  %v3151_v27 = vmul.f32 %v3129_v14, %v7554_v53  ;;  %v3152_v15 = vmul.f32 %v3136_v20, %v7556_v3  ;;  %v3295_v10 = vld [vmem:[%s8375_s10 + $0xe8] sm:$0xff]  ;;  %v3288_v17 = vld [vmem:[%s8375_s10 + $0xb0] sm:$0xff]  ;;  %v3289_v20 = vld [vmem:[%s8375_s10 + $0xb8] sm:$0xff] }
0x18d1   :  { %v7652_v18 = vadd.f32 %v3199_v0, %v3179_v23  ;;  %v7654_v16 = vadd.f32 %v3207_v58, %v3180_v22  ;;  %v7656_v19 = vadd.f32 %v3206_v5, %v3181_v34  ;;  %v7658_v54 = vadd.f32 %v3208_v2, %v3182_v24  ;;  %v3296_v14 = vld [vmem:[%s8375_s10 + $0xf0] sm:$0xff]  ;;  %v3297_v23 = vld [vmem:[%s8375_s10 + $0xf8] sm:$0xff] }
0x18d2   :  { %v3183_v28 = vmul.f32 %v3165_v57, %v3149_v35  ;;  %v3184_v26 = vmul.f32 %v3173_v41, %v3150_v37  ;;  %v3185_v36 = vmul.f32 %v3172_v60, %v3151_v27  ;;  %v3186_v38 = vmul.f32 %v3174_v12, %v3152_v15  ;;  %v3268_v57 = vld [vmem:[%s8375_s10 + $0x10] sm:$0xff]  ;;  %v3286_v41 = vld [vmem:[%s8375_s10 + $0xa0] sm:$0xff]  ;;  %v3273_v15 = vld [vmem:[%s8375_s10 + $0x38] sm:$0xff] }
0x18d3   :  { %v3229_v59 = vcombine.low %v7652_v18, %v7654_v16  ;;  %v3230_v4 = vcombine.low %v7656_v19, %v7658_v54  ;;  %v3276_v60 = vld [vmem:[%s8375_s10 + $0x50] sm:$0xff]  ;;  %v3294_v12 = vld [vmem:[%s8375_s10 + $0xe0] sm:$0xff]  ;;  %v5816_v8 = vcombine.high %v3271_v29, %v3279_v31  ;;  %v5815_v34 = vcombine.low %v3271_v29, %v3279_v31  ;;  %v6561_v29 = vld [vmem:[%s8377_s12 + $0xc8] sm:$0xff]  }
0x18d4   :  { %v7664_v53 = vadd.f32 %v3199_v0, %v3183_v28  ;;  %v7666_v3 = vadd.f32 %v3207_v58, %v3184_v26  ;;  %v7668_v40 = vadd.f32 %v3206_v5, %v3185_v36  ;;  %v7670_v45 = vadd.f32 %v3208_v2, %v3186_v38  ;;  %v3277_v0 = vld [vmem:[%s8375_s10 + $0x58] sm:$0xff]  ;;  %v3270_v2 = vld [vmem:[%s8375_s10 + $0x20] sm:$0xff]  ;;  %v3272_v37 = vld [vmem:[%s8375_s10 + $0x30] sm:$0xff] }
0x18d5   :  { %v3237_v46 = vrot.slane %v3229_v59, %v7120_v63  ;;  %v3244_v48 = vrot.slane %v3230_v4, %v7120_v63  ;;  %v5810_v11 = vcombine.high %v3268_v57, %v3276_v60  ;;  %v5812_v51 = vcombine.high %v3269_v50, %v3277_v0  ;;  %v3280_v27 = vld [vmem:[%s8375_s10 + $0x70] sm:$0xff]  ;;  %v3281_v28 = vld [vmem:[%s8375_s10 + $0x78] sm:$0xff]  ;;  %v6562_v31 = vld [vmem:[%s8377_s12 + $0x8] sm:$0xff]  }
0x18d6   :  { %v3246_v49 = vcombine.low %v7664_v53, %v7666_v3  ;;  %v3247_v52 = vcombine.low %v7668_v40, %v7670_v45  ;;  %v5809_v13 = vcombine.low %v3268_v57, %v3276_v60  ;;  %v5811_v42 = vcombine.low %v3269_v50, %v3277_v0  ;;  %v6542_v57 = vld [vmem:[%s8377_s12 + $0x30] sm:$0xff]   ;;  %v6544_v50 = vld [vmem:[%s8377_s12 + $0x68] sm:$0xff]  }
0x18d7   :  { %v3245_v5 = vcombine.low %v3237_v46, %v3244_v48  ;;  %v5830_v7 = vcombine.high %v3286_v41, %v3294_v12  ;;  %v5832_v58 = vcombine.high %v3287_v43, %v3295_v10  ;;  %v5829_v32 = vcombine.low %v3286_v41, %v3294_v12  ;;  %v6536_v48 = vld [vmem:[%s8377_s12 + $0x78] sm:$0xff]   ;;  %v6543_v60 = vld [vmem:[%s8377_s12 + $0xb0] sm:$0xff]   ;;  %v6545_v0 = vld [vmem:[%s8377_s12 + $0xe8] sm:$0xff]  }
0x18d8   :  { %v3254_v55 = vrot.slane %v3246_v49, %v7120_v63  ;;  %v3261_v56 = vrot.slane %v3247_v52, %v7120_v63  ;;  %v5813_v22 = vcombine.low %v3270_v2, %v3278_v21  ;;  %v5834_v24 = vcombine.high %v3288_v17, %v3296_v14  ;;  %v6537_v49 = vld [vmem:[%s8377_s12 + $0xf8] sm:$0xff]   ;;  %v6551_v41 = vld [vmem:[%s8377_s12 + $0xa0] sm:$0xff]  }
0x18d9   :  { %v5836_v35 = vcombine.high %v3289_v20, %v3297_v23  ;;  %v5833_v26 = vcombine.low %v3288_v17, %v3296_v14  ;;  %v5835_v36 = vcombine.low %v3289_v20, %v3297_v23  ;;  %v5818_v38 = vcombine.high %v3272_v37, %v3280_v27  ;;  %v6538_v52 = vld [vmem:[%s8377_s12 + $0x38] sm:$0xff]   ;;  %v6567_v17 = vld [vmem:[%s8377_s12 + $0x80] sm:$0xff]  }
0x18da   :  { %v3262_v6 = vcombine.low %v3254_v55, %v3261_v56  ;;  %v5820_v59 = vcombine.high %v3273_v15, %v3281_v28  ;;  %v5817_v4 = vcombine.low %v3272_v37, %v3280_v27  ;;  %v5819_v46 = vcombine.low %v3273_v15, %v3281_v28  ;;  %v6539_v55 = vld [vmem:[%s8377_s12 + $0xb8] sm:$0xff]   ;;  %v6540_v56 = vld [vmem:[%s8377_s12 + $0x70] sm:$0xff]  }
0x18db   :  { %v6552_v12 = vld [vmem:[%s8377_s12 + $0x58] sm:$0xff]   ;;  %v3308_v23 = vsub.s32 1, %v6918_v30 }
0x18dc   :  { %v7692_v39 = vpack.c.bf16 %v3262_v6, %v3245_v5  ;;  %v6546_v5 = vld [vmem:[%s8377_s12 + $0x28] sm:$0xff]   ;;  %v6568_v14 = vld [vmem:[%s8377_s12 + $0x178] sm:$0xff]  }
0x18dd   :  { %v6547_v6 = vld [vmem:[%s8377_s12 + $0xa8] sm:$0xff]   ;;  %v6569_v20 = vld [vmem:[%s8377_s12 + $0x1f8] sm:$0xff]  }
0x18de   :  { %5837 = vmatmul.mubr.msk.bf16.vlgmr.msra.gmra.mxu1 %vm203_vm1, %v7692_v39  ;;  %5838 = vmatmul.mubr.msk.bf16.vlgmr.msra.gmra.mxu0 %vm203_vm1, %v7692_v39 }
0x18df   :  { %3644 = vmatpush1.bf16.msra.mxu1 %v5825_v33  ;;  %3687 = vmatpush1.bf16.msra.mxu0 %v5827_v25  ;;  %v5831_v33 = vcombine.low %v3287_v43, %v3295_v10  ;;  %v5814_v25 = vcombine.high %v3270_v2, %v3278_v21  ;;  %v6553_v43 = vld [vmem:[%s8377_s12 + $0xd8] sm:$0xff]   ;;  %v6559_v2 = vld [vmem:[%s8377_s12 + $0x90] sm:$0xff]   ;;  %v6560_v21 = vld [vmem:[%s8377_s12 + $0x48] sm:$0xff]  }
0x18e0   :  { %3645 = vmatprep.subr.bf16.mxu1 %v5810_v11  ;;  %3688 = vmatprep.subr.bf16.mxu0 %v5812_v51  ;;  %v6549_v11 = vld [vmem:[%s8377_s12 + $0xe0] sm:$0xff]   ;;  %v6554_v10 = vld [vmem:[%s8377_s12 + $0x18] sm:$0xff]  }
0x18e1   :  { %3663 = vmatprep.mubr.bf16.mxu1 %v6784_v9  ;;  %3706 = vmatprep.mubr.bf16.mxu0 %v6784_v9  ;;  %v6550_v51 = vld [vmem:[%s8377_s12 + $0x20] sm:$0xff]  }
0x18e3   :  { %3646 = vmatpush1.bf16.msra.mxu1 %v5809_v13  ;;  %3689 = vmatpush1.bf16.msra.mxu0 %v5811_v42  ;;  %v6555_v13 = vld [vmem:[%s8377_s12 + $0x98] sm:$0xff]   ;;  %v6556_v42 = vld [vmem:[%s8377_s12 + $0x50] sm:$0xff]  }
0x18e4   :  { %3729 = vmatprep.subr.bf16.mxu1 %v5830_v7  ;;  %3772 = vmatprep.subr.bf16.mxu0 %v5832_v58  ;;  %v6557_v7 = vld [vmem:[%s8377_s12 + $0xd0] sm:$0xff]  }
0x18e5   :  { %v6558_v58 = vld [vmem:[%s8377_s12 + $0x10] sm:$0xff]  }
0x18e6   :  { %5839 = vmatmul.mubr.msk.bf16.vlgmr.msra.gmra.mxu1 %vm203_vm1, %v7692_v39  ;;  %5840 = vmatmul.mubr.msk.bf16.vlgmr.msra.gmra.mxu0 %vm203_vm1, %v7692_v39 }
0x18e7   :  { %3730 = vmatpush1.bf16.msra.mxu1 %v5829_v32  ;;  %3773 = vmatpush1.bf16.msra.mxu0 %v5831_v33  ;;  %v6563_v32 = vld [vmem:[%s8377_s12 + $0x88] sm:$0xff]   ;;  %v6564_v33 = vld [vmem:[%s8377_s12 + $0x40] sm:$0xff]  }
0x18e8   :  { %3731 = vmatprep.subr.bf16.mxu1 %v5814_v25  ;;  %3774 = vmatprep.subr.bf16.mxu0 %v5816_v8  ;;  %v6565_v25 = vld [vmem:[%s8377_s12 + $0xc0] sm:$0xff]  }
0x18e9   :  { %3749 = vmatprep.mubr.bf16.mxu1 %v6784_v9  ;;  %3792 = vmatprep.mubr.bf16.mxu0 %v6784_v9  ;;  %v6566_v8 = vld [vmem:[%s8377_s12] sm:$0xff]  }
0x18eb   :  { %3732 = vmatpush1.bf16.msra.mxu1 %v5813_v22  ;;  %3775 = vmatpush1.bf16.msra.mxu0 %v5815_v34  ;;  %v3316_v22 = vsub.s32 3, %v6918_v30  ;;  %v3304_v34 = vsub.s32 0, %v6918_v30 }
0x18ec   :  { %3815 = vmatprep.subr.bf16.mxu1 %v5834_v24  ;;  %3858 = vmatprep.subr.bf16.mxu0 %v5836_v35  ;;  %v3312_v24 = vsub.s32 2, %v6918_v30  ;;  %v7879_v35 = vld [vmem:[%s8376_s11] sm:$0xff] }
0x18ed   :  { %v3309_v15 = vrot.slane %v7879_v35, %v3308_v23  ;;  %v3317_v28 = vrot.slane %v7879_v35, %v3316_v22 }
0x18ee   :  { %5841 = vmatmul.mubr.msk.bf16.vlgmr.msra.gmra.mxu1 %vm203_vm1, %v7692_v39  ;;  %5842 = vmatmul.mubr.msk.bf16.vlgmr.msra.gmra.mxu0 %vm203_vm1, %v7692_v39 }
0x18ef   :  { %3816 = vmatpush1.bf16.msra.mxu1 %v5833_v26  ;;  %3859 = vmatpush1.bf16.msra.mxu0 %v5835_v36  ;;  %v3305_v26 = vrot.slane %v7879_v35, %v3304_v34  ;;  %v3313_v36 = vrot.slane %v7879_v35, %v3312_v24 }
0x18f0   :  { %3817 = vmatprep.subr.bf16.mxu1 %v5818_v38  ;;  %3860 = vmatprep.subr.bf16.mxu0 %v5820_v59 }
0x18f1   :  { %3835 = vmatprep.mubr.bf16.mxu1 %v6784_v9  ;;  %3878 = vmatprep.mubr.bf16.mxu0 %v6784_v9  ;;  %v6541_v9 = vld [vmem:[%s8377_s12 + $0xf0] sm:$0xff]  }
0x18f3   :  { %3818 = vmatpush1.bf16.msra.mxu1 %v5817_v4  ;;  %3861 = vmatpush1.bf16.msra.mxu0 %v5819_v46 }
0x18f4   :  { %6061 = vmatprep.subr.bf16.mxu1 %v6536_v48  ;;  %6083 = vmatprep.subr.bf16.mxu0 %v6537_v49  ;;  %v3324_v48 = vsub.s32 5, %v6918_v30  ;;  %v3332_v49 = vsub.s32 7, %v6918_v30 }
0x18f6   :  { %5843 = vmatmul.mubr.msk.bf16.vlgmr.msra.gmra.mxu1 %vm203_vm1, %v7692_v39  ;;  %5844 = vmatmul.mubr.msk.bf16.vlgmr.msra.gmra.mxu0 %vm203_vm1, %v7692_v39  ;;  %v6548_v39 = vld [vmem:[%s8377_s12 + $0x60] sm:$0xff]  }
0x18f7   :  { %6062 = vmatpush3.bf16.msra.mxu1 %v6538_v52  ;;  %6084 = vmatpush3.bf16.msra.mxu0 %v6539_v55 }
0x18f8   :  { %6063 = vmatprep.subr.bf16.mxu1 %v6540_v56  ;;  %6085 = vmatprep.subr.bf16.mxu0 %v6541_v9 }
0x18fb   :  { %6064 = vmatpush3.bf16.msra.mxu1 %v6542_v57  ;;  %6086 = vmatpush3.bf16.msra.mxu0 %v6543_v60 }
0x18fc   :  { %6065 = vmatprep.subr.bf16.mxu1 %v6544_v50  ;;  %6087 = vmatprep.subr.bf16.mxu0 %v6545_v0 }
0x18ff   :  { %6066 = vmatpush3.bf16.msra.mxu1 %v6546_v5  ;;  %6088 = vmatpush3.bf16.msra.mxu0 %v6547_v6 }
0x1900   :  { %6067 = vmatprep.subr.bf16.mxu1 %v6548_v39  ;;  %6089 = vmatprep.subr.bf16.mxu0 %v6549_v11 }
0x1903   :  { %6068 = vmatpush3.bf16.msra.mxu1 %v6550_v51  ;;  %6090 = vmatpush3.bf16.msra.mxu0 %v6551_v41 }
0x1904   :  { %6069 = vmatprep.subr.bf16.mxu1 %v6552_v12  ;;  %6091 = vmatprep.subr.bf16.mxu0 %v6553_v43  ;;  %v3325_v12 = vrot.slane %v7879_v35, %v3324_v48  ;;  %v3333_v43 = vrot.slane %v7879_v35, %v3332_v49 }
0x1907   :  { %6070 = vmatpush3.bf16.msra.mxu1 %v6554_v10  ;;  %6092 = vmatpush3.bf16.msra.mxu0 %v6555_v13 }
0x1908   :  { %6071 = vmatprep.subr.bf16.mxu1 %v6556_v42  ;;  %6093 = vmatprep.subr.bf16.mxu0 %v6557_v7 }
0x190b   :  { %6072 = vmatpush3.bf16.msra.mxu1 %v6558_v58  ;;  %6094 = vmatpush3.bf16.msra.mxu0 %v6559_v2 }
0x190c   :  { %6073 = vmatprep.subr.bf16.mxu1 %v6560_v21  ;;  %6095 = vmatprep.subr.bf16.mxu0 %v6561_v29 }
0x190f   :  { %6074 = vmatpush3.bf16.msra.mxu1 %v6562_v31  ;;  %6096 = vmatpush3.bf16.msra.mxu0 %v6563_v32 }
0x1910   :  { %6075 = vmatprep.subr.bf16.mxu1 %v6564_v33  ;;  %6097 = vmatprep.subr.bf16.mxu0 %v6565_v25  ;;  %v6570_v33 = vld [vmem:[%s8377_s12 + $0x138] sm:$0xff]  }
0x1911   :  { %v6571_v25 = vld [vmem:[%s8377_s12 + $0x1b8] sm:$0xff]  }
0x1913   :  { %6076 = vmatpush3.bf16.msra.mxu1 %v6566_v8  ;;  %6098 = vmatpush3.bf16.msra.mxu0 %v6567_v17 }
0x1914   :  { %6105 = vmatprep.subr.bf16.mxu1 %v6568_v14  ;;  %6127 = vmatprep.subr.bf16.mxu0 %v6569_v20 }
0x199e   :  { %v3579_v37 = vpop.f32.mrf.mxu1  ;;  %v3622_v27 = vpop.f32.mrf.mxu0 }
0x199f   :  { %v3580_v57 = vadd.f32 %v3579_v37, %v3305_v26  ;;  %v3623_v60 = vadd.f32 %v3622_v27, %v3313_v36  ;;  %v6572_v37 = vld [vmem:[%s8377_s12 + $0x170] sm:$0xff]  }
0x19a0   :  { %v3581_v38 = vpop.f32.mrf.mxu1  ;;  %v3624_v59 = vpop.f32.mrf.mxu0  ;;  %v6573_v27 = vld [vmem:[%s8377_s12 + $0x1f0] sm:$0xff]  }
0x19a1   :  { %v3582_v52 = vadd.f32 %v3581_v38, %v3309_v15  ;;  %v3625_v55 = vadd.f32 %v3624_v59, %v3317_v28  ;;  %v3889_v58 = vmax.f32 %v3580_v57, 0.0  ;;  %v3891_v2 = vmax.f32 %v3623_v60, 0.0  ;;  %v6577_v60 = vld [vmem:[%s8377_s12 + $0x1e8] sm:$0xff]  }
0x19a2   :  { %v3583_v4 = vpop.f32.mrf.mxu1  ;;  %v3626_v46 = vpop.f32.mrf.mxu0 }
0x19a3   :  { %v3584_v56 = vadd.f32 %v3583_v4, %v3305_v26  ;;  %v3627_v9 = vadd.f32 %v3626_v46, %v3313_v36  ;;  %v3890_v10 = vmax.f32 %v3582_v52, 0.0  ;;  %v3892_v13 = vmax.f32 %v3625_v55, 0.0  ;;  %v6574_v4 = vld [vmem:[%s8377_s12 + $0x130] sm:$0xff]   ;;  %v6576_v52 = vld [vmem:[%s8377_s12 + $0x168] sm:$0xff]  }
0x19a4   :  { %v3585_v50 = vpop.f32.mrf.mxu1  ;;  %v3628_v0 = vpop.f32.mrf.mxu0  ;;  %v6575_v46 = vld [vmem:[%s8377_s12 + $0x1b0] sm:$0xff]  }
0x19a5   :  { %v3586_v5 = vadd.f32 %v3585_v50, %v3309_v15  ;;  %v3629_v6 = vadd.f32 %v3628_v0, %v3317_v28  ;;  %v3905_v39 = vmax.f32 %v3584_v56, 0.0  ;;  %v3907_v11 = vmax.f32 %v3627_v9, 0.0 }
0x19a6   :  { %v7895_v51 = vpop.f32.mrf.mxu1  ;;  %v7897_v41 = vpop.f32.mrf.mxu0 }
0x19a7   :  { %v3906_v42 = vmax.f32 %v3586_v5, 0.0  ;;  %v3908_v7 = vmax.f32 %v3629_v6, 0.0  ;;  %v3921_v8 = vpack.c.bf16 %v3905_v39, %v3889_v58  ;;  %v3923_v17 = vpack.c.bf16 %v3907_v11, %v3891_v2  ;;  %v6578_v5 = vld [vmem:[%s8377_s12 + $0x128] sm:$0xff]   ;;  %v6580_v39 = vld [vmem:[%s8377_s12 + $0x160] sm:$0xff]   ;;  %v6586_v2 = vld [vmem:[%s8377_s12 + $0x118] sm:$0xff]  }
0x19a8   :  { %v3667_v21 = vpop.f32.mrf.mxu1  ;;  %v3710_v29 = vpop.f32.mrf.mxu0  ;;  %v6579_v6 = vld [vmem:[%s8377_s12 + $0x1a8] sm:$0xff]   ;;  %v6581_v11 = vld [vmem:[%s8377_s12 + $0x1e0] sm:$0xff]  }
0x19a9   :  { %v3922_v31 = vpack.c.bf16 %v3906_v42, %v3890_v10  ;;  %v3924_v32 = vpack.c.bf16 %v3908_v7, %v3892_v13  ;;  %v3668_v15 = vadd.f32 %v3667_v21, %v3325_v12  ;;  %v3711_v28 = vadd.f32 %v3710_v29, %v3333_v43  ;;  %v6583_v13 = vld [vmem:[%s8377_s12 + $0x1a0] sm:$0xff]   ;;  %v6584_v42 = vld [vmem:[%s8377_s12 + $0x158] sm:$0xff]  }
0x19aa   :  { %v7911_v14 = vpop.f32.mrf.mxu1  ;;  %v7913_v20 = vpop.f32.mrf.mxu0  ;;  %v6585_v7 = vld [vmem:[%s8377_s12 + $0x1d8] sm:$0xff]  }
0x19ab   :  { %4998 = vmatprep.mubr.bf16.mxu1 %v3922_v31  ;;  %5039 = vmatprep.mubr.bf16.mxu0 %v3924_v32  ;;  %v3894_v55 = vmax.f32 %v3668_v15, 0.0  ;;  %v3896_v56 = vmax.f32 %v3711_v28, 0.0  ;;  %v6587_v29 = vld [vmem:[%s8377_s12 + $0x198] sm:$0xff]   ;;  %v6588_v31 = vld [vmem:[%s8377_s12 + $0x150] sm:$0xff]   ;;  %v6592_v15 = vld [vmem:[%s8377_s12 + $0x148] sm:$0xff]  }
0x19ac   :  { %v3671_v26 = vpop.f32.mrf.mxu1  ;;  %v3714_v36 = vpop.f32.mrf.mxu0  ;;  %4999 = vmatmul.mubr.bf16.vlgmr.msra.gmra.mxu1 %v3921_v8  ;;  %5040 = vmatmul.mubr.bf16.vlgmr.msra.gmra.mxu0 %v3923_v17  ;;  %v6589_v32 = vld [vmem:[%s8377_s12 + $0x1d0] sm:$0xff]   ;;  %v6593_v28 = vld [vmem:[%s8377_s12 + $0x1c8] sm:$0xff]  }
0x19ad   :  { %v3672_v38 = vadd.f32 %v3671_v26, %v3325_v12  ;;  %v3715_v59 = vadd.f32 %v3714_v36, %v3333_v43  ;;  %6106 = vmatpush3.bf16.msra.mxu1 %v6570_v33  ;;  %6128 = vmatpush3.bf16.msra.mxu0 %v6571_v25  ;;  %v6582_v43 = vld [vmem:[%s8377_s12 + $0x120] sm:$0xff]   ;;  %v3320_v33 = vsub.s32 4, %v6918_v30  ;;  %v3328_v25 = vsub.s32 6, %v6918_v30  ;;  %v6590_v17 = vld [vmem:[%s8377_s12 + $0x110] sm:$0xff]  }
0x19ae   :  { %6107 = vmatprep.subr.bf16.mxu1 %v6572_v37  ;;  %6129 = vmatprep.subr.bf16.mxu0 %v6573_v27  ;;  %v7945_v12 = vpop.f32.mrf.mxu1  ;;  %v7950_v10 = vpop.f32.mrf.mxu0  ;;  %v6591_v27 = vld [vmem:[%s8377_s12 + $0x190] sm:$0xff]  }
0x19af   :  { %v3910_v9 = vmax.f32 %v3672_v38, 0.0  ;;  %v3912_v57 = vmax.f32 %v3715_v59, 0.0  ;;  %v3321_v26 = vrot.slane %v7879_v35, %v3320_v33  ;;  %v3329_v36 = vrot.slane %v7879_v35, %v3328_v25  ;;  %v8000_v38 = vld [vmem:[%s8376_s11 + $0x8] sm:$0xff] }
0x19b0   :  { %v3753_v58 = vpop.f32.mrf.mxu1  ;;  %v3796_v21 = vpop.f32.mrf.mxu0  ;;  %v6595_v35 = vld [vmem:[%s8377_s12 + $0x188] sm:$0xff]  }
0x19b1   :  { %v3926_v50 = vpack.c.bf16 %v3910_v9, %v3894_v55  ;;  %v3928_v0 = vpack.c.bf16 %v3912_v57, %v3896_v56  ;;  %6108 = vmatpush3.bf16.msra.mxu1 %v6574_v4  ;;  %6130 = vmatpush3.bf16.msra.mxu0 %v6575_v46  ;;  %v6594_v4 = vld [vmem:[%s8377_s12 + $0x108] sm:$0xff]   ;;  %v3670_v46 = vadd.f32 %v7911_v14, %v3321_v26  ;;  %v6596_v56 = vld [vmem:[%s8377_s12 + $0x140] sm:$0xff]  }
0x19b2   :  { %6109 = vmatprep.subr.bf16.mxu1 %v6576_v52  ;;  %6131 = vmatprep.subr.bf16.mxu0 %v6577_v60  ;;  %v7975_v8 = vpop.f32.mrf.mxu1  ;;  %v7980_v37 = vpop.f32.mrf.mxu0  ;;  %v3341_v52 = vrot.slane %v8000_v38, %v3308_v23  ;;  %v3713_v9 = vadd.f32 %v7913_v20, %v3329_v36  ;;  %v3349_v14 = vrot.slane %v8000_v38, %v3316_v22  ;;  %v6597_v23 = vld [vmem:[%s8377_s12 + $0x1c0] sm:$0xff]  }
0x19b3   :  { %5080 = vmatprep.mubr.bf16.mxu1 %v3926_v50  ;;  %5121 = vmatprep.mubr.bf16.mxu0 %v3928_v0  ;;  %v3666_v57 = vadd.f32 %v7895_v51, %v3321_v26  ;;  %v3709_v50 = vadd.f32 %v7897_v41, %v3329_v36  ;;  %v6598_v20 = vld [vmem:[%s8377_s12 + $0x100] sm:$0xff]   ;;  %v6600_v51 = vld [vmem:[%s8377_s12 + $0x278] sm:$0xff]   ;;  %v6606_v26 = vld [vmem:[%s8377_s12 + $0x230] sm:$0xff]  }
0x19b4   :  { %v3757_v59 = vpop.f32.mrf.mxu1  ;;  %v3800_v55 = vpop.f32.mrf.mxu0  ;;  %v6599_v22 = vld [vmem:[%s8377_s12 + $0x180] sm:$0xff]   ;;  %v3797_v41 = vadd.f32 %v3796_v21, %v3349_v14  ;;  %v6603_v21 = vld [vmem:[%s8377_s12 + $0x2b8] sm:$0xff]   ;;  %v6607_v36 = vld [vmem:[%s8377_s12 + $0x2b0] sm:$0xff]  }
0x19b5   :  { %6110 = vmatpush3.bf16.msra.mxu1 %v6578_v5  ;;  %6132 = vmatpush3.bf16.msra.mxu0 %v6579_v6  ;;  %v3758_v60 = vadd.f32 %v3757_v59, %v3341_v52  ;;  %v3801_v0 = vadd.f32 %v3800_v55, %v3349_v14  ;;  %v3909_v5 = vmax.f32 %v3670_v46, 0.0  ;;  %v3754_v6 = vadd.f32 %v3753_v58, %v3341_v52  ;;  %v6602_v58 = vld [vmem:[%s8377_s12 + $0x238] sm:$0xff]   ;;  %v6608_v59 = vld [vmem:[%s8377_s12 + $0x268] sm:$0xff]   ;;  %v6612_v55 = vld [vmem:[%s8377_s12 + $0x260] sm:$0xff]  }
0x19b6   :  { %6111 = vmatprep.subr.bf16.mxu1 %v6580_v39  ;;  %6133 = vmatprep.subr.bf16.mxu0 %v6581_v11  ;;  %v3911_v39 = vmax.f32 %v3713_v9, 0.0  ;;  %v6601_v11 = vld [vmem:[%s8377_s12 + $0x2f8] sm:$0xff]   ;;  %v6610_v46 = vld [vmem:[%s8377_s12 + $0x228] sm:$0xff]   ;;  %v6614_v9 = vld [vmem:[%s8377_s12 + $0x220] sm:$0xff]   ;;  %v8077_v14 = vpop.f32.mrf.mxu0 }
0x19b7   :  { %v6611_v52 = vld [vmem:[%s8377_s12 + $0x2a8] sm:$0xff]  }
0x19b9   :  { %6112 = vmatpush3.bf16.msra.mxu1 %v6582_v43  ;;  %6134 = vmatpush3.bf16.msra.mxu0 %v6583_v13  ;;  %v3893_v43 = vmax.f32 %v3666_v57, 0.0  ;;  %v3914_v13 = vmax.f32 %v3758_v60, 0.0  ;;  %v6616_v57 = vld [vmem:[%s8377_s12 + $0x258] sm:$0xff]  }
0x19ba   :  { %6113 = vmatprep.subr.bf16.mxu1 %v6584_v42  ;;  %6135 = vmatprep.subr.bf16.mxu0 %v6585_v7  ;;  %v3895_v42 = vmax.f32 %v3709_v50, 0.0  ;;  %v3916_v7 = vmax.f32 %v3801_v0, 0.0  ;;  %v6617_v60 = vld [vmem:[%s8377_s12 + $0x2d8] sm:$0xff]  }
0x19bb   :  { %v6618_v0 = vld [vmem:[%s8377_s12 + $0x218] sm:$0xff]  }
0x19bd   :  { %6114 = vmatpush3.bf16.msra.mxu1 %v6586_v2  ;;  %6136 = vmatpush3.bf16.msra.mxu0 %v6587_v29  ;;  %v3925_v2 = vpack.c.bf16 %v3909_v5, %v3893_v43  ;;  %v3898_v29 = vmax.f32 %v3754_v6, 0.0  ;;  %v6619_v5 = vld [vmem:[%s8377_s12 + $0x298] sm:$0xff]   ;;  %v6620_v6 = vld [vmem:[%s8377_s12 + $0x250] sm:$0xff]   ;;  %v6624_v43 = vld [vmem:[%s8377_s12 + $0x248] sm:$0xff]  }
0x19be   :  { %6115 = vmatprep.subr.bf16.mxu1 %v6588_v31  ;;  %6137 = vmatprep.subr.bf16.mxu0 %v6589_v32  ;;  %v3927_v31 = vpack.c.bf16 %v3911_v39, %v3895_v42  ;;  %v3900_v32 = vmax.f32 %v3797_v41, 0.0  ;;  %v6622_v39 = vld [vmem:[%s8377_s12 + $0x210] sm:$0xff]   ;;  %v3337_v42 = vrot.slane %v8000_v38, %v3304_v34  ;;  %v6627_v34 = vld [vmem:[%s8377_s12 + $0x288] sm:$0xff]  }
0x19c1   :  { %6116 = vmatpush3.bf16.msra.mxu1 %v6590_v17  ;;  %6138 = vmatpush3.bf16.msra.mxu0 %v6591_v27  ;;  %v6604_v17 = vld [vmem:[%s8377_s12 + $0x270] sm:$0xff]   ;;  %v3930_v27 = vpack.c.bf16 %v3914_v13, %v3898_v29  ;;  %v6625_v13 = vld [vmem:[%s8377_s12 + $0x2c8] sm:$0xff]   ;;  %v3756_v29 = vadd.f32 %v7975_v8, %v3337_v42  ;;  %v3365_v8 = vrot.slane %v8000_v38, %v3332_v49  ;;  %v6631_v49 = vld [vmem:[%s8377_s12 + $0x280] sm:$0xff]  }
0x19c2   :  { %6117 = vmatprep.subr.bf16.mxu1 %v6592_v15  ;;  %6139 = vmatprep.subr.bf16.mxu0 %v6593_v28  ;;  %v6605_v15 = vld [vmem:[%s8377_s12 + $0x2f0] sm:$0xff]   ;;  %v3932_v28 = vpack.c.bf16 %v3916_v7, %v3900_v32  ;;  %v3345_v7 = vrot.slane %v8000_v38, %v3312_v24  ;;  %v6628_v24 = vld [vmem:[%s8377_s12 + $0x240] sm:$0xff]  }
0x19c4   :  { %v3799_v32 = vadd.f32 %v7980_v37, %v3345_v7  ;;  %v6630_v37 = vld [vmem:[%s8377_s12 + $0x200] sm:$0xff]  }
0x19c5   :  { %6118 = vmatpush3.bf16.msra.mxu1 %v6594_v4  ;;  %6140 = vmatpush3.bf16.msra.mxu0 %v6595_v35  ;;  %v6609_v4 = vld [vmem:[%s8377_s12 + $0x2e8] sm:$0xff]   ;;  %v6613_v35 = vld [vmem:[%s8377_s12 + $0x2e0] sm:$0xff]  }
0x19c6   :  { %6119 = vmatprep.subr.bf16.mxu1 %v6596_v56  ;;  %6141 = vmatprep.subr.bf16.mxu0 %v6597_v23  ;;  %v8072_v56 = vpop.f32.mrf.mxu1  ;;  %v6615_v23 = vld [vmem:[%s8377_s12 + $0x2a0] sm:$0xff]  }
0x19c8   :  { %v3839_v50 = vpop.f32.mrf.mxu1 }
0x19c9   :  { %6120 = vmatpush3.bf16.msra.mxu1 %v6598_v20  ;;  %6142 = vmatpush3.bf16.msra.mxu0 %v6599_v22  ;;  %v3882_v20 = vpop.f32.mrf.mxu0  ;;  %v6621_v22 = vld [vmem:[%s8377_s12 + $0x2d0] sm:$0xff]  }
0x19ca   :  { %6149 = vmatprep.subr.bf16.mxu1 %v6600_v51  ;;  %6171 = vmatprep.subr.bf16.mxu0 %v6601_v11  ;;  %v8100_v51 = vpop.f32.mrf.mxu1  ;;  %v6623_v11 = vld [vmem:[%s8377_s12 + $0x290] sm:$0xff]  }
0x19cb   :  { %v8105_v41 = vpop.f32.mrf.mxu0 }
0x19cc   :  { %5081 = vmatmul.mubr.bf16.vlgmr.msra.gmra.mxu1 %v3925_v2  ;;  %5122 = vmatmul.mubr.bf16.vlgmr.msra.gmra.mxu0 %v3927_v31  ;;  %v6626_v2 = vld [vmem:[%s8377_s12 + $0x208] sm:$0xff]  }
0x19cd   :  { %6150 = vmatpush3.bf16.msra.mxu1 %v6602_v58  ;;  %5162 = vmatprep.mubr.bf16.mxu1 %v3930_v27  ;;  %v3843_v58 = vpop.f32.mrf.mxu1  ;;  %v3886_v31 = vpop.f32.mrf.mxu0 }
0x19ce   :  { %6172 = vmatpush3.bf16.msra.mxu0 %v6603_v21  ;;  %5203 = vmatprep.mubr.bf16.mxu0 %v3932_v28  ;;  %v3357_v21 = vrot.slane %v8000_v38, %v3324_v48  ;;  %v6629_v48 = vld [vmem:[%s8377_s12 + $0x2c0] sm:$0xff]   ;;  %v3887_v28 = vadd.f32 %v3886_v31, %v3365_v8  ;;  %v6648_v31 = vld [vmem:[%s8377_s12 + $0x358] sm:$0xff]  }
0x19cf   :  { %6151 = vmatprep.subr.bf16.mxu1 %v6604_v17  ;;  %6173 = vmatprep.subr.bf16.mxu0 %v6605_v15  ;;  %v3752_v17 = vadd.f32 %v7945_v12, %v3337_v42  ;;  %v3795_v15 = vadd.f32 %v7950_v10, %v3345_v7  ;;  %v6632_v12 = vld [vmem:[%s8377_s12 + $0x378] sm:$0xff]   ;;  %v3883_v10 = vadd.f32 %v3882_v20, %v3365_v8  ;;  %v6636_v20 = vld [vmem:[%s8377_s12 + $0x370] sm:$0xff]   ;;  %v6642_v42 = vld [vmem:[%s8377_s12 + $0x328] sm:$0xff]  }
0x19d0   :  { %v3844_v27 = vadd.f32 %v3843_v58, %v3357_v21  ;;  %v6643_v7 = vld [vmem:[%s8377_s12 + $0x3a8] sm:$0xff]   ;;  %v6644_v58 = vld [vmem:[%s8377_s12 + $0x360] sm:$0xff]   ;;  %v6652_v8 = vld [vmem:[%s8377_s12 + $0x350] sm:$0xff]  }
0x19d1   :  { %6152 = vmatpush3.bf16.msra.mxu1 %v6606_v26  ;;  %v3913_v26 = vmax.f32 %v3756_v29, 0.0  ;;  %v6646_v29 = vld [vmem:[%s8377_s12 + $0x320] sm:$0xff]  }
0x19d2   :  { %6174 = vmatpush3.bf16.msra.mxu0 %v6607_v36  ;;  %6153 = vmatprep.subr.bf16.mxu1 %v6608_v59  ;;  %v3840_v36 = vadd.f32 %v3839_v50, %v3357_v21  ;;  %v3915_v59 = vmax.f32 %v3799_v32, 0.0  ;;  %v6647_v21 = vld [vmem:[%s8377_s12 + $0x3a0] sm:$0xff]   ;;  %v6651_v32 = vld [vmem:[%s8377_s12 + $0x398] sm:$0xff]  }
0x19d3   :  { %6175 = vmatprep.subr.bf16.mxu0 %v6609_v4  ;;  %v6633_v4 = vld [vmem:[%s8377_s12 + $0x3f8] sm:$0xff]  }
0x19d5   :  { %6154 = vmatpush3.bf16.msra.mxu1 %v6610_v46  ;;  %v3897_v46 = vmax.f32 %v3752_v17, 0.0  ;;  %v6654_v17 = vld [vmem:[%s8377_s12 + $0x310] sm:$0xff]  }
0x19d6   :  { %6176 = vmatpush3.bf16.msra.mxu0 %v6611_v52  ;;  %6155 = vmatprep.subr.bf16.mxu1 %v6612_v55  ;;  %v3918_v52 = vmax.f32 %v3844_v27, 0.0  ;;  %v3899_v55 = vmax.f32 %v3795_v15, 0.0  ;;  %v6655_v27 = vld [vmem:[%s8377_s12 + $0x390] sm:$0xff]   ;;  %v6656_v15 = vld [vmem:[%s8377_s12 + $0x348] sm:$0xff]  }
0x19d7   :  { %6177 = vmatprep.subr.bf16.mxu0 %v6613_v35  ;;  %v3920_v35 = vmax.f32 %v3887_v28, 0.0  ;;  %v6657_v28 = vld [vmem:[%s8377_s12 + $0x3c8] sm:$0xff]  }
0x19d8   :  { %v3931_v50 = vpack.c.bf16 %v3915_v59, %v3899_v55 }
0x19d9   :  { %6156 = vmatpush3.bf16.msra.mxu1 %v6614_v9  ;;  %v6634_v9 = vld [vmem:[%s8377_s12 + $0x338] sm:$0xff]  }
0x19da   :  { %6178 = vmatpush3.bf16.msra.mxu0 %v6615_v23  ;;  %6157 = vmatprep.subr.bf16.mxu1 %v6616_v57  ;;  %v3929_v23 = vpack.c.bf16 %v3913_v26, %v3897_v46  ;;  %v3902_v57 = vmax.f32 %v3840_v36, 0.0  ;;  %v3361_v26 = vrot.slane %v8000_v38, %v3328_v25  ;;  %v6658_v36 = vld [vmem:[%s8377_s12 + $0x308] sm:$0xff]   ;;  %v6661_v25 = vld [vmem:[%s8377_s12 + $0x3c0] sm:$0xff]  }
0x19db   :  { %6179 = vmatprep.subr.bf16.mxu0 %v6617_v60  ;;  %v6635_v60 = vld [vmem:[%s8377_s12 + $0x3b8] sm:$0xff]  }
0x19dc   :  { %v3885_v59 = vadd.f32 %v8105_v41, %v3361_v26  ;;  %v6663_v41 = vld [vmem:[%s8377_s12 + $0x380] sm:$0xff]  }
0x19dd   :  { %6158 = vmatpush3.bf16.msra.mxu1 %v6618_v0  ;;  %v3904_v0 = vmax.f32 %v3883_v10, 0.0  ;;  %v6662_v10 = vld [vmem:[%s8377_s12 + $0x300] sm:$0xff]  }
0x19de   :  { %6180 = vmatpush3.bf16.msra.mxu0 %v6619_v5  ;;  %6159 = vmatprep.subr.bf16.mxu1 %v6620_v6  ;;  %v3934_v5 = vpack.c.bf16 %v3918_v52, %v3902_v57  ;;  %v6637_v6 = vld [vmem:[%s8377_s12 + $0x3f0] sm:$0xff]   ;;  %v3919_v46 = vmax.f32 %v3885_v59, 0.0 }
0x19df   :  { %6181 = vmatprep.subr.bf16.mxu0 %v6621_v22  ;;  %v3936_v22 = vpack.c.bf16 %v3920_v35, %v3904_v0 }
0x19e1   :  { %6160 = vmatpush3.bf16.msra.mxu1 %v6622_v39  ;;  %v6638_v39 = vld [vmem:[%s8377_s12 + $0x330] sm:$0xff]  }
0x19e2   :  { %6182 = vmatpush3.bf16.msra.mxu0 %v6623_v11  ;;  %6161 = vmatprep.subr.bf16.mxu1 %v6624_v43  ;;  %v6639_v11 = vld [vmem:[%s8377_s12 + $0x3b0] sm:$0xff]   ;;  %v6640_v43 = vld [vmem:[%s8377_s12 + $0x368] sm:$0xff]  }
0x19e3   :  { %6183 = vmatprep.subr.bf16.mxu0 %v6625_v13  ;;  %v6641_v13 = vld [vmem:[%s8377_s12 + $0x3e8] sm:$0xff]  }
0x19e5   :  { %6162 = vmatpush3.bf16.msra.mxu1 %v6626_v2  ;;  %v6645_v2 = vld [vmem:[%s8377_s12 + $0x3e0] sm:$0xff]  }
0x19e6   :  { %6184 = vmatpush3.bf16.msra.mxu0 %v6627_v34  ;;  %6163 = vmatprep.subr.bf16.mxu1 %v6628_v24  ;;  %v6649_v34 = vld [vmem:[%s8377_s12 + $0x3d8] sm:$0xff]  }
0x19e7   :  { %6185 = vmatprep.subr.bf16.mxu0 %v6629_v48  ;;  %v6650_v24 = vld [vmem:[%s8377_s12 + $0x318] sm:$0xff]   ;;  %v6653_v48 = vld [vmem:[%s8377_s12 + $0x3d0] sm:$0xff]  }
0x19e9   :  { %6164 = vmatpush3.bf16.msra.mxu1 %v6630_v37  ;;  %v3353_v37 = vrot.slane %v8000_v38, %v3320_v33  ;;  %v6660_v33 = vld [vmem:[%s8377_s12 + $0x340] sm:$0xff]  }
0x19ea   :  { %6186 = vmatpush3.bf16.msra.mxu0 %v6631_v49  ;;  %6193 = vmatprep.subr.bf16.mxu1 %v6632_v12  ;;  %v6659_v12 = vld [vmem:[%s8377_s12 + $0x388] sm:$0xff]  }
0x19eb   :  { %6215 = vmatprep.subr.bf16.mxu0 %v6633_v4  ;;  %v3842_v49 = vadd.f32 %v8100_v51, %v3353_v37  ;;  %v3838_v38 = vadd.f32 %v8072_v56, %v3353_v37  ;;  %v3881_v51 = vadd.f32 %v8077_v14, %v3361_v26 }
0x19ec   :  { %5163 = vmatmul.mubr.bf16.vlgmr.msra.gmra.mxu1 %v3929_v23 }
0x19ed   :  { %5204 = vmatmul.mubr.bf16.vlgmr.msra.gmra.mxu0 %v3931_v50  ;;  %6194 = vmatpush3.bf16.msra.mxu1 %v6634_v9  ;;  %v3917_v4 = vmax.f32 %v3842_v49, 0.0  ;;  %v3901_v52 = vmax.f32 %v3838_v38, 0.0  ;;  %v3903_v55 = vmax.f32 %v3881_v51, 0.0 }
0x19ee   :  { %5244 = vmatprep.mubr.bf16.mxu1 %v3934_v5  ;;  %6216 = vmatpush3.bf16.msra.mxu0 %v6635_v60 }
0x19ef   :  { %5285 = vmatprep.mubr.bf16.mxu0 %v3936_v22  ;;  %6195 = vmatprep.subr.bf16.mxu1 %v6636_v20  ;;  %v3933_v56 = vpack.c.bf16 %v3917_v4, %v3901_v52  ;;  %v3935_v14 = vpack.c.bf16 %v3919_v46, %v3903_v55 }
0x19f0   :  { %6217 = vmatprep.subr.bf16.mxu0 %v6637_v6 }
0x19f1   :  { %6196 = vmatpush3.bf16.msra.mxu1 %v6638_v39 }
0x19f2   :  { %6218 = vmatpush3.bf16.msra.mxu0 %v6639_v11  ;;  %6197 = vmatprep.subr.bf16.mxu1 %v6640_v43 }
0x19f3   :  { %6219 = vmatprep.subr.bf16.mxu0 %v6641_v13 }
0x19f5   :  { %6198 = vmatpush3.bf16.msra.mxu1 %v6642_v42 }
0x19f6   :  { %6220 = vmatpush3.bf16.msra.mxu0 %v6643_v7  ;;  %6199 = vmatprep.subr.bf16.mxu1 %v6644_v58  ;;  %v5845_v7 = vld [vmem:[%s8378_s13 + $0x3] ss:$0 sm:$0xff] }
0x19f7   :  { %6221 = vmatprep.subr.bf16.mxu0 %v6645_v2 }
0x19f9   :  { %6200 = vmatpush3.bf16.msra.mxu1 %v6646_v29 }
0x19fa   :  { %6222 = vmatpush3.bf16.msra.mxu0 %v6647_v21  ;;  %6201 = vmatprep.subr.bf16.mxu1 %v6648_v31 }
0x19fb   :  { %6223 = vmatprep.subr.bf16.mxu0 %v6649_v34 }
0x19fd   :  { %6202 = vmatpush3.bf16.msra.mxu1 %v6650_v24 }
0x19fe   :  { %6224 = vmatpush3.bf16.msra.mxu0 %v6651_v32  ;;  %6203 = vmatprep.subr.bf16.mxu1 %v6652_v8 }
0x19ff   :  { %6225 = vmatprep.subr.bf16.mxu0 %v6653_v48 }
0x1a01   :  { %6204 = vmatpush3.bf16.msra.mxu1 %v6654_v17 }
0x1a02   :  { %6226 = vmatpush3.bf16.msra.mxu0 %v6655_v27  ;;  %6205 = vmatprep.subr.bf16.mxu1 %v6656_v15 }
0x1a03   :  { %6227 = vmatprep.subr.bf16.mxu0 %v6657_v28 }
0x1a05   :  { %6206 = vmatpush3.bf16.msra.mxu1 %v6658_v36 }
0x1a06   :  { %6228 = vmatpush3.bf16.msra.mxu0 %v6659_v12  ;;  %6207 = vmatprep.subr.bf16.mxu1 %v6660_v33 }
0x1a07   :  { %6229 = vmatprep.subr.bf16.mxu0 %v6661_v25 }
0x1a09   :  { %6208 = vmatpush3.bf16.msra.mxu1 %v6662_v10 }
0x1a0a   :  { %6230 = vmatpush3.bf16.msra.mxu0 %v6663_v41 }
0x1a0c   :  { %5245 = vmatmul.mubr.bf16.vlgmr.msra.gmra.mxu1 %v3933_v56 }
0x1a0d   :  { %5286 = vmatmul.mubr.bf16.vlgmr.msra.gmra.mxu0 %v3935_v14 }
0x1a6c   :  { %v6077_v35 = vpop.f32.mrf.mxu1  ;;  %v6099_v9 = vpop.f32.mrf.mxu0 }
0x1a6e   :  { %v6078_v23 = vpop.f32.mrf.mxu1  ;;  %v6100_v57 = vpop.f32.mrf.mxu0 }
0x1a6f   :  { %v6079_v42 = vadd.f32 %v6078_v23, %v6077_v35  ;;  %v6101_v24 = vadd.f32 %v6100_v57, %v6099_v9 }
0x1a70   :  { %v6080_v60 = vpop.f32.mrf.mxu1  ;;  %v6102_v50 = vpop.f32.mrf.mxu0 }
0x1a71   :  { %v5001_v29 = vadd.f32 %v6079_v42, %v5845_v7 }
0x1a72   :  { %v6081_v0 = vpop.f32.mrf.mxu1  ;;  %v6103_v5 = vpop.f32.mrf.mxu0 }
0x1a73   :  { %v6082_v21 = vadd.f32 %v6081_v0, %v6080_v60  ;;  %v5042_v8 = vadd.f32 %v6101_v24, %v5001_v29  ;;  %v6104_v15 = vadd.f32 %v6103_v5, %v6102_v50 }
0x1a75   :  { %v5004_v48 = vadd.f32 %v6082_v21, %v5845_v7 }
0x1a77   :  { %v5045_v26 = vadd.f32 %v6104_v15, %v5004_v48 }
0x1a8c   :  { %v6121_v20 = vpop.f32.mrf.mxu1  ;;  %v6143_v6 = vpop.f32.mrf.mxu0 }
0x1a8e   :  { %v6122_v22 = vpop.f32.mrf.mxu1  ;;  %v6144_v39 = vpop.f32.mrf.mxu0 }
0x1a8f   :  { %v6123_v32 = vadd.f32 %v6122_v22, %v6121_v20  ;;  %v6145_v36 = vadd.f32 %v6144_v39, %v6143_v6 }
0x1a90   :  { %v6124_v11 = vpop.f32.mrf.mxu1  ;;  %v6146_v43 = vpop.f32.mrf.mxu0 }
0x1a91   :  { %v5083_v28 = vadd.f32 %v6123_v32, %v5042_v8 }
0x1a92   :  { %v6125_v13 = vpop.f32.mrf.mxu1  ;;  %v6147_v2 = vpop.f32.mrf.mxu0 }
0x1a93   :  { %v6126_v37 = vadd.f32 %v6125_v13, %v6124_v11  ;;  %v5124_v59 = vadd.f32 %v6145_v36, %v5083_v28  ;;  %v6148_v38 = vadd.f32 %v6147_v2, %v6146_v43 }
0x1a95   :  { %v5086_v25 = vadd.f32 %v6126_v37, %v5045_v26 }
0x1a97   :  { %v5127_v46 = vadd.f32 %v6148_v38, %v5086_v25 }
0x1aac   :  { %v6165_v58 = vpop.f32.mrf.mxu1 }
0x1aad   :  { %v6187_v31 = vpop.f32.mrf.mxu0 }
0x1aae   :  { %v6166_v34 = vpop.f32.mrf.mxu1 }
0x1aaf   :  { %v6188_v17 = vpop.f32.mrf.mxu0  ;;  %v6167_v49 = vadd.f32 %v6166_v34, %v6165_v58 }
0x1ab0   :  { %v6168_v27 = vpop.f32.mrf.mxu1  ;;  %v6189_v52 = vadd.f32 %v6188_v17, %v6187_v31 }
0x1ab1   :  { %v6190_v12 = vpop.f32.mrf.mxu0  ;;  %v5165_v51 = vadd.f32 %v6167_v49, %v5124_v59 }
0x1ab2   :  { %v6169_v33 = vpop.f32.mrf.mxu1 }
0x1ab3   :  { %v6170_v10 = vadd.f32 %v6169_v33, %v6168_v27  ;;  %v6191_v4 = vpop.f32.mrf.mxu0  ;;  %v5206_v14 = vadd.f32 %v6189_v52, %v5165_v51 }
0x1ab4   :  { %v6192_v60 = vadd.f32 %v6191_v4, %v6190_v12 }
0x1ab5   :  { %v5168_v35 = vadd.f32 %v6170_v10, %v5127_v46 }
0x1ab7   :  { %v5209_v6 = vadd.f32 %v6192_v60, %v5168_v35 }
0x1acc   :  { %v6209_v41 = vpop.f32.mrf.mxu1 }
0x1acd   :  { %v6231_v55 = vpop.f32.mrf.mxu0 }
0x1ace   :  { %v6210_v56 = vpop.f32.mrf.mxu1 }
0x1acf   :  { %v6211_v9 = vadd.f32 %v6210_v56, %v6209_v41  ;;  %v6232_v23 = vpop.f32.mrf.mxu0 }
0x1ad0   :  { %v6212_v57 = vpop.f32.mrf.mxu1  ;;  %v6233_v0 = vadd.f32 %v6232_v23, %v6231_v55 }
0x1ad1   :  { %v5247_v50 = vadd.f32 %v6211_v9, %v5206_v14  ;;  %v6234_v20 = vpop.f32.mrf.mxu0 }
0x1ad2   :  { %v6213_v5 = vpop.f32.mrf.mxu1 }
0x1ad3   :  { %v5288_v22 = vadd.f32 %v6233_v0, %v5247_v50  ;;  %v6214_v39 = vadd.f32 %v6213_v5, %v6212_v57  ;;  %v6235_v11 = vpop.f32.mrf.mxu0 }
0x1ad4   :  { %v6236_v7 = vadd.f32 %v6235_v11, %v6234_v20 }
0x1ad5   :  { %v5298_v43 = vcombine.high %v5288_v22, %v5288_v22  ;;  %v5305_v13 = vrot.slane %v5288_v22, %v7120_v63  ;;  %v5250_v42 = vadd.f32 %v6214_v39, %v5209_v6 }
0x1ad7   :  { %v5312_v58 = vrot.slane %v5298_v43, %v7120_v63  ;;  %v5313_v2 = vcombine.high %v5305_v13, %v5305_v13  ;;  %v5291_v29 = vadd.f32 %v6236_v7, %v5250_v42  ;;  %v5340_v32 = vadd.f32 %v5305_v13, %v7652_v18 }
0x1ad9   :  { %v5314_v21 = vcombine.high %v5312_v58, %v5312_v58  ;;  %v5315_v31 = vcombine.high %v5291_v29, %v5291_v29  ;;  %v5322_v34 = vrot.slane %v5291_v29, %v7120_v63  ;;  %v5341_v24 = vadd.f32 %v5313_v2, %v7654_v16 }
0x1ada   :  { %v5342_v17 = vadd.f32 %v5312_v58, %v7656_v19 }
0x1adb   :  { %v5329_v8 = vrot.slane %v5315_v31, %v7120_v63  ;;  %v5330_v48 = vcombine.high %v5322_v34, %v5322_v34  ;;  %v5343_v27 = vadd.f32 %v5314_v21, %v7658_v54  ;;  %v5356_v15 = vcombine.low %v5340_v32, %v5341_v24 }
0x1adc   :  { %v5344_v37 = vadd.f32 %v5322_v34, %v7664_v53 }
0x1add   :  { %v5331_v28 = vcombine.high %v5329_v8, %v5329_v8  ;;  %v5357_v26 = vcombine.low %v5342_v17, %v5343_v27  ;;  %v5345_v36 = vadd.f32 %v5330_v48, %v7666_v3  ;;  %v5346_v49 = vadd.f32 %v5329_v8, %v7668_v40 }
0x1ade   :  { %v5364_v16 = vrot.slane %v5356_v15, %v7120_v63 }
0x1adf   :  { %v5371_v18 = vrot.slane %v5357_v26, %v7120_v63  ;;  %v5347_v12 = vadd.f32 %v5331_v28, %v7670_v45  ;;  %v5373_v33 = vcombine.low %v5344_v37, %v5345_v36 }
0x1ae1   :  { %v5372_v59 = vcombine.low %v5364_v16, %v5371_v18  ;;  %v5374_v19 = vcombine.low %v5346_v49, %v5347_v12  ;;  %v5381_v25 = vrot.slane %v5373_v33, %v7120_v63  ;;  %v5974_v16 = vld [vmem:[%s8378_s13 + $0x8] ss:$0 sm:$0xff]  ;;  %v5975_v18 = vld [vmem:[%s8378_s13 + $0x9] ss:$0 sm:$0xff]  ;;  %s6786_s13 = smov [#allocation2]  }
0x1ae2   :  { %v5651_v33 = vcombine.high %v5975_v18, %v5975_v18  ;;  %s5730_s15 = sshll.u32 %s6786_s13, 4  ;;  %s5731_s15 = int_to_ptr.vmem [resolvable:$true] %s5730_s15 }
0x1ae3   :  { %v5392_v54 = vsel %vm203_vm1, %v5372_v59, 0.0  ;;  %v5388_v53 = vrot.slane %v5374_v19, %v7120_v63  ;;  %v5624_v59 = vrot.slane %v5974_v16, %v7120_v63  ;;  %s6740_s6 = scalar_lea.vmem %s5731_s15, 256  ;;  %p6745_p1 = scmp.lt.s32.totalorder %s5731_s15, %s5731_s15 }
0x1ae4   :  { %5393 = vadd.xlane.f32.xlu1 %v5392_v54  ;;  %v5658_v54 = vrot.slane %v5975_v18, %v7120_v63  ;;  %p6741_p0 = scmp.ne.s32.totalorder %s5731_s15, %s6740_s6  ;;  %p6746_p2 = scmp.lt.s32.totalorder %s6740_s6, %s6740_s6 }
0x1ae5   :  { %v5389_v38 = vcombine.low %v5381_v25, %v5388_v53  ;;  %v5665_v25 = vrot.slane %v5651_v33, %v7120_v63  ;;  %v6785_v53 = vmov 1934713408  }
0x1ae6   :  { %p6747_p3 = por %p6746_p2, %p6745_p1 }
0x1ae7   :  { %v5395_v3 = vsel %vm203_vm1, %v5389_v38, 0.0  ;;  %v5682_v38 = vunpack.c.l.s4 %v6785_v53 }
0x1ae8   :  { %5396 = vadd.xlane.f32.xlu0 %v5395_v3  ;;  %p6748_p4 = pnand %p6747_p3, %p6741_p0 }
0x1b6d   :  { %v5394_v40 = vpop.xlane.xlu1 %5393 }
0x1b6e   :  { %v5398_v51 = vmul.f32 0.03125, %v5394_v40  ;;  %v5632_v40 = vcombine.high %v5624_v59, %v5624_v59 }
0x1b70   :  { %v5408_v10 = vrot.slane %v5398_v51, %v7141_v47  ;;  %v5415_v45 = vrot.slane %v5398_v51, %v7144_v61  ;;  %v5422_v4 = vrot.slane %v5398_v51, %v7147_v62  ;;  %v5429_v41 = vrot.slane %v5398_v51, %v7150_v44 }
0x1b71   :  { %v5397_v46 = vpop.xlane.xlu0 %5396 }
0x1b72   :  { %v5399_v52 = vmul.f32 0.03125, %v5397_v46  ;;  %v8281_v55 = vsub.f32 %v5340_v32, %v5408_v10  ;;  %v8283_v56 = vsub.f32 %v5341_v24, %v5415_v45  ;;  %v8285_v14 = vsub.f32 %v5342_v17, %v5422_v4 }
0x1b73   :  { %v8287_v35 = vsub.f32 %v5343_v27, %v5429_v41  ;;  %v5666_v46 = vcombine.high %v5658_v54, %v5658_v54 }
0x1b74   :  { %v5436_v9 = vrot.slane %v5399_v52, %v7141_v47  ;;  %v5443_v23 = vrot.slane %v5399_v52, %v7144_v61  ;;  %v5450_v57 = vrot.slane %v5399_v52, %v7147_v62  ;;  %v5457_v60 = vrot.slane %v5399_v52, %v7150_v44 }
0x1b75   :  { %v5474_v50 = vmul.f32 %v8281_v55, %v8281_v55  ;;  %v5475_v0 = vmul.f32 %v8283_v56, %v8283_v56  ;;  %v5476_v20 = vmul.f32 %v8285_v14, %v8285_v14  ;;  %v5477_v5 = vmul.f32 %v8287_v35, %v8287_v35 }
0x1b76   :  { %v8301_v6 = vsub.f32 %v5344_v37, %v5436_v9  ;;  %v8303_v22 = vsub.f32 %v5345_v36, %v5443_v23  ;;  %v8305_v39 = vsub.f32 %v5346_v49, %v5450_v57  ;;  %v8307_v11 = vsub.f32 %v5347_v12, %v5457_v60 }
0x1b77   :  { %v5490_v43 = vcombine.low %v5474_v50, %v5475_v0  ;;  %v5491_v13 = vcombine.low %v5476_v20, %v5477_v5  ;;  %v5617_v12 = vcombine.high %v5974_v16, %v5974_v16  ;;  %v5667_v52 = vcombine.high %v5665_v25, %v5665_v25 }
0x1b78   :  { %v5478_v42 = vmul.f32 %v8301_v6, %v8301_v6  ;;  %v5479_v7 = vmul.f32 %v8303_v22, %v8303_v22  ;;  %v5480_v58 = vmul.f32 %v8305_v39, %v8305_v39  ;;  %v5481_v2 = vmul.f32 %v8307_v11, %v8307_v11 }
0x1b79   :  { %v5498_v29 = vrot.slane %v5490_v43, %v7120_v63  ;;  %v5505_v21 = vrot.slane %v5491_v13, %v7120_v63  ;;  %v5631_v19 = vrot.slane %v5617_v12, %v7120_v63  ;;  %v5683_v9 = vunpack.c.0.s8 %v5682_v38 }
0x1b7a   :  { %v5507_v31 = vcombine.low %v5478_v42, %v5479_v7  ;;  %v5508_v34 = vcombine.low %v5480_v58, %v5481_v2 }
0x1b7b   :  { %v5506_v24 = vcombine.low %v5498_v29, %v5505_v21  ;;  %v5633_v51 = vcombine.high %v5631_v19, %v5631_v19 }
0x1b7c   :  { %v5515_v32 = vrot.slane %v5507_v31, %v7120_v63  ;;  %v5522_v8 = vrot.slane %v5508_v34, %v7120_v63 }
0x1b7d   :  { %v5526_v48 = vsel %vm203_vm1, %v5506_v24, 0.0 }
0x1b7e   :  { %5527 = vadd.xlane.f32.xlu1 %v5526_v48  ;;  %v5523_v17 = vcombine.low %v5515_v32, %v5522_v8 }
0x1b80   :  { %v5529_v27 = vsel %vm203_vm1, %v5523_v17, 0.0 }
0x1b81   :  { %5530 = vadd.xlane.f32.xlu0 %v5529_v27 }
0x1c07   :  { %v5528_v15 = vpop.xlane.xlu1 %5527 }
0x1c08   :  { %v5532_v28 = vmul.f32 0.03125, %v5528_v15 }
0x1c0a   :  { %v5534_v37 = vadd.f32 1e-05, %v5532_v28  ;;  %v5531_v26 = vpop.xlane.xlu0 %5530 }
0x1c0b   :  { %v5533_v36 = vmul.f32 0.03125, %v5531_v26 }
0x1c0c   :  { %6736 = vrsqrt.f32 %v5534_v37 }
0x1c0d   :  { %v5535_v49 = vadd.f32 1e-05, %v5533_v36 }
0x1c0f   :  { %6738 = vrsqrt.f32 %v5535_v49 }
0x1c19   :  { %v6737_v3 = vpop.eup %6736 }
0x1c1a   :  { %v5546_v10 = vrot.slane %v6737_v3, %v7141_v47  ;;  %v5553_v45 = vrot.slane %v6737_v3, %v7144_v61  ;;  %v5560_v4 = vrot.slane %v6737_v3, %v7147_v62  ;;  %v5567_v41 = vrot.slane %v6737_v3, %v7150_v44 }
0x1c1c   :  { %v6739_v23 = vpop.eup %6738  ;;  %v5604_v57 = vmul.f32 %v5546_v10, %v8281_v55  ;;  %v5605_v63 = vmul.f32 %v5553_v45, %v8283_v56  ;;  %v5606_v60 = vmul.f32 %v5560_v4, %v8285_v14  ;;  %v5607_v50 = vmul.f32 %v5567_v41, %v8287_v35 }
0x1c1d   :  { %v5574_v0 = vrot.slane %v6739_v23, %v7141_v47  ;;  %v5581_v20 = vrot.slane %v6739_v23, %v7144_v61  ;;  %v5588_v5 = vrot.slane %v6739_v23, %v7147_v62  ;;  %v5595_v43 = vrot.slane %v6739_v23, %v7150_v44 }
0x1c1e   :  { %v5638_v13 = vmul.f32 %v5624_v59, %v5604_v57  ;;  %v5639_v42 = vmul.f32 %v5632_v40, %v5605_v63  ;;  %v5640_v7 = vmul.f32 %v5631_v19, %v5606_v60  ;;  %v5641_v58 = vmul.f32 %v5633_v51, %v5607_v50 }
0x1c1f   :  { %v5608_v55 = vmul.f32 %v5574_v0, %v8301_v6  ;;  %v5609_v56 = vmul.f32 %v5581_v20, %v8303_v22  ;;  %v5610_v14 = vmul.f32 %v5588_v5, %v8305_v39  ;;  %v5611_v35 = vmul.f32 %v5595_v43, %v8307_v11 }
0x1c20   :  { %v5686_v47 = vsub.s32 %v5683_v9, %v6918_v30  ;;  %v5672_v21 = vadd.f32 %v5658_v54, %v5638_v13  ;;  %v5673_v44 = vadd.f32 %v5666_v46, %v5639_v42  ;;  %v5674_v31 = vadd.f32 %v5665_v25, %v5640_v7 }
0x1c21   :  { %v5642_v2 = vmul.f32 %v5624_v59, %v5608_v55  ;;  %v5643_v61 = vmul.f32 %v5632_v40, %v5609_v56  ;;  %v5644_v29 = vmul.f32 %v5631_v19, %v5610_v14  ;;  %v5645_v62 = vmul.f32 %v5633_v51, %v5611_v35 }
0x1c22   :  { %v5675_v34 = vadd.f32 %v5667_v52, %v5641_v58 }
0x1c23   :  { %v5676_v24 = vadd.f32 %v5658_v54, %v5642_v2  ;;  %v5677_v32 = vadd.f32 %v5666_v46, %v5643_v61  ;;  %v5678_v8 = vadd.f32 %v5665_v25, %v5644_v29  ;;  %v5679_v6 = vadd.f32 %v5667_v52, %v5645_v62 }
0x1c25   :  { %v5680_v48 = vcombine.low %v5672_v21, %v5676_v24  ;;  %v5689_v22 = vcombine.low %v5673_v44, %v5677_v32  ;;  %v5698_v17 = vcombine.low %v5674_v31, %v5678_v8  ;;  %v5707_v39 = vcombine.low %v5675_v34, %v5679_v6 }
0x1c27   :  { %v5687_v30 = vrot.slane %v5680_v48, %v5686_v47  ;;  %v5696_v11 = vrot.slane %v5689_v22, %v5686_v47  ;;  %v5705_v27 = vrot.slane %v5698_v17, %v5686_v47  ;;  %v5714_v15 = vrot.slane %v5707_v39, %v5686_v47 }
0x1c29   :  { %v5688_v28 = vcombine.high %v5687_v30, %v6762_v1  ;;  %v5697_v37 = vcombine.high %v5696_v11, %v6762_v1  ;;  %v5706_v26 = vcombine.high %v5705_v27, %v6762_v1  ;;  %v5715_v36 = vcombine.high %v5714_v15, %v6762_v1  ;;  %5717 = vst.msk [vmem:[#allocation2] sm:$0x3] %vm5716_vm6, %v5687_v30 }
0x1c2a   :  { %5719 = vst.msk [vmem:[#allocation2 + $0x4] sm:$0x3] %vm5716_vm6, %v5696_v11  ;;  %5721 = vst.msk [vmem:[#allocation2 + $0x8] sm:$0x3] %vm5716_vm6, %v5705_v27 }
0x1c2b   :  { %5723 = vst.msk [vmem:[#allocation2 + $0xc] sm:$0x3] %vm5716_vm6, %v5714_v15  ;;  %5718 = vst.msk [vmem:[#allocation2 + $0x2] sm:$0x3] %vm5716_vm6, %v5688_v28 }
0x1c2c   :  { %5720 = vst.msk [vmem:[#allocation2 + $0x6] sm:$0x3] %vm5716_vm6, %v5697_v37  ;;  %5722 = vst.msk [vmem:[#allocation2 + $0xa] sm:$0x3] %vm5716_vm6, %v5706_v26 }
0x1c2d   :  { %5724 = vst.msk [vmem:[#allocation2 + $0xe] sm:$0x3] %vm5716_vm6, %v5715_v36 }
0x1c2e   :  { %6751 = shalt.err (!%p6748_p4)
}
0x1c2f   :  { %s6787_s5 = smov 32   ;;  %s6788_s16 = smov 2  }
0x1c30   :  { %5736 = dma.vmem_to_hbm [thread:$0]  %s5731_s15, 256, %s8379_s14, [#allocation3], %s6787_s5, %s6787_s5, %s6788_s16  }
0x1c31   :  { %6760 = dma.done.wait [#allocation3], 256  }
0x1c32   :  { %6761 = vsyncadd [#allocation3], 4294967040 }
0x1c33   :  { %5740 = vsyncpa [#allocation3], 1 }

</bundles_post_ra>
